<compile_context>
chip_gen: v7x
topology: tpu7x:2x2x1
jax: 0.10.0
libtpu: 0.0.40
codegen_flags: <defaults>
</compile_context>

<pallas_src>
import functools

import jax
import jax.numpy as jnp
from jax.experimental import pallas as pl
from jax.experimental.pallas import tpu as pltpu  # noqa: F401  (no scratch needed anymore)

# ----- module hyper-parameters (small, consistent with the PyTorch module) -----
INPUT_DIM = 16     # D
RNN_SIZE = 32      # H (rnn_size)
OUTPUT_DIM = 8     # fc output dim (even, so last_timestep's split works)
NUM_LAYERS = 2
BIDIRECTIONAL = True
BATCH = 4          # N (padded to 8 rows inside the wrapper)
SEQ_LEN = 8        # L


# --------------------------------------------------------------------------------------
# Fused Pallas kernel
# --------------------------------------------------------------------------------------
def _lstm_cell(gates, c_prev, H):
    """gates: (Np, 4H) in packed gate order [i, f, o, g]."""
    sig = jax.nn.sigmoid(gates[:, 0:3 * H])       # EUP over 3H lanes
    g = jnp.tanh(gates[:, 3 * H:4 * H])           # EUP over H lanes
    i = sig[:, 0 * H:1 * H]
    f = sig[:, 1 * H:2 * H]
    o = sig[:, 2 * H:3 * H]
    c = f * c_prev + i * g
    h = o * jnp.tanh(c)
    return h, c


def _fused_kernel(L, N, H, OUT,
                  len_ref, x_ref,
                  wih0_ref, whh0_ref, b0_ref,
                  wih1_ref, whh1_ref, b1_ref,
                  fcw_ref, fcb_ref,
                  out_ref):
    """N here is the padded batch (multiple of 8)."""
    H4 = 4 * H
    lengths = len_ref[...]                                   # (N, 1) int32

    # ---------------- layer 0 ----------------
    # Hoisted input projection, both directions at once: (L*N, D) @ (D, 8H) + (1, 8H).
    # Column layout: [fwd i f o g | bwd i f o g].
    A0 = jnp.dot(x_ref[...], wih0_ref[...], preferred_element_type=jnp.float32) + b0_ref[...]

    h_f = jnp.zeros((N, H), jnp.float32)
    h_b = jnp.zeros((N, H), jnp.float32)
    c_f = jnp.zeros((N, H), jnp.float32)
    c_b = jnp.zeros((N, H), jnp.float32)
    hs_f = []   # fwd hidden at abs time s            (register-resident)
    hs_b = []   # bwd hidden at abs time L-1-s        (register-resident, reversed below)
    # NOTE: fully unrolled static loop; fine at L=8/Np=8 (working set << 64 vregs).
    for s in range(L):                                       # fully unrolled, static
        h_cat = jnp.concatenate([h_f, h_b], axis=1)          # (N, 2H)
        rec = jnp.dot(h_cat, whh0_ref[...],
                      preferred_element_type=jnp.float32)    # (N, 8H), block-diag W_hh
        g_f = A0[s * N:(s + 1) * N, 0:H4] + rec[:, 0:H4]             # tile-aligned rows
        g_b = A0[(L - 1 - s) * N:(L - s) * N, H4:2 * H4] + rec[:, H4:2 * H4]
        h_f, c_f = _lstm_cell(g_f, c_f, H)
        h_b, c_b = _lstm_cell(g_b, c_b, H)
        hs_f.append(h_f)
        hs_b.append(h_b)
    hs_b = hs_b[::-1]                                        # hs_b[t] = bwd hidden at abs time t
    # Layer-1 input, time-major rows, [fwd | bwd] feature concat, built once in registers.
    hseq = jnp.concatenate(
        [jnp.concatenate([hs_f[t], hs_b[t]], axis=1) for t in range(L)], axis=0)   # (L*N, 2H)

    # ---------------- layer 1 ----------------
    A1 = jnp.dot(hseq, wih1_ref[...], preferred_element_type=jnp.float32) + b1_ref[...]

    h_f = jnp.zeros((N, H), jnp.float32)
    h_b = jnp.zeros((N, H), jnp.float32)
    c_f = jnp.zeros((N, H), jnp.float32)
    c_b = jnp.zeros((N, H), jnp.float32)
    cap_f = jnp.zeros((N, H), jnp.float32)   # fwd hidden at abs time lengths-1
    cap_b = jnp.zeros((N, H), jnp.float32)   # bwd hidden at abs time lengths-1
    h_f0 = None                              # fwd hidden at abs time 0
    for s in range(L):
        h_cat = jnp.concatenate([h_f, h_b], axis=1)
        rec = jnp.dot(h_cat, whh1_ref[...], preferred_element_type=jnp.float32)
        g_f = A1[s * N:(s + 1) * N, 0:H4] + rec[:, 0:H4]
        g_b = A1[(L - 1 - s) * N:(L - s) * N, H4:2 * H4] + rec[:, H4:2 * H4]
        h_f, c_f = _lstm_cell(g_f, c_f, H)
        h_b, c_b = _lstm_cell(g_b, c_b, H)
        # In-kernel lengths gather via selects: fwd abs time = s, bwd abs time = L-1-s.
        cap_f = jnp.where(lengths == (s + 1), h_f, cap_f)     # s == lengths-1
        cap_b = jnp.where(lengths == (L - s), h_b, cap_b)     # L-1-s == lengths-1
        if s == 0:
            h_f0 = h_f
    h_b0 = h_b                                                # bwd hidden at abs time 0

    # ------------- FC on the gathered last timesteps (gather-then-FC) -------------
    last_at_len = jnp.concatenate([cap_f, cap_b], axis=1)      # (N, 2H) features at t=lengths-1
    last_at_0 = jnp.concatenate([h_f0, h_b0], axis=1)          # (N, 2H) features at t=0
    feats = jnp.concatenate([last_at_len, last_at_0], axis=0)  # (2N, 2H)
    fc = jnp.dot(feats, fcw_ref[...], preferred_element_type=jnp.float32) + fcb_ref[...]
    half = OUT // 2
    # first half of FC channels from the t=lengths-1 feature, second half from t=0 feature
    out_ref[...] = jnp.concatenate([fc[:N, 0:half], fc[N:, half:]], axis=1)


def _full_spec(a):
    return pl.BlockSpec(a.shape, lambda: (0,) * a.ndim)


def basic_lstm_fused_call(lengths2d, x_flat, wih0, whh0, b0, wih1, whh1, b1, fcw, fcb):
    Np = lengths2d.shape[0]
    LN = x_flat.shape[0]
    L = LN // Np
    H = whh0.shape[0] // 2
    args = (lengths2d, x_flat, wih0, whh0, b0, wih1, whh1, b1, fcw, fcb)
    return pl.pallas_call(
        functools.partial(_fused_kernel, L, Np, H, OUTPUT_DIM),
        out_shape=jax.ShapeDtypeStruct((Np, OUTPUT_DIM), jnp.float32),
        in_specs=[_full_spec(a) for a in args],
        out_specs=pl.BlockSpec((Np, OUTPUT_DIM), lambda: (0, 0)),
    )(*args)


# --------------------------------------------------------------------------------------
# Parameter construction (deterministic, PyTorch-style uniform(-k, k), k = 1/sqrt(H)).
# --------------------------------------------------------------------------------------
def init_params(key):
    params = {"lstm": {}}
    k = 1.0 / jnp.sqrt(jnp.float32(RNN_SIZE))
    dirs = 2 if BIDIRECTIONAL else 1
    for layer in range(NUM_LAYERS):
        d_in = INPUT_DIM if layer == 0 else RNN_SIZE * dirs
        for d in range(dirs):
            key, k1, k2, k3, k4 = jax.random.split(key, 5)
            w_ih = jax.random.uniform(k1, (d_in, 4 * RNN_SIZE), jnp.float32, -k, k)
            w_hh = jax.random.uniform(k2, (RNN_SIZE, 4 * RNN_SIZE), jnp.float32, -k, k)
            b_ih = jax.random.uniform(k3, (4 * RNN_SIZE,), jnp.float32, -k, k)
            b_hh = jax.random.uniform(k4, (4 * RNN_SIZE,), jnp.float32, -k, k)
            params["lstm"][(layer, d)] = (w_ih, w_hh, (b_ih + b_hh).reshape(1, -1))
    feat = RNN_SIZE * dirs
    kf = 1.0 / jnp.sqrt(jnp.float32(feat))
    key, k1, k2 = jax.random.split(key, 3)
    fc_w = jax.random.uniform(k1, (feat, OUTPUT_DIM), jnp.float32, -kf, kf)
    fc_b = jax.random.uniform(k2, (1, OUTPUT_DIM), jnp.float32, -kf, kf)
    params["fc"] = (fc_w, fc_b)
    return params


def _ifgo_to_ifog(w, H):
    """Reorder last-dim gate blocks from PyTorch [i,f,g,o] to packed [i,f,o,g]."""
    return jnp.concatenate([w[..., 0:2 * H], w[..., 3 * H:4 * H], w[..., 2 * H:3 * H]], axis=-1)


def pack_params(params):
    """Pack per-direction weights into the fused kernel layouts.  Called ONCE at init."""
    H = RNN_SIZE
    packed = []
    for layer in range(NUM_LAYERS):
        wih_f, whh_f, b_f = params["lstm"][(layer, 0)]
        wih_b, whh_b, b_b = params["lstm"][(layer, 1)]
        wih = jnp.concatenate([_ifgo_to_ifog(wih_f, H), _ifgo_to_ifog(wih_b, H)], axis=1)
        b = jnp.concatenate([_ifgo_to_ifog(b_f, H), _ifgo_to_ifog(b_b, H)], axis=1)  # (1, 8H)
        whh = jnp.zeros((2 * H, 8 * H), jnp.float32)           # block-diagonal (2H, 8H)
        whh = whh.at[0:H, 0:4 * H].set(_ifgo_to_ifog(whh_f, H))
        whh = whh.at[H:2 * H, 4 * H:8 * H].set(_ifgo_to_ifog(whh_b, H))
        packed.extend([wih, whh, b])
    fc_w, fc_b = params["fc"]
    packed.extend([fc_w, fc_b])
    return tuple(jax.device_put(p) for p in packed)


# --------------------------------------------------------------------------------------
# Full forward pass (= BasicLSTM.forward).  `packed` comes from pack_params (done at init).
# --------------------------------------------------------------------------------------
def basic_lstm_forward(packed, x, lengths):
    """x: (N, L, D) float32, lengths: (N,) int32 (1 <= lengths <= L) -> (N, OUTPUT_DIM)."""
    N, L, D = x.shape
    Np = ((N + 7) // 8) * 8                       # pad batch to the 8-sublane tile
    # Tiny (Np, L, D) pad + time-major flatten; the only per-call layout op (<2 KB).
    x_pad = jnp.pad(x.astype(jnp.float32), ((0, Np - N), (0, 0), (0, 0)))
    x_flat = jnp.transpose(x_pad, (1, 0, 2)).reshape(L * Np, D)
    # NOTE: lengths must satisfy 1 <= lengths <= L (checked on concrete values in __main__);
    # the in-kernel select-gather leaves zeros otherwise.
    lengths2d = jnp.pad(lengths.astype(jnp.int32), (0, Np - N),
                        constant_values=1).reshape(Np, 1)
    out = basic_lstm_fused_call(lengths2d, x_flat, *packed)
    return out[:N]


# --------------------------------------------------------------------------------------
# Pure-JAX reference (for a correctness check of the Pallas path).
# --------------------------------------------------------------------------------------
def basic_lstm_ref(params, x, lengths):
    N, L, _ = x.shape
    dirs = 2 if BIDIRECTIONAL else 1
    inp = x.astype(jnp.float32)
    for layer in range(NUM_LAYERS):
        outs = []
        for d in range(dirs):
            w_ih, w_hh, b = params["lstm"][(layer, d)]
            H = w_hh.shape[0]
            h = jnp.zeros((N, H), jnp.float32)
            c = jnp.zeros((N, H), jnp.float32)
            hs = []
            trange = range(L) if d == 0 else range(L - 1, -1, -1)
            for t in trange:
                g = inp[:, t, :] @ w_ih + h @ w_hh + b
                i = jax.nn.sigmoid(g[:, :H])
                f = jax.nn.sigmoid(g[:, H:2 * H])
                gg = jnp.tanh(g[:, 2 * H:3 * H])
                o = jax.nn.sigmoid(g[:, 3 * H:])
                c = f * c + i * gg
                h = o * jnp.tanh(c)
                hs.append(h)
            if d == 1:
                hs = hs[::-1]
            outs.append(jnp.stack(hs, axis=1))
        inp = jnp.concatenate(outs, axis=-1)
    fc_w, fc_b = params["fc"]
    out = inp @ fc_w + fc_b
    ds = OUTPUT_DIM // 2
    fwd, bwd = out[:, :, :ds], out[:, :, ds:]
    last_fwd = fwd[jnp.arange(N), lengths - 1, :]
    last_bwd = bwd[:, 0, :]
    return jnp.concatenate([last_fwd, last_bwd], axis=-1)


if __name__ == "__main__":
    key = jax.random.PRNGKey(0)
    key, kx = jax.random.split(key)
    params = init_params(key)
    packed = pack_params(params)          # one-time packing, hoisted out of the jitted forward

    x = jax.random.normal(kx, (BATCH, SEQ_LEN, INPUT_DIM), jnp.float32)
    lengths = jnp.array([SEQ_LEN, 5, 3, 6], dtype=jnp.int32)

    # Guard the in-kernel select-gather's precondition on concrete values.
    assert int(lengths.min()) >= 1 and int(lengths.max()) <= SEQ_LEN, "need 1 <= lengths <= L"

    fwd = jax.jit(functools.partial(basic_lstm_forward, packed))
    out = fwd(x, lengths)
    out = jax.block_until_ready(out)

    ref = basic_lstm_ref(params, x, lengths)
    assert out.shape == (BATCH, OUTPUT_DIM), out.shape
    assert jnp.allclose(out, ref, rtol=1e-4, atol=1e-4), (out, ref)

    print("KERNEL_OK")
</pallas_src>

<mosaic_0001>
module attributes {stable_mosaic.version = 11 : i64} {
  func.func @_fused_kernel(%arg0: memref<8x1xi32, #tpu.memory_space<vmem>>, %arg1: memref<64x16xf32, #tpu.memory_space<vmem>>, %arg2: memref<16x256xf32, #tpu.memory_space<vmem>>, %arg3: memref<64x256xf32, #tpu.memory_space<vmem>>, %arg4: memref<1x256xf32, #tpu.memory_space<vmem>>, %arg5: memref<64x256xf32, #tpu.memory_space<vmem>>, %arg6: memref<64x256xf32, #tpu.memory_space<vmem>>, %arg7: memref<1x256xf32, #tpu.memory_space<vmem>>, %arg8: memref<64x8xf32, #tpu.memory_space<vmem>>, %arg9: memref<1x8xf32, #tpu.memory_space<vmem>>, %arg10: memref<8x8xf32, #tpu.memory_space<vmem>>) attributes {dimension_semantics = [], scalar_prefetch = 0 : i64, scratch_operands = 0 : i64, tpu.core_type = #tpu.core_type<tc>} {
    %c0 = arith.constant 0 : index
    %c0_0 = arith.constant 0 : index
    %0 = vector.load %arg0[%c0, %c0_0] : memref<8x1xi32, #tpu.memory_space<vmem>>, vector<8x1xi32>
    %c0_1 = arith.constant 0 : index
    %c0_2 = arith.constant 0 : index
    %1 = vector.load %arg1[%c0_1, %c0_2] : memref<64x16xf32, #tpu.memory_space<vmem>>, vector<64x16xf32>
    %c0_3 = arith.constant 0 : index
    %c0_4 = arith.constant 0 : index
    %2 = vector.load %arg2[%c0_3, %c0_4] : memref<16x256xf32, #tpu.memory_space<vmem>>, vector<16x256xf32>
    %cst = arith.constant dense<0.000000e+00> : vector<64x256xf32>
    %3 = tpu.matmul %1, %2, %cst {dimension_numbers = #tpu.dot_dimension_numbers<[1], [0], [0], [1], [0, 0, 1, 1], [], []>} : vector<64x16xf32>, vector<16x256xf32>, vector<64x256xf32> -> vector<64x256xf32>
    %c0_5 = arith.constant 0 : index
    %c0_6 = arith.constant 0 : index
    %4 = vector.load %arg4[%c0_5, %c0_6] : memref<1x256xf32, #tpu.memory_space<vmem>>, vector<1x256xf32>
    %5 = vector.broadcast %4 : vector<1x256xf32> to vector<64x256xf32>
    %6 = arith.addf %3, %5 : vector<64x256xf32>
    %cst_7 = arith.constant 0.000000e+00 : f32
    %7 = vector.broadcast %cst_7 : f32 to vector<8x32xf32>
    %cst_8 = arith.constant 0.000000e+00 : f32
    %8 = vector.broadcast %cst_8 : f32 to vector<8x32xf32>
    %cst_9 = arith.constant 0.000000e+00 : f32
    %9 = vector.broadcast %cst_9 : f32 to vector<8x32xf32>
    %cst_10 = arith.constant 0.000000e+00 : f32
    %10 = vector.broadcast %cst_10 : f32 to vector<8x32xf32>
    %11 = tpu.concatenate %7, %8 in 1 : vector<8x32xf32>, vector<8x32xf32> -> vector<8x64xf32>
    %c0_11 = arith.constant 0 : index
    %c0_12 = arith.constant 0 : index
    %12 = vector.load %arg3[%c0_11, %c0_12] : memref<64x256xf32, #tpu.memory_space<vmem>>, vector<64x256xf32>
    %cst_13 = arith.constant dense<0.000000e+00> : vector<8x256xf32>
    %13 = tpu.matmul %11, %12, %cst_13 {dimension_numbers = #tpu.dot_dimension_numbers<[1], [0], [0], [1], [0, 0, 1, 1], [], []>} : vector<8x64xf32>, vector<64x256xf32>, vector<8x256xf32> -> vector<8x256xf32>
    %14 = vector.extract_strided_slice %6 {offsets = [0, 0], sizes = [8, 128], strides = [1, 1]} : vector<64x256xf32> to vector<8x128xf32>
    %15 = vector.extract_strided_slice %13 {offsets = [0, 0], sizes = [8, 128], strides = [1, 1]} : vector<8x256xf32> to vector<8x128xf32>
    %16 = arith.addf %14, %15 : vector<8x128xf32>
    %17 = vector.extract_strided_slice %6 {offsets = [56, 128], sizes = [8, 128], strides = [1, 1]} : vector<64x256xf32> to vector<8x128xf32>
    %18 = vector.extract_strided_slice %13 {offsets = [0, 128], sizes = [8, 128], strides = [1, 1]} : vector<8x256xf32> to vector<8x128xf32>
    %19 = arith.addf %17, %18 : vector<8x128xf32>
    %20 = vector.extract_strided_slice %16 {offsets = [0, 0], sizes = [8, 96], strides = [1, 1]} : vector<8x128xf32> to vector<8x96xf32>
    %21 = arith.negf %20 : vector<8x96xf32>
    %22 = math.exp %21 : vector<8x96xf32>
    %cst_14 = arith.constant 1.000000e+00 : f32
    %23 = vector.broadcast %cst_14 : f32 to vector<8x96xf32>
    %24 = arith.addf %23, %22 : vector<8x96xf32>
    %25 = arith.divf %23, %24 : vector<8x96xf32>
    %26 = vector.extract_strided_slice %16 {offsets = [0, 96], sizes = [8, 32], strides = [1, 1]} : vector<8x128xf32> to vector<8x32xf32>
    %27 = math.tanh %26 : vector<8x32xf32>
    %28 = vector.extract_strided_slice %25 {offsets = [0, 0], sizes = [8, 32], strides = [1, 1]} : vector<8x96xf32> to vector<8x32xf32>
    %29 = vector.extract_strided_slice %25 {offsets = [0, 32], sizes = [8, 32], strides = [1, 1]} : vector<8x96xf32> to vector<8x32xf32>
    %30 = vector.extract_strided_slice %25 {offsets = [0, 64], sizes = [8, 32], strides = [1, 1]} : vector<8x96xf32> to vector<8x32xf32>
    %31 = arith.mulf %29, %9 : vector<8x32xf32>
    %32 = arith.mulf %28, %27 : vector<8x32xf32>
    %33 = arith.addf %31, %32 : vector<8x32xf32>
    %34 = math.tanh %33 : vector<8x32xf32>
    %35 = arith.mulf %30, %34 : vector<8x32xf32>
    %36 = vector.extract_strided_slice %19 {offsets = [0, 0], sizes = [8, 96], strides = [1, 1]} : vector<8x128xf32> to vector<8x96xf32>
    %37 = arith.negf %36 : vector<8x96xf32>
    %38 = math.exp %37 : vector<8x96xf32>
    %cst_15 = arith.constant 1.000000e+00 : f32
    %39 = vector.broadcast %cst_15 : f32 to vector<8x96xf32>
    %40 = arith.addf %39, %38 : vector<8x96xf32>
    %41 = arith.divf %39, %40 : vector<8x96xf32>
    %42 = vector.extract_strided_slice %19 {offsets = [0, 96], sizes = [8, 32], strides = [1, 1]} : vector<8x128xf32> to vector<8x32xf32>
    %43 = math.tanh %42 : vector<8x32xf32>
    %44 = vector.extract_strided_slice %41 {offsets = [0, 0], sizes = [8, 32], strides = [1, 1]} : vector<8x96xf32> to vector<8x32xf32>
    %45 = vector.extract_strided_slice %41 {offsets = [0, 32], sizes = [8, 32], strides = [1, 1]} : vector<8x96xf32> to vector<8x32xf32>
    %46 = vector.extract_strided_slice %41 {offsets = [0, 64], sizes = [8, 32], strides = [1, 1]} : vector<8x96xf32> to vector<8x32xf32>
    %47 = arith.mulf %45, %10 : vector<8x32xf32>
    %48 = arith.mulf %44, %43 : vector<8x32xf32>
    %49 = arith.addf %47, %48 : vector<8x32xf32>
    %50 = math.tanh %49 : vector<8x32xf32>
    %51 = arith.mulf %46, %50 : vector<8x32xf32>
    %52 = tpu.concatenate %35, %51 in 1 : vector<8x32xf32>, vector<8x32xf32> -> vector<8x64xf32>
    %c0_16 = arith.constant 0 : index
    %c0_17 = arith.constant 0 : index
    %53 = vector.load %arg3[%c0_16, %c0_17] : memref<64x256xf32, #tpu.memory_space<vmem>>, vector<64x256xf32>
    %cst_18 = arith.constant dense<0.000000e+00> : vector<8x256xf32>
    %54 = tpu.matmul %52, %53, %cst_18 {dimension_numbers = #tpu.dot_dimension_numbers<[1], [0], [0], [1], [0, 0, 1, 1], [], []>} : vector<8x64xf32>, vector<64x256xf32>, vector<8x256xf32> -> vector<8x256xf32>
    %55 = vector.extract_strided_slice %6 {offsets = [8, 0], sizes = [8, 128], strides = [1, 1]} : vector<64x256xf32> to vector<8x128xf32>
    %56 = vector.extract_strided_slice %54 {offsets = [0, 0], sizes = [8, 128], strides = [1, 1]} : vector<8x256xf32> to vector<8x128xf32>
    %57 = arith.addf %55, %56 : vector<8x128xf32>
    %58 = vector.extract_strided_slice %6 {offsets = [48, 128], sizes = [8, 128], strides = [1, 1]} : vector<64x256xf32> to vector<8x128xf32>
    %59 = vector.extract_strided_slice %54 {offsets = [0, 128], sizes = [8, 128], strides = [1, 1]} : vector<8x256xf32> to vector<8x128xf32>
    %60 = arith.addf %58, %59 : vector<8x128xf32>
    %61 = vector.extract_strided_slice %57 {offsets = [0, 0], sizes = [8, 96], strides = [1, 1]} : vector<8x128xf32> to vector<8x96xf32>
    %62 = arith.negf %61 : vector<8x96xf32>
    %63 = math.exp %62 : vector<8x96xf32>
    %cst_19 = arith.constant 1.000000e+00 : f32
    %64 = vector.broadcast %cst_19 : f32 to vector<8x96xf32>
    %65 = arith.addf %64, %63 : vector<8x96xf32>
    %66 = arith.divf %64, %65 : vector<8x96xf32>
    %67 = vector.extract_strided_slice %57 {offsets = [0, 96], sizes = [8, 32], strides = [1, 1]} : vector<8x128xf32> to vector<8x32xf32>
    %68 = math.tanh %67 : vector<8x32xf32>
    %69 = vector.extract_strided_slice %66 {offsets = [0, 0], sizes = [8, 32], strides = [1, 1]} : vector<8x96xf32> to vector<8x32xf32>
    %70 = vector.extract_strided_slice %66 {offsets = [0, 32], sizes = [8, 32], strides = [1, 1]} : vector<8x96xf32> to vector<8x32xf32>
    %71 = vector.extract_strided_slice %66 {offsets = [0, 64], sizes = [8, 32], strides = [1, 1]} : vector<8x96xf32> to vector<8x32xf32>
    %72 = arith.mulf %70, %33 : vector<8x32xf32>
    %73 = arith.mulf %69, %68 : vector<8x32xf32>
    %74 = arith.addf %72, %73 : vector<8x32xf32>
    %75 = math.tanh %74 : vector<8x32xf32>
    %76 = arith.mulf %71, %75 : vector<8x32xf32>
    %77 = vector.extract_strided_slice %60 {offsets = [0, 0], sizes = [8, 96], strides = [1, 1]} : vector<8x128xf32> to vector<8x96xf32>
    %78 = arith.negf %77 : vector<8x96xf32>
    %79 = math.exp %78 : vector<8x96xf32>
    %cst_20 = arith.constant 1.000000e+00 : f32
    %80 = vector.broadcast %cst_20 : f32 to vector<8x96xf32>
    %81 = arith.addf %80, %79 : vector<8x96xf32>
    %82 = arith.divf %80, %81 : vector<8x96xf32>
    %83 = vector.extract_strided_slice %60 {offsets = [0, 96], sizes = [8, 32], strides = [1, 1]} : vector<8x128xf32> to vector<8x32xf32>
    %84 = math.tanh %83 : vector<8x32xf32>
    %85 = vector.extract_strided_slice %82 {offsets = [0, 0], sizes = [8, 32], strides = [1, 1]} : vector<8x96xf32> to vector<8x32xf32>
    %86 = vector.extract_strided_slice %82 {offsets = [0, 32], sizes = [8, 32], strides = [1, 1]} : vector<8x96xf32> to vector<8x32xf32>
    %87 = vector.extract_strided_slice %82 {offsets = [0, 64], sizes = [8, 32], strides = [1, 1]} : vector<8x96xf32> to vector<8x32xf32>
    %88 = arith.mulf %86, %49 : vector<8x32xf32>
    %89 = arith.mulf %85, %84 : vector<8x32xf32>
    %90 = arith.addf %88, %89 : vector<8x32xf32>
    %91 = math.tanh %90 : vector<8x32xf32>
    %92 = arith.mulf %87, %91 : vector<8x32xf32>
    %93 = tpu.concatenate %76, %92 in 1 : vector<8x32xf32>, vector<8x32xf32> -> vector<8x64xf32>
    %c0_21 = arith.constant 0 : index
    %c0_22 = arith.constant 0 : index
    %94 = vector.load %arg3[%c0_21, %c0_22] : memref<64x256xf32, #tpu.memory_space<vmem>>, vector<64x256xf32>
    %cst_23 = arith.constant dense<0.000000e+00> : vector<8x256xf32>
    %95 = tpu.matmul %93, %94, %cst_23 {dimension_numbers = #tpu.dot_dimension_numbers<[1], [0], [0], [1], [0, 0, 1, 1], [], []>} : vector<8x64xf32>, vector<64x256xf32>, vector<8x256xf32> -> vector<8x256xf32>
    %96 = vector.extract_strided_slice %6 {offsets = [16, 0], sizes = [8, 128], strides = [1, 1]} : vector<64x256xf32> to vector<8x128xf32>
    %97 = vector.extract_strided_slice %95 {offsets = [0, 0], sizes = [8, 128], strides = [1, 1]} : vector<8x256xf32> to vector<8x128xf32>
    %98 = arith.addf %96, %97 : vector<8x128xf32>
    %99 = vector.extract_strided_slice %6 {offsets = [40, 128], sizes = [8, 128], strides = [1, 1]} : vector<64x256xf32> to vector<8x128xf32>
    %100 = vector.extract_strided_slice %95 {offsets = [0, 128], sizes = [8, 128], strides = [1, 1]} : vector<8x256xf32> to vector<8x128xf32>
    %101 = arith.addf %99, %100 : vector<8x128xf32>
    %102 = vector.extract_strided_slice %98 {offsets = [0, 0], sizes = [8, 96], strides = [1, 1]} : vector<8x128xf32> to vector<8x96xf32>
    %103 = arith.negf %102 : vector<8x96xf32>
    %104 = math.exp %103 : vector<8x96xf32>
    %cst_24 = arith.constant 1.000000e+00 : f32
    %105 = vector.broadcast %cst_24 : f32 to vector<8x96xf32>
    %106 = arith.addf %105, %104 : vector<8x96xf32>
    %107 = arith.divf %105, %106 : vector<8x96xf32>
    %108 = vector.extract_strided_slice %98 {offsets = [0, 96], sizes = [8, 32], strides = [1, 1]} : vector<8x128xf32> to vector<8x32xf32>
    %109 = math.tanh %108 : vector<8x32xf32>
    %110 = vector.extract_strided_slice %107 {offsets = [0, 0], sizes = [8, 32], strides = [1, 1]} : vector<8x96xf32> to vector<8x32xf32>
    %111 = vector.extract_strided_slice %107 {offsets = [0, 32], sizes = [8, 32], strides = [1, 1]} : vector<8x96xf32> to vector<8x32xf32>
    %112 = vector.extract_strided_slice %107 {offsets = [0, 64], sizes = [8, 32], strides = [1, 1]} : vector<8x96xf32> to vector<8x32xf32>
    %113 = arith.mulf %111, %74 : vector<8x32xf32>
    %114 = arith.mulf %110, %109 : vector<8x32xf32>
    %115 = arith.addf %113, %114 : vector<8x32xf32>
    %116 = math.tanh %115 : vector<8x32xf32>
    %117 = arith.mulf %112, %116 : vector<8x32xf32>
    %118 = vector.extract_strided_slice %101 {offsets = [0, 0], sizes = [8, 96], strides = [1, 1]} : vector<8x128xf32> to vector<8x96xf32>
    %119 = arith.negf %118 : vector<8x96xf32>
    %120 = math.exp %119 : vector<8x96xf32>
    %cst_25 = arith.constant 1.000000e+00 : f32
    %121 = vector.broadcast %cst_25 : f32 to vector<8x96xf32>
    %122 = arith.addf %121, %120 : vector<8x96xf32>
    %123 = arith.divf %121, %122 : vector<8x96xf32>
    %124 = vector.extract_strided_slice %101 {offsets = [0, 96], sizes = [8, 32], strides = [1, 1]} : vector<8x128xf32> to vector<8x32xf32>
    %125 = math.tanh %124 : vector<8x32xf32>
    %126 = vector.extract_strided_slice %123 {offsets = [0, 0], sizes = [8, 32], strides = [1, 1]} : vector<8x96xf32> to vector<8x32xf32>
    %127 = vector.extract_strided_slice %123 {offsets = [0, 32], sizes = [8, 32], strides = [1, 1]} : vector<8x96xf32> to vector<8x32xf32>
    %128 = vector.extract_strided_slice %123 {offsets = [0, 64], sizes = [8, 32], strides = [1, 1]} : vector<8x96xf32> to vector<8x32xf32>
    %129 = arith.mulf %127, %90 : vector<8x32xf32>
    %130 = arith.mulf %126, %125 : vector<8x32xf32>
    %131 = arith.addf %129, %130 : vector<8x32xf32>
    %132 = math.tanh %131 : vector<8x32xf32>
    %133 = arith.mulf %128, %132 : vector<8x32xf32>
    %134 = tpu.concatenate %117, %133 in 1 : vector<8x32xf32>, vector<8x32xf32> -> vector<8x64xf32>
    %c0_26 = arith.constant 0 : index
    %c0_27 = arith.constant 0 : index
    %135 = vector.load %arg3[%c0_26, %c0_27] : memref<64x256xf32, #tpu.memory_space<vmem>>, vector<64x256xf32>
    %cst_28 = arith.constant dense<0.000000e+00> : vector<8x256xf32>
    %136 = tpu.matmul %134, %135, %cst_28 {dimension_numbers = #tpu.dot_dimension_numbers<[1], [0], [0], [1], [0, 0, 1, 1], [], []>} : vector<8x64xf32>, vector<64x256xf32>, vector<8x256xf32> -> vector<8x256xf32>
    %137 = vector.extract_strided_slice %6 {offsets = [24, 0], sizes = [8, 128], strides = [1, 1]} : vector<64x256xf32> to vector<8x128xf32>
    %138 = vector.extract_strided_slice %136 {offsets = [0, 0], sizes = [8, 128], strides = [1, 1]} : vector<8x256xf32> to vector<8x128xf32>
    %139 = arith.addf %137, %138 : vector<8x128xf32>
    %140 = vector.extract_strided_slice %6 {offsets = [32, 128], sizes = [8, 128], strides = [1, 1]} : vector<64x256xf32> to vector<8x128xf32>
    %141 = vector.extract_strided_slice %136 {offsets = [0, 128], sizes = [8, 128], strides = [1, 1]} : vector<8x256xf32> to vector<8x128xf32>
    %142 = arith.addf %140, %141 : vector<8x128xf32>
    %143 = vector.extract_strided_slice %139 {offsets = [0, 0], sizes = [8, 96], strides = [1, 1]} : vector<8x128xf32> to vector<8x96xf32>
    %144 = arith.negf %143 : vector<8x96xf32>
    %145 = math.exp %144 : vector<8x96xf32>
    %cst_29 = arith.constant 1.000000e+00 : f32
    %146 = vector.broadcast %cst_29 : f32 to vector<8x96xf32>
    %147 = arith.addf %146, %145 : vector<8x96xf32>
    %148 = arith.divf %146, %147 : vector<8x96xf32>
    %149 = vector.extract_strided_slice %139 {offsets = [0, 96], sizes = [8, 32], strides = [1, 1]} : vector<8x128xf32> to vector<8x32xf32>
    %150 = math.tanh %149 : vector<8x32xf32>
    %151 = vector.extract_strided_slice %148 {offsets = [0, 0], sizes = [8, 32], strides = [1, 1]} : vector<8x96xf32> to vector<8x32xf32>
    %152 = vector.extract_strided_slice %148 {offsets = [0, 32], sizes = [8, 32], strides = [1, 1]} : vector<8x96xf32> to vector<8x32xf32>
    %153 = vector.extract_strided_slice %148 {offsets = [0, 64], sizes = [8, 32], strides = [1, 1]} : vector<8x96xf32> to vector<8x32xf32>
    %154 = arith.mulf %152, %115 : vector<8x32xf32>
    %155 = arith.mulf %151, %150 : vector<8x32xf32>
    %156 = arith.addf %154, %155 : vector<8x32xf32>
    %157 = math.tanh %156 : vector<8x32xf32>
    %158 = arith.mulf %153, %157 : vector<8x32xf32>
    %159 = vector.extract_strided_slice %142 {offsets = [0, 0], sizes = [8, 96], strides = [1, 1]} : vector<8x128xf32> to vector<8x96xf32>
    %160 = arith.negf %159 : vector<8x96xf32>
    %161 = math.exp %160 : vector<8x96xf32>
    %cst_30 = arith.constant 1.000000e+00 : f32
    %162 = vector.broadcast %cst_30 : f32 to vector<8x96xf32>
    %163 = arith.addf %162, %161 : vector<8x96xf32>
    %164 = arith.divf %162, %163 : vector<8x96xf32>
    %165 = vector.extract_strided_slice %142 {offsets = [0, 96], sizes = [8, 32], strides = [1, 1]} : vector<8x128xf32> to vector<8x32xf32>
    %166 = math.tanh %165 : vector<8x32xf32>
    %167 = vector.extract_strided_slice %164 {offsets = [0, 0], sizes = [8, 32], strides = [1, 1]} : vector<8x96xf32> to vector<8x32xf32>
    %168 = vector.extract_strided_slice %164 {offsets = [0, 32], sizes = [8, 32], strides = [1, 1]} : vector<8x96xf32> to vector<8x32xf32>
    %169 = vector.extract_strided_slice %164 {offsets = [0, 64], sizes = [8, 32], strides = [1, 1]} : vector<8x96xf32> to vector<8x32xf32>
    %170 = arith.mulf %168, %131 : vector<8x32xf32>
    %171 = arith.mulf %167, %166 : vector<8x32xf32>
    %172 = arith.addf %170, %171 : vector<8x32xf32>
    %173 = math.tanh %172 : vector<8x32xf32>
    %174 = arith.mulf %169, %173 : vector<8x32xf32>
    %175 = tpu.concatenate %158, %174 in 1 : vector<8x32xf32>, vector<8x32xf32> -> vector<8x64xf32>
    %c0_31 = arith.constant 0 : index
    %c0_32 = arith.constant 0 : index
    %176 = vector.load %arg3[%c0_31, %c0_32] : memref<64x256xf32, #tpu.memory_space<vmem>>, vector<64x256xf32>
    %cst_33 = arith.constant dense<0.000000e+00> : vector<8x256xf32>
    %177 = tpu.matmul %175, %176, %cst_33 {dimension_numbers = #tpu.dot_dimension_numbers<[1], [0], [0], [1], [0, 0, 1, 1], [], []>} : vector<8x64xf32>, vector<64x256xf32>, vector<8x256xf32> -> vector<8x256xf32>
    %178 = vector.extract_strided_slice %6 {offsets = [32, 0], sizes = [8, 128], strides = [1, 1]} : vector<64x256xf32> to vector<8x128xf32>
    %179 = vector.extract_strided_slice %177 {offsets = [0, 0], sizes = [8, 128], strides = [1, 1]} : vector<8x256xf32> to vector<8x128xf32>
    %180 = arith.addf %178, %179 : vector<8x128xf32>
    %181 = vector.extract_strided_slice %6 {offsets = [24, 128], sizes = [8, 128], strides = [1, 1]} : vector<64x256xf32> to vector<8x128xf32>
    %182 = vector.extract_strided_slice %177 {offsets = [0, 128], sizes = [8, 128], strides = [1, 1]} : vector<8x256xf32> to vector<8x128xf32>
    %183 = arith.addf %181, %182 : vector<8x128xf32>
    %184 = vector.extract_strided_slice %180 {offsets = [0, 0], sizes = [8, 96], strides = [1, 1]} : vector<8x128xf32> to vector<8x96xf32>
    %185 = arith.negf %184 : vector<8x96xf32>
    %186 = math.exp %185 : vector<8x96xf32>
    %cst_34 = arith.constant 1.000000e+00 : f32
    %187 = vector.broadcast %cst_34 : f32 to vector<8x96xf32>
    %188 = arith.addf %187, %186 : vector<8x96xf32>
    %189 = arith.divf %187, %188 : vector<8x96xf32>
    %190 = vector.extract_strided_slice %180 {offsets = [0, 96], sizes = [8, 32], strides = [1, 1]} : vector<8x128xf32> to vector<8x32xf32>
    %191 = math.tanh %190 : vector<8x32xf32>
    %192 = vector.extract_strided_slice %189 {offsets = [0, 0], sizes = [8, 32], strides = [1, 1]} : vector<8x96xf32> to vector<8x32xf32>
    %193 = vector.extract_strided_slice %189 {offsets = [0, 32], sizes = [8, 32], strides = [1, 1]} : vector<8x96xf32> to vector<8x32xf32>
    %194 = vector.extract_strided_slice %189 {offsets = [0, 64], sizes = [8, 32], strides = [1, 1]} : vector<8x96xf32> to vector<8x32xf32>
    %195 = arith.mulf %193, %156 : vector<8x32xf32>
    %196 = arith.mulf %192, %191 : vector<8x32xf32>
    %197 = arith.addf %195, %196 : vector<8x32xf32>
    %198 = math.tanh %197 : vector<8x32xf32>
    %199 = arith.mulf %194, %198 : vector<8x32xf32>
    %200 = vector.extract_strided_slice %183 {offsets = [0, 0], sizes = [8, 96], strides = [1, 1]} : vector<8x128xf32> to vector<8x96xf32>
    %201 = arith.negf %200 : vector<8x96xf32>
    %202 = math.exp %201 : vector<8x96xf32>
    %cst_35 = arith.constant 1.000000e+00 : f32
    %203 = vector.broadcast %cst_35 : f32 to vector<8x96xf32>
    %204 = arith.addf %203, %202 : vector<8x96xf32>
    %205 = arith.divf %203, %204 : vector<8x96xf32>
    %206 = vector.extract_strided_slice %183 {offsets = [0, 96], sizes = [8, 32], strides = [1, 1]} : vector<8x128xf32> to vector<8x32xf32>
    %207 = math.tanh %206 : vector<8x32xf32>
    %208 = vector.extract_strided_slice %205 {offsets = [0, 0], sizes = [8, 32], strides = [1, 1]} : vector<8x96xf32> to vector<8x32xf32>
    %209 = vector.extract_strided_slice %205 {offsets = [0, 32], sizes = [8, 32], strides = [1, 1]} : vector<8x96xf32> to vector<8x32xf32>
    %210 = vector.extract_strided_slice %205 {offsets = [0, 64], sizes = [8, 32], strides = [1, 1]} : vector<8x96xf32> to vector<8x32xf32>
    %211 = arith.mulf %209, %172 : vector<8x32xf32>
    %212 = arith.mulf %208, %207 : vector<8x32xf32>
    %213 = arith.addf %211, %212 : vector<8x32xf32>
    %214 = math.tanh %213 : vector<8x32xf32>
    %215 = arith.mulf %210, %214 : vector<8x32xf32>
    %216 = tpu.concatenate %199, %215 in 1 : vector<8x32xf32>, vector<8x32xf32> -> vector<8x64xf32>
    %c0_36 = arith.constant 0 : index
    %c0_37 = arith.constant 0 : index
    %217 = vector.load %arg3[%c0_36, %c0_37] : memref<64x256xf32, #tpu.memory_space<vmem>>, vector<64x256xf32>
    %cst_38 = arith.constant dense<0.000000e+00> : vector<8x256xf32>
    %218 = tpu.matmul %216, %217, %cst_38 {dimension_numbers = #tpu.dot_dimension_numbers<[1], [0], [0], [1], [0, 0, 1, 1], [], []>} : vector<8x64xf32>, vector<64x256xf32>, vector<8x256xf32> -> vector<8x256xf32>
    %219 = vector.extract_strided_slice %6 {offsets = [40, 0], sizes = [8, 128], strides = [1, 1]} : vector<64x256xf32> to vector<8x128xf32>
    %220 = vector.extract_strided_slice %218 {offsets = [0, 0], sizes = [8, 128], strides = [1, 1]} : vector<8x256xf32> to vector<8x128xf32>
    %221 = arith.addf %219, %220 : vector<8x128xf32>
    %222 = vector.extract_strided_slice %6 {offsets = [16, 128], sizes = [8, 128], strides = [1, 1]} : vector<64x256xf32> to vector<8x128xf32>
    %223 = vector.extract_strided_slice %218 {offsets = [0, 128], sizes = [8, 128], strides = [1, 1]} : vector<8x256xf32> to vector<8x128xf32>
    %224 = arith.addf %222, %223 : vector<8x128xf32>
    %225 = vector.extract_strided_slice %221 {offsets = [0, 0], sizes = [8, 96], strides = [1, 1]} : vector<8x128xf32> to vector<8x96xf32>
    %226 = arith.negf %225 : vector<8x96xf32>
    %227 = math.exp %226 : vector<8x96xf32>
    %cst_39 = arith.constant 1.000000e+00 : f32
    %228 = vector.broadcast %cst_39 : f32 to vector<8x96xf32>
    %229 = arith.addf %228, %227 : vector<8x96xf32>
    %230 = arith.divf %228, %229 : vector<8x96xf32>
    %231 = vector.extract_strided_slice %221 {offsets = [0, 96], sizes = [8, 32], strides = [1, 1]} : vector<8x128xf32> to vector<8x32xf32>
    %232 = math.tanh %231 : vector<8x32xf32>
    %233 = vector.extract_strided_slice %230 {offsets = [0, 0], sizes = [8, 32], strides = [1, 1]} : vector<8x96xf32> to vector<8x32xf32>
    %234 = vector.extract_strided_slice %230 {offsets = [0, 32], sizes = [8, 32], strides = [1, 1]} : vector<8x96xf32> to vector<8x32xf32>
    %235 = vector.extract_strided_slice %230 {offsets = [0, 64], sizes = [8, 32], strides = [1, 1]} : vector<8x96xf32> to vector<8x32xf32>
    %236 = arith.mulf %234, %197 : vector<8x32xf32>
    %237 = arith.mulf %233, %232 : vector<8x32xf32>
    %238 = arith.addf %236, %237 : vector<8x32xf32>
    %239 = math.tanh %238 : vector<8x32xf32>
    %240 = arith.mulf %235, %239 : vector<8x32xf32>
    %241 = vector.extract_strided_slice %224 {offsets = [0, 0], sizes = [8, 96], strides = [1, 1]} : vector<8x128xf32> to vector<8x96xf32>
    %242 = arith.negf %241 : vector<8x96xf32>
    %243 = math.exp %242 : vector<8x96xf32>
    %cst_40 = arith.constant 1.000000e+00 : f32
    %244 = vector.broadcast %cst_40 : f32 to vector<8x96xf32>
    %245 = arith.addf %244, %243 : vector<8x96xf32>
    %246 = arith.divf %244, %245 : vector<8x96xf32>
    %247 = vector.extract_strided_slice %224 {offsets = [0, 96], sizes = [8, 32], strides = [1, 1]} : vector<8x128xf32> to vector<8x32xf32>
    %248 = math.tanh %247 : vector<8x32xf32>
    %249 = vector.extract_strided_slice %246 {offsets = [0, 0], sizes = [8, 32], strides = [1, 1]} : vector<8x96xf32> to vector<8x32xf32>
    %250 = vector.extract_strided_slice %246 {offsets = [0, 32], sizes = [8, 32], strides = [1, 1]} : vector<8x96xf32> to vector<8x32xf32>
    %251 = vector.extract_strided_slice %246 {offsets = [0, 64], sizes = [8, 32], strides = [1, 1]} : vector<8x96xf32> to vector<8x32xf32>
    %252 = arith.mulf %250, %213 : vector<8x32xf32>
    %253 = arith.mulf %249, %248 : vector<8x32xf32>
    %254 = arith.addf %252, %253 : vector<8x32xf32>
    %255 = math.tanh %254 : vector<8x32xf32>
    %256 = arith.mulf %251, %255 : vector<8x32xf32>
    %257 = tpu.concatenate %240, %256 in 1 : vector<8x32xf32>, vector<8x32xf32> -> vector<8x64xf32>
    %c0_41 = arith.constant 0 : index
    %c0_42 = arith.constant 0 : index
    %258 = vector.load %arg3[%c0_41, %c0_42] : memref<64x256xf32, #tpu.memory_space<vmem>>, vector<64x256xf32>
    %cst_43 = arith.constant dense<0.000000e+00> : vector<8x256xf32>
    %259 = tpu.matmul %257, %258, %cst_43 {dimension_numbers = #tpu.dot_dimension_numbers<[1], [0], [0], [1], [0, 0, 1, 1], [], []>} : vector<8x64xf32>, vector<64x256xf32>, vector<8x256xf32> -> vector<8x256xf32>
    %260 = vector.extract_strided_slice %6 {offsets = [48, 0], sizes = [8, 128], strides = [1, 1]} : vector<64x256xf32> to vector<8x128xf32>
    %261 = vector.extract_strided_slice %259 {offsets = [0, 0], sizes = [8, 128], strides = [1, 1]} : vector<8x256xf32> to vector<8x128xf32>
    %262 = arith.addf %260, %261 : vector<8x128xf32>
    %263 = vector.extract_strided_slice %6 {offsets = [8, 128], sizes = [8, 128], strides = [1, 1]} : vector<64x256xf32> to vector<8x128xf32>
    %264 = vector.extract_strided_slice %259 {offsets = [0, 128], sizes = [8, 128], strides = [1, 1]} : vector<8x256xf32> to vector<8x128xf32>
    %265 = arith.addf %263, %264 : vector<8x128xf32>
    %266 = vector.extract_strided_slice %262 {offsets = [0, 0], sizes = [8, 96], strides = [1, 1]} : vector<8x128xf32> to vector<8x96xf32>
    %267 = arith.negf %266 : vector<8x96xf32>
    %268 = math.exp %267 : vector<8x96xf32>
    %cst_44 = arith.constant 1.000000e+00 : f32
    %269 = vector.broadcast %cst_44 : f32 to vector<8x96xf32>
    %270 = arith.addf %269, %268 : vector<8x96xf32>
    %271 = arith.divf %269, %270 : vector<8x96xf32>
    %272 = vector.extract_strided_slice %262 {offsets = [0, 96], sizes = [8, 32], strides = [1, 1]} : vector<8x128xf32> to vector<8x32xf32>
    %273 = math.tanh %272 : vector<8x32xf32>
    %274 = vector.extract_strided_slice %271 {offsets = [0, 0], sizes = [8, 32], strides = [1, 1]} : vector<8x96xf32> to vector<8x32xf32>
    %275 = vector.extract_strided_slice %271 {offsets = [0, 32], sizes = [8, 32], strides = [1, 1]} : vector<8x96xf32> to vector<8x32xf32>
    %276 = vector.extract_strided_slice %271 {offsets = [0, 64], sizes = [8, 32], strides = [1, 1]} : vector<8x96xf32> to vector<8x32xf32>
    %277 = arith.mulf %275, %238 : vector<8x32xf32>
    %278 = arith.mulf %274, %273 : vector<8x32xf32>
    %279 = arith.addf %277, %278 : vector<8x32xf32>
    %280 = math.tanh %279 : vector<8x32xf32>
    %281 = arith.mulf %276, %280 : vector<8x32xf32>
    %282 = vector.extract_strided_slice %265 {offsets = [0, 0], sizes = [8, 96], strides = [1, 1]} : vector<8x128xf32> to vector<8x96xf32>
    %283 = arith.negf %282 : vector<8x96xf32>
    %284 = math.exp %283 : vector<8x96xf32>
    %cst_45 = arith.constant 1.000000e+00 : f32
    %285 = vector.broadcast %cst_45 : f32 to vector<8x96xf32>
    %286 = arith.addf %285, %284 : vector<8x96xf32>
    %287 = arith.divf %285, %286 : vector<8x96xf32>
    %288 = vector.extract_strided_slice %265 {offsets = [0, 96], sizes = [8, 32], strides = [1, 1]} : vector<8x128xf32> to vector<8x32xf32>
    %289 = math.tanh %288 : vector<8x32xf32>
    %290 = vector.extract_strided_slice %287 {offsets = [0, 0], sizes = [8, 32], strides = [1, 1]} : vector<8x96xf32> to vector<8x32xf32>
    %291 = vector.extract_strided_slice %287 {offsets = [0, 32], sizes = [8, 32], strides = [1, 1]} : vector<8x96xf32> to vector<8x32xf32>
    %292 = vector.extract_strided_slice %287 {offsets = [0, 64], sizes = [8, 32], strides = [1, 1]} : vector<8x96xf32> to vector<8x32xf32>
    %293 = arith.mulf %291, %254 : vector<8x32xf32>
    %294 = arith.mulf %290, %289 : vector<8x32xf32>
    %295 = arith.addf %293, %294 : vector<8x32xf32>
    %296 = math.tanh %295 : vector<8x32xf32>
    %297 = arith.mulf %292, %296 : vector<8x32xf32>
    %298 = tpu.concatenate %281, %297 in 1 : vector<8x32xf32>, vector<8x32xf32> -> vector<8x64xf32>
    %c0_46 = arith.constant 0 : index
    %c0_47 = arith.constant 0 : index
    %299 = vector.load %arg3[%c0_46, %c0_47] : memref<64x256xf32, #tpu.memory_space<vmem>>, vector<64x256xf32>
    %cst_48 = arith.constant dense<0.000000e+00> : vector<8x256xf32>
    %300 = tpu.matmul %298, %299, %cst_48 {dimension_numbers = #tpu.dot_dimension_numbers<[1], [0], [0], [1], [0, 0, 1, 1], [], []>} : vector<8x64xf32>, vector<64x256xf32>, vector<8x256xf32> -> vector<8x256xf32>
    %301 = vector.extract_strided_slice %6 {offsets = [56, 0], sizes = [8, 128], strides = [1, 1]} : vector<64x256xf32> to vector<8x128xf32>
    %302 = vector.extract_strided_slice %300 {offsets = [0, 0], sizes = [8, 128], strides = [1, 1]} : vector<8x256xf32> to vector<8x128xf32>
    %303 = arith.addf %301, %302 : vector<8x128xf32>
    %304 = vector.extract_strided_slice %6 {offsets = [0, 128], sizes = [8, 128], strides = [1, 1]} : vector<64x256xf32> to vector<8x128xf32>
    %305 = vector.extract_strided_slice %300 {offsets = [0, 128], sizes = [8, 128], strides = [1, 1]} : vector<8x256xf32> to vector<8x128xf32>
    %306 = arith.addf %304, %305 : vector<8x128xf32>
    %307 = vector.extract_strided_slice %303 {offsets = [0, 0], sizes = [8, 96], strides = [1, 1]} : vector<8x128xf32> to vector<8x96xf32>
    %308 = arith.negf %307 : vector<8x96xf32>
    %309 = math.exp %308 : vector<8x96xf32>
    %cst_49 = arith.constant 1.000000e+00 : f32
    %310 = vector.broadcast %cst_49 : f32 to vector<8x96xf32>
    %311 = arith.addf %310, %309 : vector<8x96xf32>
    %312 = arith.divf %310, %311 : vector<8x96xf32>
    %313 = vector.extract_strided_slice %303 {offsets = [0, 96], sizes = [8, 32], strides = [1, 1]} : vector<8x128xf32> to vector<8x32xf32>
    %314 = math.tanh %313 : vector<8x32xf32>
    %315 = vector.extract_strided_slice %312 {offsets = [0, 0], sizes = [8, 32], strides = [1, 1]} : vector<8x96xf32> to vector<8x32xf32>
    %316 = vector.extract_strided_slice %312 {offsets = [0, 32], sizes = [8, 32], strides = [1, 1]} : vector<8x96xf32> to vector<8x32xf32>
    %317 = vector.extract_strided_slice %312 {offsets = [0, 64], sizes = [8, 32], strides = [1, 1]} : vector<8x96xf32> to vector<8x32xf32>
    %318 = arith.mulf %316, %279 : vector<8x32xf32>
    %319 = arith.mulf %315, %314 : vector<8x32xf32>
    %320 = arith.addf %318, %319 : vector<8x32xf32>
    %321 = math.tanh %320 : vector<8x32xf32>
    %322 = arith.mulf %317, %321 : vector<8x32xf32>
    %323 = vector.extract_strided_slice %306 {offsets = [0, 0], sizes = [8, 96], strides = [1, 1]} : vector<8x128xf32> to vector<8x96xf32>
    %324 = arith.negf %323 : vector<8x96xf32>
    %325 = math.exp %324 : vector<8x96xf32>
    %cst_50 = arith.constant 1.000000e+00 : f32
    %326 = vector.broadcast %cst_50 : f32 to vector<8x96xf32>
    %327 = arith.addf %326, %325 : vector<8x96xf32>
    %328 = arith.divf %326, %327 : vector<8x96xf32>
    %329 = vector.extract_strided_slice %306 {offsets = [0, 96], sizes = [8, 32], strides = [1, 1]} : vector<8x128xf32> to vector<8x32xf32>
    %330 = math.tanh %329 : vector<8x32xf32>
    %331 = vector.extract_strided_slice %328 {offsets = [0, 0], sizes = [8, 32], strides = [1, 1]} : vector<8x96xf32> to vector<8x32xf32>
    %332 = vector.extract_strided_slice %328 {offsets = [0, 32], sizes = [8, 32], strides = [1, 1]} : vector<8x96xf32> to vector<8x32xf32>
    %333 = vector.extract_strided_slice %328 {offsets = [0, 64], sizes = [8, 32], strides = [1, 1]} : vector<8x96xf32> to vector<8x32xf32>
    %334 = arith.mulf %332, %295 : vector<8x32xf32>
    %335 = arith.mulf %331, %330 : vector<8x32xf32>
    %336 = arith.addf %334, %335 : vector<8x32xf32>
    %337 = math.tanh %336 : vector<8x32xf32>
    %338 = arith.mulf %333, %337 : vector<8x32xf32>
    %339 = tpu.concatenate %35, %338 in 1 : vector<8x32xf32>, vector<8x32xf32> -> vector<8x64xf32>
    %340 = tpu.concatenate %76, %297 in 1 : vector<8x32xf32>, vector<8x32xf32> -> vector<8x64xf32>
    %341 = tpu.concatenate %117, %256 in 1 : vector<8x32xf32>, vector<8x32xf32> -> vector<8x64xf32>
    %342 = tpu.concatenate %158, %215 in 1 : vector<8x32xf32>, vector<8x32xf32> -> vector<8x64xf32>
    %343 = tpu.concatenate %199, %174 in 1 : vector<8x32xf32>, vector<8x32xf32> -> vector<8x64xf32>
    %344 = tpu.concatenate %240, %133 in 1 : vector<8x32xf32>, vector<8x32xf32> -> vector<8x64xf32>
    %345 = tpu.concatenate %281, %92 in 1 : vector<8x32xf32>, vector<8x32xf32> -> vector<8x64xf32>
    %346 = tpu.concatenate %322, %51 in 1 : vector<8x32xf32>, vector<8x32xf32> -> vector<8x64xf32>
    %347 = tpu.concatenate %339, %340, %341, %342, %343, %344, %345, %346 in 0 : vector<8x64xf32>, vector<8x64xf32>, vector<8x64xf32>, vector<8x64xf32>, vector<8x64xf32>, vector<8x64xf32>, vector<8x64xf32>, vector<8x64xf32> -> vector<64x64xf32>
    %c0_51 = arith.constant 0 : index
    %c0_52 = arith.constant 0 : index
    %348 = vector.load %arg5[%c0_51, %c0_52] : memref<64x256xf32, #tpu.memory_space<vmem>>, vector<64x256xf32>
    %cst_53 = arith.constant dense<0.000000e+00> : vector<64x256xf32>
    %349 = tpu.matmul %347, %348, %cst_53 {dimension_numbers = #tpu.dot_dimension_numbers<[1], [0], [0], [1], [0, 0, 1, 1], [], []>} : vector<64x64xf32>, vector<64x256xf32>, vector<64x256xf32> -> vector<64x256xf32>
    %c0_54 = arith.constant 0 : index
    %c0_55 = arith.constant 0 : index
    %350 = vector.load %arg7[%c0_54, %c0_55] : memref<1x256xf32, #tpu.memory_space<vmem>>, vector<1x256xf32>
    %351 = vector.broadcast %350 : vector<1x256xf32> to vector<64x256xf32>
    %352 = arith.addf %349, %351 : vector<64x256xf32>
    %cst_56 = arith.constant 0.000000e+00 : f32
    %353 = vector.broadcast %cst_56 : f32 to vector<8x32xf32>
    %cst_57 = arith.constant 0.000000e+00 : f32
    %354 = vector.broadcast %cst_57 : f32 to vector<8x32xf32>
    %cst_58 = arith.constant 0.000000e+00 : f32
    %355 = vector.broadcast %cst_58 : f32 to vector<8x32xf32>
    %cst_59 = arith.constant 0.000000e+00 : f32
    %356 = vector.broadcast %cst_59 : f32 to vector<8x32xf32>
    %cst_60 = arith.constant 0.000000e+00 : f32
    %357 = vector.broadcast %cst_60 : f32 to vector<8x32xf32>
    %cst_61 = arith.constant 0.000000e+00 : f32
    %358 = vector.broadcast %cst_61 : f32 to vector<8x32xf32>
    %359 = tpu.concatenate %353, %354 in 1 : vector<8x32xf32>, vector<8x32xf32> -> vector<8x64xf32>
    %c0_62 = arith.constant 0 : index
    %c0_63 = arith.constant 0 : index
    %360 = vector.load %arg6[%c0_62, %c0_63] : memref<64x256xf32, #tpu.memory_space<vmem>>, vector<64x256xf32>
    %cst_64 = arith.constant dense<0.000000e+00> : vector<8x256xf32>
    %361 = tpu.matmul %359, %360, %cst_64 {dimension_numbers = #tpu.dot_dimension_numbers<[1], [0], [0], [1], [0, 0, 1, 1], [], []>} : vector<8x64xf32>, vector<64x256xf32>, vector<8x256xf32> -> vector<8x256xf32>
    %362 = vector.extract_strided_slice %352 {offsets = [0, 0], sizes = [8, 128], strides = [1, 1]} : vector<64x256xf32> to vector<8x128xf32>
    %363 = vector.extract_strided_slice %361 {offsets = [0, 0], sizes = [8, 128], strides = [1, 1]} : vector<8x256xf32> to vector<8x128xf32>
    %364 = arith.addf %362, %363 : vector<8x128xf32>
    %365 = vector.extract_strided_slice %352 {offsets = [56, 128], sizes = [8, 128], strides = [1, 1]} : vector<64x256xf32> to vector<8x128xf32>
    %366 = vector.extract_strided_slice %361 {offsets = [0, 128], sizes = [8, 128], strides = [1, 1]} : vector<8x256xf32> to vector<8x128xf32>
    %367 = arith.addf %365, %366 : vector<8x128xf32>
    %368 = vector.extract_strided_slice %364 {offsets = [0, 0], sizes = [8, 96], strides = [1, 1]} : vector<8x128xf32> to vector<8x96xf32>
    %369 = arith.negf %368 : vector<8x96xf32>
    %370 = math.exp %369 : vector<8x96xf32>
    %cst_65 = arith.constant 1.000000e+00 : f32
    %371 = vector.broadcast %cst_65 : f32 to vector<8x96xf32>
    %372 = arith.addf %371, %370 : vector<8x96xf32>
    %373 = arith.divf %371, %372 : vector<8x96xf32>
    %374 = vector.extract_strided_slice %364 {offsets = [0, 96], sizes = [8, 32], strides = [1, 1]} : vector<8x128xf32> to vector<8x32xf32>
    %375 = math.tanh %374 : vector<8x32xf32>
    %376 = vector.extract_strided_slice %373 {offsets = [0, 0], sizes = [8, 32], strides = [1, 1]} : vector<8x96xf32> to vector<8x32xf32>
    %377 = vector.extract_strided_slice %373 {offsets = [0, 32], sizes = [8, 32], strides = [1, 1]} : vector<8x96xf32> to vector<8x32xf32>
    %378 = vector.extract_strided_slice %373 {offsets = [0, 64], sizes = [8, 32], strides = [1, 1]} : vector<8x96xf32> to vector<8x32xf32>
    %379 = arith.mulf %377, %355 : vector<8x32xf32>
    %380 = arith.mulf %376, %375 : vector<8x32xf32>
    %381 = arith.addf %379, %380 : vector<8x32xf32>
    %382 = math.tanh %381 : vector<8x32xf32>
    %383 = arith.mulf %378, %382 : vector<8x32xf32>
    %384 = vector.extract_strided_slice %367 {offsets = [0, 0], sizes = [8, 96], strides = [1, 1]} : vector<8x128xf32> to vector<8x96xf32>
    %385 = arith.negf %384 : vector<8x96xf32>
    %386 = math.exp %385 : vector<8x96xf32>
    %cst_66 = arith.constant 1.000000e+00 : f32
    %387 = vector.broadcast %cst_66 : f32 to vector<8x96xf32>
    %388 = arith.addf %387, %386 : vector<8x96xf32>
    %389 = arith.divf %387, %388 : vector<8x96xf32>
    %390 = vector.extract_strided_slice %367 {offsets = [0, 96], sizes = [8, 32], strides = [1, 1]} : vector<8x128xf32> to vector<8x32xf32>
    %391 = math.tanh %390 : vector<8x32xf32>
    %392 = vector.extract_strided_slice %389 {offsets = [0, 0], sizes = [8, 32], strides = [1, 1]} : vector<8x96xf32> to vector<8x32xf32>
    %393 = vector.extract_strided_slice %389 {offsets = [0, 32], sizes = [8, 32], strides = [1, 1]} : vector<8x96xf32> to vector<8x32xf32>
    %394 = vector.extract_strided_slice %389 {offsets = [0, 64], sizes = [8, 32], strides = [1, 1]} : vector<8x96xf32> to vector<8x32xf32>
    %395 = arith.mulf %393, %356 : vector<8x32xf32>
    %396 = arith.mulf %392, %391 : vector<8x32xf32>
    %397 = arith.addf %395, %396 : vector<8x32xf32>
    %398 = math.tanh %397 : vector<8x32xf32>
    %399 = arith.mulf %394, %398 : vector<8x32xf32>
    %c1_i32 = arith.constant 1 : i32
    %400 = vector.broadcast %c1_i32 : i32 to vector<8x1xi32>
    %401 = arith.cmpi eq, %0, %400 : vector<8x1xi32>
    %402 = vector.shape_cast %401 : vector<8x1xi1> to vector<8x1xi1>
    %403 = vector.broadcast %402 : vector<8x1xi1> to vector<8x32xi1>
    %404 = arith.select %403, %383, %357 : vector<8x32xi1>, vector<8x32xf32>
    %c8_i32 = arith.constant 8 : i32
    %405 = vector.broadcast %c8_i32 : i32 to vector<8x1xi32>
    %406 = arith.cmpi eq, %0, %405 : vector<8x1xi32>
    %407 = vector.shape_cast %406 : vector<8x1xi1> to vector<8x1xi1>
    %408 = vector.broadcast %407 : vector<8x1xi1> to vector<8x32xi1>
    %409 = arith.select %408, %399, %358 : vector<8x32xi1>, vector<8x32xf32>
    %410 = tpu.concatenate %383, %399 in 1 : vector<8x32xf32>, vector<8x32xf32> -> vector<8x64xf32>
    %c0_67 = arith.constant 0 : index
    %c0_68 = arith.constant 0 : index
    %411 = vector.load %arg6[%c0_67, %c0_68] : memref<64x256xf32, #tpu.memory_space<vmem>>, vector<64x256xf32>
    %cst_69 = arith.constant dense<0.000000e+00> : vector<8x256xf32>
    %412 = tpu.matmul %410, %411, %cst_69 {dimension_numbers = #tpu.dot_dimension_numbers<[1], [0], [0], [1], [0, 0, 1, 1], [], []>} : vector<8x64xf32>, vector<64x256xf32>, vector<8x256xf32> -> vector<8x256xf32>
    %413 = vector.extract_strided_slice %352 {offsets = [8, 0], sizes = [8, 128], strides = [1, 1]} : vector<64x256xf32> to vector<8x128xf32>
    %414 = vector.extract_strided_slice %412 {offsets = [0, 0], sizes = [8, 128], strides = [1, 1]} : vector<8x256xf32> to vector<8x128xf32>
    %415 = arith.addf %413, %414 : vector<8x128xf32>
    %416 = vector.extract_strided_slice %352 {offsets = [48, 128], sizes = [8, 128], strides = [1, 1]} : vector<64x256xf32> to vector<8x128xf32>
    %417 = vector.extract_strided_slice %412 {offsets = [0, 128], sizes = [8, 128], strides = [1, 1]} : vector<8x256xf32> to vector<8x128xf32>
    %418 = arith.addf %416, %417 : vector<8x128xf32>
    %419 = vector.extract_strided_slice %415 {offsets = [0, 0], sizes = [8, 96], strides = [1, 1]} : vector<8x128xf32> to vector<8x96xf32>
    %420 = arith.negf %419 : vector<8x96xf32>
    %421 = math.exp %420 : vector<8x96xf32>
    %cst_70 = arith.constant 1.000000e+00 : f32
    %422 = vector.broadcast %cst_70 : f32 to vector<8x96xf32>
    %423 = arith.addf %422, %421 : vector<8x96xf32>
    %424 = arith.divf %422, %423 : vector<8x96xf32>
    %425 = vector.extract_strided_slice %415 {offsets = [0, 96], sizes = [8, 32], strides = [1, 1]} : vector<8x128xf32> to vector<8x32xf32>
    %426 = math.tanh %425 : vector<8x32xf32>
    %427 = vector.extract_strided_slice %424 {offsets = [0, 0], sizes = [8, 32], strides = [1, 1]} : vector<8x96xf32> to vector<8x32xf32>
    %428 = vector.extract_strided_slice %424 {offsets = [0, 32], sizes = [8, 32], strides = [1, 1]} : vector<8x96xf32> to vector<8x32xf32>
    %429 = vector.extract_strided_slice %424 {offsets = [0, 64], sizes = [8, 32], strides = [1, 1]} : vector<8x96xf32> to vector<8x32xf32>
    %430 = arith.mulf %428, %381 : vector<8x32xf32>
    %431 = arith.mulf %427, %426 : vector<8x32xf32>
    %432 = arith.addf %430, %431 : vector<8x32xf32>
    %433 = math.tanh %432 : vector<8x32xf32>
    %434 = arith.mulf %429, %433 : vector<8x32xf32>
    %435 = vector.extract_strided_slice %418 {offsets = [0, 0], sizes = [8, 96], strides = [1, 1]} : vector<8x128xf32> to vector<8x96xf32>
    %436 = arith.negf %435 : vector<8x96xf32>
    %437 = math.exp %436 : vector<8x96xf32>
    %cst_71 = arith.constant 1.000000e+00 : f32
    %438 = vector.broadcast %cst_71 : f32 to vector<8x96xf32>
    %439 = arith.addf %438, %437 : vector<8x96xf32>
    %440 = arith.divf %438, %439 : vector<8x96xf32>
    %441 = vector.extract_strided_slice %418 {offsets = [0, 96], sizes = [8, 32], strides = [1, 1]} : vector<8x128xf32> to vector<8x32xf32>
    %442 = math.tanh %441 : vector<8x32xf32>
    %443 = vector.extract_strided_slice %440 {offsets = [0, 0], sizes = [8, 32], strides = [1, 1]} : vector<8x96xf32> to vector<8x32xf32>
    %444 = vector.extract_strided_slice %440 {offsets = [0, 32], sizes = [8, 32], strides = [1, 1]} : vector<8x96xf32> to vector<8x32xf32>
    %445 = vector.extract_strided_slice %440 {offsets = [0, 64], sizes = [8, 32], strides = [1, 1]} : vector<8x96xf32> to vector<8x32xf32>
    %446 = arith.mulf %444, %397 : vector<8x32xf32>
    %447 = arith.mulf %443, %442 : vector<8x32xf32>
    %448 = arith.addf %446, %447 : vector<8x32xf32>
    %449 = math.tanh %448 : vector<8x32xf32>
    %450 = arith.mulf %445, %449 : vector<8x32xf32>
    %c2_i32 = arith.constant 2 : i32
    %451 = vector.broadcast %c2_i32 : i32 to vector<8x1xi32>
    %452 = arith.cmpi eq, %0, %451 : vector<8x1xi32>
    %453 = vector.shape_cast %452 : vector<8x1xi1> to vector<8x1xi1>
    %454 = vector.broadcast %453 : vector<8x1xi1> to vector<8x32xi1>
    %455 = arith.select %454, %434, %404 : vector<8x32xi1>, vector<8x32xf32>
    %c7_i32 = arith.constant 7 : i32
    %456 = vector.broadcast %c7_i32 : i32 to vector<8x1xi32>
    %457 = arith.cmpi eq, %0, %456 : vector<8x1xi32>
    %458 = vector.shape_cast %457 : vector<8x1xi1> to vector<8x1xi1>
    %459 = vector.broadcast %458 : vector<8x1xi1> to vector<8x32xi1>
    %460 = arith.select %459, %450, %409 : vector<8x32xi1>, vector<8x32xf32>
    %461 = tpu.concatenate %434, %450 in 1 : vector<8x32xf32>, vector<8x32xf32> -> vector<8x64xf32>
    %c0_72 = arith.constant 0 : index
    %c0_73 = arith.constant 0 : index
    %462 = vector.load %arg6[%c0_72, %c0_73] : memref<64x256xf32, #tpu.memory_space<vmem>>, vector<64x256xf32>
    %cst_74 = arith.constant dense<0.000000e+00> : vector<8x256xf32>
    %463 = tpu.matmul %461, %462, %cst_74 {dimension_numbers = #tpu.dot_dimension_numbers<[1], [0], [0], [1], [0, 0, 1, 1], [], []>} : vector<8x64xf32>, vector<64x256xf32>, vector<8x256xf32> -> vector<8x256xf32>
    %464 = vector.extract_strided_slice %352 {offsets = [16, 0], sizes = [8, 128], strides = [1, 1]} : vector<64x256xf32> to vector<8x128xf32>
    %465 = vector.extract_strided_slice %463 {offsets = [0, 0], sizes = [8, 128], strides = [1, 1]} : vector<8x256xf32> to vector<8x128xf32>
    %466 = arith.addf %464, %465 : vector<8x128xf32>
    %467 = vector.extract_strided_slice %352 {offsets = [40, 128], sizes = [8, 128], strides = [1, 1]} : vector<64x256xf32> to vector<8x128xf32>
    %468 = vector.extract_strided_slice %463 {offsets = [0, 128], sizes = [8, 128], strides = [1, 1]} : vector<8x256xf32> to vector<8x128xf32>
    %469 = arith.addf %467, %468 : vector<8x128xf32>
    %470 = vector.extract_strided_slice %466 {offsets = [0, 0], sizes = [8, 96], strides = [1, 1]} : vector<8x128xf32> to vector<8x96xf32>
    %471 = arith.negf %470 : vector<8x96xf32>
    %472 = math.exp %471 : vector<8x96xf32>
    %cst_75 = arith.constant 1.000000e+00 : f32
    %473 = vector.broadcast %cst_75 : f32 to vector<8x96xf32>
    %474 = arith.addf %473, %472 : vector<8x96xf32>
    %475 = arith.divf %473, %474 : vector<8x96xf32>
    %476 = vector.extract_strided_slice %466 {offsets = [0, 96], sizes = [8, 32], strides = [1, 1]} : vector<8x128xf32> to vector<8x32xf32>
    %477 = math.tanh %476 : vector<8x32xf32>
    %478 = vector.extract_strided_slice %475 {offsets = [0, 0], sizes = [8, 32], strides = [1, 1]} : vector<8x96xf32> to vector<8x32xf32>
    %479 = vector.extract_strided_slice %475 {offsets = [0, 32], sizes = [8, 32], strides = [1, 1]} : vector<8x96xf32> to vector<8x32xf32>
    %480 = vector.extract_strided_slice %475 {offsets = [0, 64], sizes = [8, 32], strides = [1, 1]} : vector<8x96xf32> to vector<8x32xf32>
    %481 = arith.mulf %479, %432 : vector<8x32xf32>
    %482 = arith.mulf %478, %477 : vector<8x32xf32>
    %483 = arith.addf %481, %482 : vector<8x32xf32>
    %484 = math.tanh %483 : vector<8x32xf32>
    %485 = arith.mulf %480, %484 : vector<8x32xf32>
    %486 = vector.extract_strided_slice %469 {offsets = [0, 0], sizes = [8, 96], strides = [1, 1]} : vector<8x128xf32> to vector<8x96xf32>
    %487 = arith.negf %486 : vector<8x96xf32>
    %488 = math.exp %487 : vector<8x96xf32>
    %cst_76 = arith.constant 1.000000e+00 : f32
    %489 = vector.broadcast %cst_76 : f32 to vector<8x96xf32>
    %490 = arith.addf %489, %488 : vector<8x96xf32>
    %491 = arith.divf %489, %490 : vector<8x96xf32>
    %492 = vector.extract_strided_slice %469 {offsets = [0, 96], sizes = [8, 32], strides = [1, 1]} : vector<8x128xf32> to vector<8x32xf32>
    %493 = math.tanh %492 : vector<8x32xf32>
    %494 = vector.extract_strided_slice %491 {offsets = [0, 0], sizes = [8, 32], strides = [1, 1]} : vector<8x96xf32> to vector<8x32xf32>
    %495 = vector.extract_strided_slice %491 {offsets = [0, 32], sizes = [8, 32], strides = [1, 1]} : vector<8x96xf32> to vector<8x32xf32>
    %496 = vector.extract_strided_slice %491 {offsets = [0, 64], sizes = [8, 32], strides = [1, 1]} : vector<8x96xf32> to vector<8x32xf32>
    %497 = arith.mulf %495, %448 : vector<8x32xf32>
    %498 = arith.mulf %494, %493 : vector<8x32xf32>
    %499 = arith.addf %497, %498 : vector<8x32xf32>
    %500 = math.tanh %499 : vector<8x32xf32>
    %501 = arith.mulf %496, %500 : vector<8x32xf32>
    %c3_i32 = arith.constant 3 : i32
    %502 = vector.broadcast %c3_i32 : i32 to vector<8x1xi32>
    %503 = arith.cmpi eq, %0, %502 : vector<8x1xi32>
    %504 = vector.shape_cast %503 : vector<8x1xi1> to vector<8x1xi1>
    %505 = vector.broadcast %504 : vector<8x1xi1> to vector<8x32xi1>
    %506 = arith.select %505, %485, %455 : vector<8x32xi1>, vector<8x32xf32>
    %c6_i32 = arith.constant 6 : i32
    %507 = vector.broadcast %c6_i32 : i32 to vector<8x1xi32>
    %508 = arith.cmpi eq, %0, %507 : vector<8x1xi32>
    %509 = vector.shape_cast %508 : vector<8x1xi1> to vector<8x1xi1>
    %510 = vector.broadcast %509 : vector<8x1xi1> to vector<8x32xi1>
    %511 = arith.select %510, %501, %460 : vector<8x32xi1>, vector<8x32xf32>
    %512 = tpu.concatenate %485, %501 in 1 : vector<8x32xf32>, vector<8x32xf32> -> vector<8x64xf32>
    %c0_77 = arith.constant 0 : index
    %c0_78 = arith.constant 0 : index
    %513 = vector.load %arg6[%c0_77, %c0_78] : memref<64x256xf32, #tpu.memory_space<vmem>>, vector<64x256xf32>
    %cst_79 = arith.constant dense<0.000000e+00> : vector<8x256xf32>
    %514 = tpu.matmul %512, %513, %cst_79 {dimension_numbers = #tpu.dot_dimension_numbers<[1], [0], [0], [1], [0, 0, 1, 1], [], []>} : vector<8x64xf32>, vector<64x256xf32>, vector<8x256xf32> -> vector<8x256xf32>
    %515 = vector.extract_strided_slice %352 {offsets = [24, 0], sizes = [8, 128], strides = [1, 1]} : vector<64x256xf32> to vector<8x128xf32>
    %516 = vector.extract_strided_slice %514 {offsets = [0, 0], sizes = [8, 128], strides = [1, 1]} : vector<8x256xf32> to vector<8x128xf32>
    %517 = arith.addf %515, %516 : vector<8x128xf32>
    %518 = vector.extract_strided_slice %352 {offsets = [32, 128], sizes = [8, 128], strides = [1, 1]} : vector<64x256xf32> to vector<8x128xf32>
    %519 = vector.extract_strided_slice %514 {offsets = [0, 128], sizes = [8, 128], strides = [1, 1]} : vector<8x256xf32> to vector<8x128xf32>
    %520 = arith.addf %518, %519 : vector<8x128xf32>
    %521 = vector.extract_strided_slice %517 {offsets = [0, 0], sizes = [8, 96], strides = [1, 1]} : vector<8x128xf32> to vector<8x96xf32>
    %522 = arith.negf %521 : vector<8x96xf32>
    %523 = math.exp %522 : vector<8x96xf32>
    %cst_80 = arith.constant 1.000000e+00 : f32
    %524 = vector.broadcast %cst_80 : f32 to vector<8x96xf32>
    %525 = arith.addf %524, %523 : vector<8x96xf32>
    %526 = arith.divf %524, %525 : vector<8x96xf32>
    %527 = vector.extract_strided_slice %517 {offsets = [0, 96], sizes = [8, 32], strides = [1, 1]} : vector<8x128xf32> to vector<8x32xf32>
    %528 = math.tanh %527 : vector<8x32xf32>
    %529 = vector.extract_strided_slice %526 {offsets = [0, 0], sizes = [8, 32], strides = [1, 1]} : vector<8x96xf32> to vector<8x32xf32>
    %530 = vector.extract_strided_slice %526 {offsets = [0, 32], sizes = [8, 32], strides = [1, 1]} : vector<8x96xf32> to vector<8x32xf32>
    %531 = vector.extract_strided_slice %526 {offsets = [0, 64], sizes = [8, 32], strides = [1, 1]} : vector<8x96xf32> to vector<8x32xf32>
    %532 = arith.mulf %530, %483 : vector<8x32xf32>
    %533 = arith.mulf %529, %528 : vector<8x32xf32>
    %534 = arith.addf %532, %533 : vector<8x32xf32>
    %535 = math.tanh %534 : vector<8x32xf32>
    %536 = arith.mulf %531, %535 : vector<8x32xf32>
    %537 = vector.extract_strided_slice %520 {offsets = [0, 0], sizes = [8, 96], strides = [1, 1]} : vector<8x128xf32> to vector<8x96xf32>
    %538 = arith.negf %537 : vector<8x96xf32>
    %539 = math.exp %538 : vector<8x96xf32>
    %cst_81 = arith.constant 1.000000e+00 : f32
    %540 = vector.broadcast %cst_81 : f32 to vector<8x96xf32>
    %541 = arith.addf %540, %539 : vector<8x96xf32>
    %542 = arith.divf %540, %541 : vector<8x96xf32>
    %543 = vector.extract_strided_slice %520 {offsets = [0, 96], sizes = [8, 32], strides = [1, 1]} : vector<8x128xf32> to vector<8x32xf32>
    %544 = math.tanh %543 : vector<8x32xf32>
    %545 = vector.extract_strided_slice %542 {offsets = [0, 0], sizes = [8, 32], strides = [1, 1]} : vector<8x96xf32> to vector<8x32xf32>
    %546 = vector.extract_strided_slice %542 {offsets = [0, 32], sizes = [8, 32], strides = [1, 1]} : vector<8x96xf32> to vector<8x32xf32>
    %547 = vector.extract_strided_slice %542 {offsets = [0, 64], sizes = [8, 32], strides = [1, 1]} : vector<8x96xf32> to vector<8x32xf32>
    %548 = arith.mulf %546, %499 : vector<8x32xf32>
    %549 = arith.mulf %545, %544 : vector<8x32xf32>
    %550 = arith.addf %548, %549 : vector<8x32xf32>
    %551 = math.tanh %550 : vector<8x32xf32>
    %552 = arith.mulf %547, %551 : vector<8x32xf32>
    %c4_i32 = arith.constant 4 : i32
    %553 = vector.broadcast %c4_i32 : i32 to vector<8x1xi32>
    %554 = arith.cmpi eq, %0, %553 : vector<8x1xi32>
    %555 = vector.shape_cast %554 : vector<8x1xi1> to vector<8x1xi1>
    %556 = vector.broadcast %555 : vector<8x1xi1> to vector<8x32xi1>
    %557 = arith.select %556, %536, %506 : vector<8x32xi1>, vector<8x32xf32>
    %c5_i32 = arith.constant 5 : i32
    %558 = vector.broadcast %c5_i32 : i32 to vector<8x1xi32>
    %559 = arith.cmpi eq, %0, %558 : vector<8x1xi32>
    %560 = vector.shape_cast %559 : vector<8x1xi1> to vector<8x1xi1>
    %561 = vector.broadcast %560 : vector<8x1xi1> to vector<8x32xi1>
    %562 = arith.select %561, %552, %511 : vector<8x32xi1>, vector<8x32xf32>
    %563 = tpu.concatenate %536, %552 in 1 : vector<8x32xf32>, vector<8x32xf32> -> vector<8x64xf32>
    %c0_82 = arith.constant 0 : index
    %c0_83 = arith.constant 0 : index
    %564 = vector.load %arg6[%c0_82, %c0_83] : memref<64x256xf32, #tpu.memory_space<vmem>>, vector<64x256xf32>
    %cst_84 = arith.constant dense<0.000000e+00> : vector<8x256xf32>
    %565 = tpu.matmul %563, %564, %cst_84 {dimension_numbers = #tpu.dot_dimension_numbers<[1], [0], [0], [1], [0, 0, 1, 1], [], []>} : vector<8x64xf32>, vector<64x256xf32>, vector<8x256xf32> -> vector<8x256xf32>
    %566 = vector.extract_strided_slice %352 {offsets = [32, 0], sizes = [8, 128], strides = [1, 1]} : vector<64x256xf32> to vector<8x128xf32>
    %567 = vector.extract_strided_slice %565 {offsets = [0, 0], sizes = [8, 128], strides = [1, 1]} : vector<8x256xf32> to vector<8x128xf32>
    %568 = arith.addf %566, %567 : vector<8x128xf32>
    %569 = vector.extract_strided_slice %352 {offsets = [24, 128], sizes = [8, 128], strides = [1, 1]} : vector<64x256xf32> to vector<8x128xf32>
    %570 = vector.extract_strided_slice %565 {offsets = [0, 128], sizes = [8, 128], strides = [1, 1]} : vector<8x256xf32> to vector<8x128xf32>
    %571 = arith.addf %569, %570 : vector<8x128xf32>
    %572 = vector.extract_strided_slice %568 {offsets = [0, 0], sizes = [8, 96], strides = [1, 1]} : vector<8x128xf32> to vector<8x96xf32>
    %573 = arith.negf %572 : vector<8x96xf32>
    %574 = math.exp %573 : vector<8x96xf32>
    %cst_85 = arith.constant 1.000000e+00 : f32
    %575 = vector.broadcast %cst_85 : f32 to vector<8x96xf32>
    %576 = arith.addf %575, %574 : vector<8x96xf32>
    %577 = arith.divf %575, %576 : vector<8x96xf32>
    %578 = vector.extract_strided_slice %568 {offsets = [0, 96], sizes = [8, 32], strides = [1, 1]} : vector<8x128xf32> to vector<8x32xf32>
    %579 = math.tanh %578 : vector<8x32xf32>
    %580 = vector.extract_strided_slice %577 {offsets = [0, 0], sizes = [8, 32], strides = [1, 1]} : vector<8x96xf32> to vector<8x32xf32>
    %581 = vector.extract_strided_slice %577 {offsets = [0, 32], sizes = [8, 32], strides = [1, 1]} : vector<8x96xf32> to vector<8x32xf32>
    %582 = vector.extract_strided_slice %577 {offsets = [0, 64], sizes = [8, 32], strides = [1, 1]} : vector<8x96xf32> to vector<8x32xf32>
    %583 = arith.mulf %581, %534 : vector<8x32xf32>
    %584 = arith.mulf %580, %579 : vector<8x32xf32>
    %585 = arith.addf %583, %584 : vector<8x32xf32>
    %586 = math.tanh %585 : vector<8x32xf32>
    %587 = arith.mulf %582, %586 : vector<8x32xf32>
    %588 = vector.extract_strided_slice %571 {offsets = [0, 0], sizes = [8, 96], strides = [1, 1]} : vector<8x128xf32> to vector<8x96xf32>
    %589 = arith.negf %588 : vector<8x96xf32>
    %590 = math.exp %589 : vector<8x96xf32>
    %cst_86 = arith.constant 1.000000e+00 : f32
    %591 = vector.broadcast %cst_86 : f32 to vector<8x96xf32>
    %592 = arith.addf %591, %590 : vector<8x96xf32>
    %593 = arith.divf %591, %592 : vector<8x96xf32>
    %594 = vector.extract_strided_slice %571 {offsets = [0, 96], sizes = [8, 32], strides = [1, 1]} : vector<8x128xf32> to vector<8x32xf32>
    %595 = math.tanh %594 : vector<8x32xf32>
    %596 = vector.extract_strided_slice %593 {offsets = [0, 0], sizes = [8, 32], strides = [1, 1]} : vector<8x96xf32> to vector<8x32xf32>
    %597 = vector.extract_strided_slice %593 {offsets = [0, 32], sizes = [8, 32], strides = [1, 1]} : vector<8x96xf32> to vector<8x32xf32>
    %598 = vector.extract_strided_slice %593 {offsets = [0, 64], sizes = [8, 32], strides = [1, 1]} : vector<8x96xf32> to vector<8x32xf32>
    %599 = arith.mulf %597, %550 : vector<8x32xf32>
    %600 = arith.mulf %596, %595 : vector<8x32xf32>
    %601 = arith.addf %599, %600 : vector<8x32xf32>
    %602 = math.tanh %601 : vector<8x32xf32>
    %603 = arith.mulf %598, %602 : vector<8x32xf32>
    %c5_i32_87 = arith.constant 5 : i32
    %604 = vector.broadcast %c5_i32_87 : i32 to vector<8x1xi32>
    %605 = arith.cmpi eq, %0, %604 : vector<8x1xi32>
    %606 = vector.shape_cast %605 : vector<8x1xi1> to vector<8x1xi1>
    %607 = vector.broadcast %606 : vector<8x1xi1> to vector<8x32xi1>
    %608 = arith.select %607, %587, %557 : vector<8x32xi1>, vector<8x32xf32>
    %c4_i32_88 = arith.constant 4 : i32
    %609 = vector.broadcast %c4_i32_88 : i32 to vector<8x1xi32>
    %610 = arith.cmpi eq, %0, %609 : vector<8x1xi32>
    %611 = vector.shape_cast %610 : vector<8x1xi1> to vector<8x1xi1>
    %612 = vector.broadcast %611 : vector<8x1xi1> to vector<8x32xi1>
    %613 = arith.select %612, %603, %562 : vector<8x32xi1>, vector<8x32xf32>
    %614 = tpu.concatenate %587, %603 in 1 : vector<8x32xf32>, vector<8x32xf32> -> vector<8x64xf32>
    %c0_89 = arith.constant 0 : index
    %c0_90 = arith.constant 0 : index
    %615 = vector.load %arg6[%c0_89, %c0_90] : memref<64x256xf32, #tpu.memory_space<vmem>>, vector<64x256xf32>
    %cst_91 = arith.constant dense<0.000000e+00> : vector<8x256xf32>
    %616 = tpu.matmul %614, %615, %cst_91 {dimension_numbers = #tpu.dot_dimension_numbers<[1], [0], [0], [1], [0, 0, 1, 1], [], []>} : vector<8x64xf32>, vector<64x256xf32>, vector<8x256xf32> -> vector<8x256xf32>
    %617 = vector.extract_strided_slice %352 {offsets = [40, 0], sizes = [8, 128], strides = [1, 1]} : vector<64x256xf32> to vector<8x128xf32>
    %618 = vector.extract_strided_slice %616 {offsets = [0, 0], sizes = [8, 128], strides = [1, 1]} : vector<8x256xf32> to vector<8x128xf32>
    %619 = arith.addf %617, %618 : vector<8x128xf32>
    %620 = vector.extract_strided_slice %352 {offsets = [16, 128], sizes = [8, 128], strides = [1, 1]} : vector<64x256xf32> to vector<8x128xf32>
    %621 = vector.extract_strided_slice %616 {offsets = [0, 128], sizes = [8, 128], strides = [1, 1]} : vector<8x256xf32> to vector<8x128xf32>
    %622 = arith.addf %620, %621 : vector<8x128xf32>
    %623 = vector.extract_strided_slice %619 {offsets = [0, 0], sizes = [8, 96], strides = [1, 1]} : vector<8x128xf32> to vector<8x96xf32>
    %624 = arith.negf %623 : vector<8x96xf32>
    %625 = math.exp %624 : vector<8x96xf32>
    %cst_92 = arith.constant 1.000000e+00 : f32
    %626 = vector.broadcast %cst_92 : f32 to vector<8x96xf32>
    %627 = arith.addf %626, %625 : vector<8x96xf32>
    %628 = arith.divf %626, %627 : vector<8x96xf32>
    %629 = vector.extract_strided_slice %619 {offsets = [0, 96], sizes = [8, 32], strides = [1, 1]} : vector<8x128xf32> to vector<8x32xf32>
    %630 = math.tanh %629 : vector<8x32xf32>
    %631 = vector.extract_strided_slice %628 {offsets = [0, 0], sizes = [8, 32], strides = [1, 1]} : vector<8x96xf32> to vector<8x32xf32>
    %632 = vector.extract_strided_slice %628 {offsets = [0, 32], sizes = [8, 32], strides = [1, 1]} : vector<8x96xf32> to vector<8x32xf32>
    %633 = vector.extract_strided_slice %628 {offsets = [0, 64], sizes = [8, 32], strides = [1, 1]} : vector<8x96xf32> to vector<8x32xf32>
    %634 = arith.mulf %632, %585 : vector<8x32xf32>
    %635 = arith.mulf %631, %630 : vector<8x32xf32>
    %636 = arith.addf %634, %635 : vector<8x32xf32>
    %637 = math.tanh %636 : vector<8x32xf32>
    %638 = arith.mulf %633, %637 : vector<8x32xf32>
    %639 = vector.extract_strided_slice %622 {offsets = [0, 0], sizes = [8, 96], strides = [1, 1]} : vector<8x128xf32> to vector<8x96xf32>
    %640 = arith.negf %639 : vector<8x96xf32>
    %641 = math.exp %640 : vector<8x96xf32>
    %cst_93 = arith.constant 1.000000e+00 : f32
    %642 = vector.broadcast %cst_93 : f32 to vector<8x96xf32>
    %643 = arith.addf %642, %641 : vector<8x96xf32>
    %644 = arith.divf %642, %643 : vector<8x96xf32>
    %645 = vector.extract_strided_slice %622 {offsets = [0, 96], sizes = [8, 32], strides = [1, 1]} : vector<8x128xf32> to vector<8x32xf32>
    %646 = math.tanh %645 : vector<8x32xf32>
    %647 = vector.extract_strided_slice %644 {offsets = [0, 0], sizes = [8, 32], strides = [1, 1]} : vector<8x96xf32> to vector<8x32xf32>
    %648 = vector.extract_strided_slice %644 {offsets = [0, 32], sizes = [8, 32], strides = [1, 1]} : vector<8x96xf32> to vector<8x32xf32>
    %649 = vector.extract_strided_slice %644 {offsets = [0, 64], sizes = [8, 32], strides = [1, 1]} : vector<8x96xf32> to vector<8x32xf32>
    %650 = arith.mulf %648, %601 : vector<8x32xf32>
    %651 = arith.mulf %647, %646 : vector<8x32xf32>
    %652 = arith.addf %650, %651 : vector<8x32xf32>
    %653 = math.tanh %652 : vector<8x32xf32>
    %654 = arith.mulf %649, %653 : vector<8x32xf32>
    %c6_i32_94 = arith.constant 6 : i32
    %655 = vector.broadcast %c6_i32_94 : i32 to vector<8x1xi32>
    %656 = arith.cmpi eq, %0, %655 : vector<8x1xi32>
    %657 = vector.shape_cast %656 : vector<8x1xi1> to vector<8x1xi1>
    %658 = vector.broadcast %657 : vector<8x1xi1> to vector<8x32xi1>
    %659 = arith.select %658, %638, %608 : vector<8x32xi1>, vector<8x32xf32>
    %c3_i32_95 = arith.constant 3 : i32
    %660 = vector.broadcast %c3_i32_95 : i32 to vector<8x1xi32>
    %661 = arith.cmpi eq, %0, %660 : vector<8x1xi32>
    %662 = vector.shape_cast %661 : vector<8x1xi1> to vector<8x1xi1>
    %663 = vector.broadcast %662 : vector<8x1xi1> to vector<8x32xi1>
    %664 = arith.select %663, %654, %613 : vector<8x32xi1>, vector<8x32xf32>
    %665 = tpu.concatenate %638, %654 in 1 : vector<8x32xf32>, vector<8x32xf32> -> vector<8x64xf32>
    %c0_96 = arith.constant 0 : index
    %c0_97 = arith.constant 0 : index
    %666 = vector.load %arg6[%c0_96, %c0_97] : memref<64x256xf32, #tpu.memory_space<vmem>>, vector<64x256xf32>
    %cst_98 = arith.constant dense<0.000000e+00> : vector<8x256xf32>
    %667 = tpu.matmul %665, %666, %cst_98 {dimension_numbers = #tpu.dot_dimension_numbers<[1], [0], [0], [1], [0, 0, 1, 1], [], []>} : vector<8x64xf32>, vector<64x256xf32>, vector<8x256xf32> -> vector<8x256xf32>
    %668 = vector.extract_strided_slice %352 {offsets = [48, 0], sizes = [8, 128], strides = [1, 1]} : vector<64x256xf32> to vector<8x128xf32>
    %669 = vector.extract_strided_slice %667 {offsets = [0, 0], sizes = [8, 128], strides = [1, 1]} : vector<8x256xf32> to vector<8x128xf32>
    %670 = arith.addf %668, %669 : vector<8x128xf32>
    %671 = vector.extract_strided_slice %352 {offsets = [8, 128], sizes = [8, 128], strides = [1, 1]} : vector<64x256xf32> to vector<8x128xf32>
    %672 = vector.extract_strided_slice %667 {offsets = [0, 128], sizes = [8, 128], strides = [1, 1]} : vector<8x256xf32> to vector<8x128xf32>
    %673 = arith.addf %671, %672 : vector<8x128xf32>
    %674 = vector.extract_strided_slice %670 {offsets = [0, 0], sizes = [8, 96], strides = [1, 1]} : vector<8x128xf32> to vector<8x96xf32>
    %675 = arith.negf %674 : vector<8x96xf32>
    %676 = math.exp %675 : vector<8x96xf32>
    %cst_99 = arith.constant 1.000000e+00 : f32
    %677 = vector.broadcast %cst_99 : f32 to vector<8x96xf32>
    %678 = arith.addf %677, %676 : vector<8x96xf32>
    %679 = arith.divf %677, %678 : vector<8x96xf32>
    %680 = vector.extract_strided_slice %670 {offsets = [0, 96], sizes = [8, 32], strides = [1, 1]} : vector<8x128xf32> to vector<8x32xf32>
    %681 = math.tanh %680 : vector<8x32xf32>
    %682 = vector.extract_strided_slice %679 {offsets = [0, 0], sizes = [8, 32], strides = [1, 1]} : vector<8x96xf32> to vector<8x32xf32>
    %683 = vector.extract_strided_slice %679 {offsets = [0, 32], sizes = [8, 32], strides = [1, 1]} : vector<8x96xf32> to vector<8x32xf32>
    %684 = vector.extract_strided_slice %679 {offsets = [0, 64], sizes = [8, 32], strides = [1, 1]} : vector<8x96xf32> to vector<8x32xf32>
    %685 = arith.mulf %683, %636 : vector<8x32xf32>
    %686 = arith.mulf %682, %681 : vector<8x32xf32>
    %687 = arith.addf %685, %686 : vector<8x32xf32>
    %688 = math.tanh %687 : vector<8x32xf32>
    %689 = arith.mulf %684, %688 : vector<8x32xf32>
    %690 = vector.extract_strided_slice %673 {offsets = [0, 0], sizes = [8, 96], strides = [1, 1]} : vector<8x128xf32> to vector<8x96xf32>
    %691 = arith.negf %690 : vector<8x96xf32>
    %692 = math.exp %691 : vector<8x96xf32>
    %cst_100 = arith.constant 1.000000e+00 : f32
    %693 = vector.broadcast %cst_100 : f32 to vector<8x96xf32>
    %694 = arith.addf %693, %692 : vector<8x96xf32>
    %695 = arith.divf %693, %694 : vector<8x96xf32>
    %696 = vector.extract_strided_slice %673 {offsets = [0, 96], sizes = [8, 32], strides = [1, 1]} : vector<8x128xf32> to vector<8x32xf32>
    %697 = math.tanh %696 : vector<8x32xf32>
    %698 = vector.extract_strided_slice %695 {offsets = [0, 0], sizes = [8, 32], strides = [1, 1]} : vector<8x96xf32> to vector<8x32xf32>
    %699 = vector.extract_strided_slice %695 {offsets = [0, 32], sizes = [8, 32], strides = [1, 1]} : vector<8x96xf32> to vector<8x32xf32>
    %700 = vector.extract_strided_slice %695 {offsets = [0, 64], sizes = [8, 32], strides = [1, 1]} : vector<8x96xf32> to vector<8x32xf32>
    %701 = arith.mulf %699, %652 : vector<8x32xf32>
    %702 = arith.mulf %698, %697 : vector<8x32xf32>
    %703 = arith.addf %701, %702 : vector<8x32xf32>
    %704 = math.tanh %703 : vector<8x32xf32>
    %705 = arith.mulf %700, %704 : vector<8x32xf32>
    %c7_i32_101 = arith.constant 7 : i32
    %706 = vector.broadcast %c7_i32_101 : i32 to vector<8x1xi32>
    %707 = arith.cmpi eq, %0, %706 : vector<8x1xi32>
    %708 = vector.shape_cast %707 : vector<8x1xi1> to vector<8x1xi1>
    %709 = vector.broadcast %708 : vector<8x1xi1> to vector<8x32xi1>
    %710 = arith.select %709, %689, %659 : vector<8x32xi1>, vector<8x32xf32>
    %c2_i32_102 = arith.constant 2 : i32
    %711 = vector.broadcast %c2_i32_102 : i32 to vector<8x1xi32>
    %712 = arith.cmpi eq, %0, %711 : vector<8x1xi32>
    %713 = vector.shape_cast %712 : vector<8x1xi1> to vector<8x1xi1>
    %714 = vector.broadcast %713 : vector<8x1xi1> to vector<8x32xi1>
    %715 = arith.select %714, %705, %664 : vector<8x32xi1>, vector<8x32xf32>
    %716 = tpu.concatenate %689, %705 in 1 : vector<8x32xf32>, vector<8x32xf32> -> vector<8x64xf32>
    %c0_103 = arith.constant 0 : index
    %c0_104 = arith.constant 0 : index
    %717 = vector.load %arg6[%c0_103, %c0_104] : memref<64x256xf32, #tpu.memory_space<vmem>>, vector<64x256xf32>
    %cst_105 = arith.constant dense<0.000000e+00> : vector<8x256xf32>
    %718 = tpu.matmul %716, %717, %cst_105 {dimension_numbers = #tpu.dot_dimension_numbers<[1], [0], [0], [1], [0, 0, 1, 1], [], []>} : vector<8x64xf32>, vector<64x256xf32>, vector<8x256xf32> -> vector<8x256xf32>
    %719 = vector.extract_strided_slice %352 {offsets = [56, 0], sizes = [8, 128], strides = [1, 1]} : vector<64x256xf32> to vector<8x128xf32>
    %720 = vector.extract_strided_slice %718 {offsets = [0, 0], sizes = [8, 128], strides = [1, 1]} : vector<8x256xf32> to vector<8x128xf32>
    %721 = arith.addf %719, %720 : vector<8x128xf32>
    %722 = vector.extract_strided_slice %352 {offsets = [0, 128], sizes = [8, 128], strides = [1, 1]} : vector<64x256xf32> to vector<8x128xf32>
    %723 = vector.extract_strided_slice %718 {offsets = [0, 128], sizes = [8, 128], strides = [1, 1]} : vector<8x256xf32> to vector<8x128xf32>
    %724 = arith.addf %722, %723 : vector<8x128xf32>
    %725 = vector.extract_strided_slice %721 {offsets = [0, 0], sizes = [8, 96], strides = [1, 1]} : vector<8x128xf32> to vector<8x96xf32>
    %726 = arith.negf %725 : vector<8x96xf32>
    %727 = math.exp %726 : vector<8x96xf32>
    %cst_106 = arith.constant 1.000000e+00 : f32
    %728 = vector.broadcast %cst_106 : f32 to vector<8x96xf32>
    %729 = arith.addf %728, %727 : vector<8x96xf32>
    %730 = arith.divf %728, %729 : vector<8x96xf32>
    %731 = vector.extract_strided_slice %721 {offsets = [0, 96], sizes = [8, 32], strides = [1, 1]} : vector<8x128xf32> to vector<8x32xf32>
    %732 = math.tanh %731 : vector<8x32xf32>
    %733 = vector.extract_strided_slice %730 {offsets = [0, 0], sizes = [8, 32], strides = [1, 1]} : vector<8x96xf32> to vector<8x32xf32>
    %734 = vector.extract_strided_slice %730 {offsets = [0, 32], sizes = [8, 32], strides = [1, 1]} : vector<8x96xf32> to vector<8x32xf32>
    %735 = vector.extract_strided_slice %730 {offsets = [0, 64], sizes = [8, 32], strides = [1, 1]} : vector<8x96xf32> to vector<8x32xf32>
    %736 = arith.mulf %734, %687 : vector<8x32xf32>
    %737 = arith.mulf %733, %732 : vector<8x32xf32>
    %738 = arith.addf %736, %737 : vector<8x32xf32>
    %739 = math.tanh %738 : vector<8x32xf32>
    %740 = arith.mulf %735, %739 : vector<8x32xf32>
    %741 = vector.extract_strided_slice %724 {offsets = [0, 0], sizes = [8, 96], strides = [1, 1]} : vector<8x128xf32> to vector<8x96xf32>
    %742 = arith.negf %741 : vector<8x96xf32>
    %743 = math.exp %742 : vector<8x96xf32>
    %cst_107 = arith.constant 1.000000e+00 : f32
    %744 = vector.broadcast %cst_107 : f32 to vector<8x96xf32>
    %745 = arith.addf %744, %743 : vector<8x96xf32>
    %746 = arith.divf %744, %745 : vector<8x96xf32>
    %747 = vector.extract_strided_slice %724 {offsets = [0, 96], sizes = [8, 32], strides = [1, 1]} : vector<8x128xf32> to vector<8x32xf32>
    %748 = math.tanh %747 : vector<8x32xf32>
    %749 = vector.extract_strided_slice %746 {offsets = [0, 0], sizes = [8, 32], strides = [1, 1]} : vector<8x96xf32> to vector<8x32xf32>
    %750 = vector.extract_strided_slice %746 {offsets = [0, 32], sizes = [8, 32], strides = [1, 1]} : vector<8x96xf32> to vector<8x32xf32>
    %751 = vector.extract_strided_slice %746 {offsets = [0, 64], sizes = [8, 32], strides = [1, 1]} : vector<8x96xf32> to vector<8x32xf32>
    %752 = arith.mulf %750, %703 : vector<8x32xf32>
    %753 = arith.mulf %749, %748 : vector<8x32xf32>
    %754 = arith.addf %752, %753 : vector<8x32xf32>
    %755 = math.tanh %754 : vector<8x32xf32>
    %756 = arith.mulf %751, %755 : vector<8x32xf32>
    %c8_i32_108 = arith.constant 8 : i32
    %757 = vector.broadcast %c8_i32_108 : i32 to vector<8x1xi32>
    %758 = arith.cmpi eq, %0, %757 : vector<8x1xi32>
    %759 = vector.shape_cast %758 : vector<8x1xi1> to vector<8x1xi1>
    %760 = vector.broadcast %759 : vector<8x1xi1> to vector<8x32xi1>
    %761 = arith.select %760, %740, %710 : vector<8x32xi1>, vector<8x32xf32>
    %c1_i32_109 = arith.constant 1 : i32
    %762 = vector.broadcast %c1_i32_109 : i32 to vector<8x1xi32>
    %763 = arith.cmpi eq, %0, %762 : vector<8x1xi32>
    %764 = vector.shape_cast %763 : vector<8x1xi1> to vector<8x1xi1>
    %765 = vector.broadcast %764 : vector<8x1xi1> to vector<8x32xi1>
    %766 = arith.select %765, %756, %715 : vector<8x32xi1>, vector<8x32xf32>
    %767 = tpu.concatenate %761, %766 in 1 : vector<8x32xf32>, vector<8x32xf32> -> vector<8x64xf32>
    %768 = tpu.concatenate %383, %756 in 1 : vector<8x32xf32>, vector<8x32xf32> -> vector<8x64xf32>
    %769 = tpu.concatenate %767, %768 in 0 : vector<8x64xf32>, vector<8x64xf32> -> vector<16x64xf32>
    %c0_110 = arith.constant 0 : index
    %c0_111 = arith.constant 0 : index
    %770 = vector.load %arg8[%c0_110, %c0_111] : memref<64x8xf32, #tpu.memory_space<vmem>>, vector<64x8xf32>
    %cst_112 = arith.constant dense<0.000000e+00> : vector<16x8xf32>
    %771 = tpu.matmul %769, %770, %cst_112 {dimension_numbers = #tpu.dot_dimension_numbers<[1], [0], [0], [1], [0, 0, 1, 1], [], []>} : vector<16x64xf32>, vector<64x8xf32>, vector<16x8xf32> -> vector<16x8xf32>
    %c0_113 = arith.constant 0 : index
    %c0_114 = arith.constant 0 : index
    %772 = vector.load %arg9[%c0_113, %c0_114] : memref<1x8xf32, #tpu.memory_space<vmem>>, vector<1x8xf32>
    %773 = vector.broadcast %772 : vector<1x8xf32> to vector<16x8xf32>
    %774 = arith.addf %771, %773 : vector<16x8xf32>
    %775 = vector.extract_strided_slice %774 {offsets = [0, 0], sizes = [8, 4], strides = [1, 1]} : vector<16x8xf32> to vector<8x4xf32>
    %776 = vector.extract_strided_slice %774 {offsets = [8, 4], sizes = [8, 4], strides = [1, 1]} : vector<16x8xf32> to vector<8x4xf32>
    %777 = tpu.concatenate %775, %776 in 1 : vector<8x4xf32>, vector<8x4xf32> -> vector<8x8xf32>
    %c0_115 = arith.constant 0 : index
    %c0_116 = arith.constant 0 : index
    %778 = vector.load %arg10[%c0_115, %c0_116] : memref<8x8xf32, #tpu.memory_space<vmem>>, vector<8x8xf32>
    tpu.vector_store %arg10[%c0_115, %c0_116], %777 {strides = array<i32>} : memref<8x8xf32, #tpu.memory_space<vmem>>, vector<8x8xf32>,
    return
  }
}

</mosaic_0001>

<bundles_post_ra>
// kernel: basic_lstm_forward.1
= control target key start
LH: loop header
LB: loop body
LE: loop exit
PB: predicated region body
PF: predicated region fallthrough
CT: control target
= control target key end

     0   :  { %15 = vsyncpa [#allocation3], 0  ;;  %s4399_s0 = inlined_call_operand.vmem [shape: s32[8,1], index: 0, kind: input, shape index: {}]   ;;  %s4400_s1 = inlined_call_operand.vmem [shape: f32[64,16], index: 1, kind: input, shape index: {}]   ;;  %s4401_s2 = inlined_call_operand.hbm [shape: f32[16,256], index: 2, kind: input, shape index: {}]   ;;  %s4402_s3 = inlined_call_operand.vmem [shape: f32[64,256], index: 3, kind: input, shape index: {}]   ;;  %s4403_s4 = inlined_call_operand.vmem [shape: f32[1,256], index: 4, kind: input, shape index: {}]   ;;  %s4404_s5 = inlined_call_operand.vmem [shape: f32[64,256], index: 5, kind: input, shape index: {}]   ;;  %s4405_s6 = inlined_call_operand.hbm [shape: f32[64,256], index: 6, kind: input, shape index: {}]   ;;  %s4406_s7 = inlined_call_operand.hbm [shape: f32[1,256], index: 7, kind: input, shape index: {}]   ;;  %s4407_s8 = inlined_call_operand.hbm [shape: f32[64,8], index: 8, kind: input, shape index: {}]   ;;  %s4408_s9 = inlined_call_operand.vmem [shape: f32[1,8], index: 9, kind: input, shape index: {}]   ;;  %s4409_s10 = inlined_call_operand.vmem [shape: f32[8,8], index: 10, kind: output, shape index: {}]  }
   0x1   :  { %16 = vsyncpa [#allocation5], 0 }
   0x2   :  { %17 = vsyncpa [#allocation8], 0  ;;  %s3509_s13 = smov [#allocation4]   ;;  %s3510_s15 = smov [#allocation2]  }
   0x3   :  { %s45_s14 = sshll.u32 %s3509_s13, 4  ;;  %s27_s16 = sshll.u32 %s3510_s15, 4  ;;  %s46_s14 = int_to_ptr.vmem [resolvable:$true] %s45_s14  ;;  %s3577_s16 = int_to_ptr.vmem [resolvable:$true] %s27_s16 }
   0x4   :  { %s3415_s19 = scalar_lea.hbm %s4405_s6, 2048 }
   0x5   :  { %p3416_p0 = scmp.ne.s32.totalorder %s4405_s6, %s3415_s19  ;;  %p3419_p1 = scmp.lt.u32.totalorder %s3415_s19, %s4405_s6 }
   0x7   :  { %p3421_p2 = pnand %p3419_p1, %p3416_p0 }
   0x9   :  { %3424 = shalt.err (!%p3421_p2)
}
   0xa   :  { %s3425_s24 = scalar_lea.vmem %s46_s14, 2048  ;;  %p3430_p4 = scmp.lt.s32.totalorder %s46_s14, %s46_s14 }
   0xb   :  { %p3426_p3 = scmp.ne.s32.totalorder %s46_s14, %s3425_s24  ;;  %p3431_p5 = scmp.lt.s32.totalorder %s3425_s24, %s3425_s24 }
   0xd   :  { %p3432_p6 = por %p3431_p5, %p3430_p4 }
   0xf   :  { %p3433_p7 = pnand %p3432_p6, %p3426_p3 }
  0x11   :  { %3436 = shalt.err (!%p3433_p7)
}
  0x12   :  { %s3511_s25 = smov 256   ;;  %s3512_s26 = smov 16  }
  0x13   :  { %51 = dma.hbm_to_vmem [thread:$0]  %s4405_s6, 2048, %s46_s14, [#allocation5], %s3511_s25, %s3511_s25, %s3512_s26  }
  0x14   :  { %s3437_s11 = scalar_lea.hbm %s4401_s2, 512 }
  0x15   :  { %p3438_p8 = scmp.ne.s32.totalorder %s4401_s2, %s3437_s11  ;;  %p3441_p9 = scmp.lt.u32.totalorder %s3437_s11, %s4401_s2 }
  0x17   :  { %p3443_p10 = pnand %p3441_p9, %p3438_p8 }
  0x19   :  { %3446 = shalt.err (!%p3443_p10)
}
  0x1a   :  { %s3447_s18 = scalar_lea.vmem %s3577_s16, 512  ;;  %p3452_p12 = scmp.lt.s32.totalorder %s3577_s16, %s3577_s16 }
  0x1b   :  { %p3448_p11 = scmp.ne.s32.totalorder %s3577_s16, %s3447_s18  ;;  %p3453_p13 = scmp.lt.s32.totalorder %s3447_s18, %s3447_s18 }
  0x1d   :  { %p3454_p0 = por %p3453_p13, %p3452_p12 }
  0x1f   :  { %p3455_p1 = pnand %p3454_p0, %p3448_p11 }
  0x21   :  { %3458 = shalt.err (!%p3455_p1)
}
  0x22   :  { %33 = dma.hbm_to_vmem [thread:$0]  %s4401_s2, 512, %s3577_s16, [#allocation3], %s3511_s25, %s3511_s25, %s3512_s26  }
  0x23   :  { %s3513_s19 = smov [#allocation6]   ;;  %s3514_s21 = smov [#allocation7]  }
  0x24   :  { %s58_s20 = sshll.u32 %s3513_s19, 4  ;;  %s67_s22 = sshll.u32 %s3514_s21, 4  ;;  %s59_s20 = int_to_ptr.vmem [resolvable:$true] %s58_s20  ;;  %s3608_s22 = int_to_ptr.vmem [resolvable:$true] %s67_s22 }
  0x25   :  { %s3459_s27 = scalar_lea.hbm %s4406_s7, 32 }
  0x26   :  { %p3460_p2 = scmp.ne.s32.totalorder %s4406_s7, %s3459_s27  ;;  %p3463_p3 = scmp.lt.u32.totalorder %s3459_s27, %s4406_s7 }
  0x28   :  { %p3465_p4 = pnand %p3463_p3, %p3460_p2 }
  0x2a   :  { %3468 = shalt.err (!%p3465_p4)
}
  0x2b   :  { %s3469_s2 = scalar_lea.vmem %s59_s20, 32  ;;  %p3474_p6 = scmp.lt.s32.totalorder %s59_s20, %s59_s20 }
  0x2c   :  { %p3470_p5 = scmp.ne.s32.totalorder %s59_s20, %s3469_s2  ;;  %p3475_p7 = scmp.lt.s32.totalorder %s3469_s2, %s3469_s2 }
  0x2e   :  { %p3476_p8 = por %p3475_p7, %p3474_p6 }
  0x30   :  { %p3477_p9 = pnand %p3476_p8, %p3470_p5 }
  0x32   :  { %3480 = shalt.err (!%p3477_p9)
}
  0x33   :  { %61 = dma.hbm_to_vmem [thread:$0]  %s4406_s7, 32, %s59_s20, [#allocation5]  }
  0x34   :  { %s3481_s13 = scalar_lea.hbm %s4407_s8, 1024 }
  0x35   :  { %p3482_p10 = scmp.ne.s32.totalorder %s4407_s8, %s3481_s13  ;;  %p3485_p11 = scmp.lt.u32.totalorder %s3481_s13, %s4407_s8 }
  0x37   :  { %p3487_p12 = pnand %p3485_p11, %p3482_p10 }
  0x39   :  { %3490 = shalt.err (!%p3487_p12)
}
  0x3a   :  { %s3491_s14 = scalar_lea.vmem %s3608_s22, 1024  ;;  %p3496_p0 = scmp.lt.s32.totalorder %s3608_s22, %s3608_s22 }
  0x3b   :  { %p3492_p13 = scmp.ne.s32.totalorder %s3608_s22, %s3491_s14  ;;  %p3497_p1 = scmp.lt.s32.totalorder %s3491_s14, %s3491_s14 }
  0x3d   :  { %p3498_p2 = por %p3497_p1, %p3496_p0 }
  0x3f   :  { %p3499_p3 = pnand %p3498_p2, %p3492_p13 }
  0x41   :  { %3502 = shalt.err (!%p3499_p3)
}
  0x42   :  { %s3515_s7 = smov 128   ;;  %s3516_s19 = smov 8  }
  0x43   :  { %73 = dma.hbm_to_vmem [thread:$0]  %s4407_s8, 1024, %s3608_s22, [#allocation8], %s3515_s7, %s3515_s7, %s3516_s19  }
  0x44   :  { %3503 = dma.done.wait [#allocation3], 512  }
  0x45   :  { %3504 = vsyncadd [#allocation3], 4294966784 }
  0x46   :  { %3505 = dma.done.wait [#allocation5], 2080  }
  0x47   :  { %3506 = vsyncadd [#allocation5], 4294965216 }
  0x48   :  { %3507 = dma.done.wait [#allocation8], 1024  }
  0x49   :  { %3508 = vsyncadd [#allocation8], 4294966272  ;;  %v3517_v0 = vmov 0.0   ;;  %v98_v1 = vld [vmem:[#allocation2 + $0x8] sm:$0xff]  ;;  %v100_v2 = vld [vmem:[#allocation2 + $0x18] sm:$0xff]  ;;  %vm113_vm0 = vcmask 130048   ;;  %v103_v39 = vlaneseq }
  0x4a   :  { %202 = vmatprep.mubr.f32.mxu0 %v3517_v0  ;;  %335 = vmatprep.mubr.f32.mxu1 %v3517_v0  ;;  %v252_v3 = vld [vmem:[%s4402_s3 + $0x8] sm:$0xff]  ;;  %v2852_v4 = vpack.c.bf16 %v100_v2, %v98_v1  ;;  %v254_v5 = vld [vmem:[%s4402_s3 + $0x18] sm:$0xff]  ;;  %v97_v6 = vld [vmem:[#allocation2] sm:$0xff]  ;;  %s3520_s24 = smov 96   ;;  %vm400_vm1 = vcmask 261120   ;;  %vm267_vm2 = vcmask 523264  }
  0x4b   :  { %v99_v7 = vld [vmem:[#allocation2 + $0x10] sm:$0xff]  ;;  %v3647_v8 = vpack.c.bf16 %v254_v5, %v252_v3  ;;  %v251_v10 = vld [vmem:[%s4402_s3] sm:$0xff]  ;;  %v256_v13 = vld [vmem:[%s4402_s3 + $0x28] sm:$0xff]  ;;  %v3773_v40 = vshrl.u32 %v103_v39, 7 }
  0x4c   :  { %v2854_v9 = vpack.c.bf16 %v99_v7, %v97_v6  ;;  %v253_v11 = vld [vmem:[%s4402_s3 + $0x10] sm:$0xff]  ;;  %2853 = vmatprep.subr.bf16.mxu0 %v2852_v4  ;;  %v258_v14 = vld [vmem:[%s4402_s3 + $0x38] sm:$0xff]  ;;  %v255_v15 = vld [vmem:[%s4402_s3 + $0x20] sm:$0xff] }
  0x4d   :  { %v3655_v12 = vpack.c.bf16 %v253_v11, %v251_v10  ;;  %2857 = vmatprep.subr.bf16.mxu1 %v3647_v8  ;;  %v89_v16 = vld [vmem:[%s4400_s1] sm:$0xff]  ;;  %v3670_v17 = vpack.c.bf16 %v258_v14, %v256_v13  ;;  %v257_v18 = vld [vmem:[%s4402_s3 + $0x30] sm:$0xff]  ;;  %v260_v19 = vld [vmem:[%s4402_s3 + $0x48] sm:$0xff]  ;;  %v109_v41 = vsub.s32 1, %v3773_v40  ;;  %v105_v44 = vsub.s32 0, %v3773_v40 }
  0x4e   :  { %2855 = vmatpush1.bf16.msra.mxu0 %v2854_v9  ;;  %v3679_v20 = vpack.c.bf16 %v257_v18, %v255_v15  ;;  %v262_v21 = vld [vmem:[%s4402_s3 + $0x58] sm:$0xff]  ;;  %v259_v23 = vld [vmem:[%s4402_s3 + $0x40] sm:$0xff]  ;;  %v261_v24 = vld [vmem:[%s4402_s3 + $0x50] sm:$0xff] }
  0x4f   :  { %2859 = vmatpush1.bf16.msra.mxu1 %v3655_v12  ;;  %2889 = vmatprep.subr.bf16.mxu0 %v3647_v8  ;;  %v3686_v22 = vpack.c.bf16 %v262_v21, %v260_v19  ;;  %v264_v25 = vld [vmem:[%s4402_s3 + $0x68] sm:$0xff]  ;;  %v266_v26 = vld [vmem:[%s4402_s3 + $0x78] sm:$0xff]  ;;  %v3707_v28 = vpack.c.bf16 %v261_v24, %v259_v23  ;;  %v263_v30 = vld [vmem:[%s4402_s3 + $0x60] sm:$0xff] }
  0x50   :  { %2861 = vmatprep.subr.bf16.mxu1 %v3670_v17  ;;  %v90_v27 = vld [vmem:[%s4400_s1 + $0x8] sm:$0xff]  ;;  %v3711_v29 = vpack.c.bf16 %v266_v26, %v264_v25  ;;  %v265_v31 = vld [vmem:[%s4402_s3 + $0x70] sm:$0xff]  ;;  %v92_v34 = vld [vmem:[%s4400_s1 + $0x18] sm:$0xff] }
  0x51   :  { %2758 = vmatmul.mubr.msk.f32.vlgmr.msra.gmra.mrb[0].mxu0 %vm113_vm0, %v89_v16  ;;  %v91_v32 = vld [vmem:[%s4400_s1 + $0x10] sm:$0xff]  ;;  %v3726_v33 = vpack.c.bf16 %v265_v31, %v263_v30  ;;  %v93_v35 = vld [vmem:[%s4400_s1 + $0x20] sm:$0xff]  ;;  %v94_v36 = vld [vmem:[%s4400_s1 + $0x28] sm:$0xff] }
  0x52   :  { %208 = vmatprep.mubr.f32.mxu0 %v3517_v0  ;;  %2891 = vmatpush1.bf16.msra.mxu0 %v3655_v12  ;;  %v95_v37 = vld [vmem:[%s4400_s1 + $0x30] sm:$0xff]  ;;  %v96_v38 = vld [vmem:[%s4400_s1 + $0x38] sm:$0xff]  ;;  %v101_v42 = vld [vmem:[%s4403_s4] sm:$0x3]  ;;  %s3518_s1 = smov 32   ;;  %s3519_s4 = smov 64  }
  0x53   :  { %2863 = vmatpush1.bf16.msra.mxu1 %v3679_v20  ;;  %2893 = vmatprep.subr.bf16.mxu0 %v3670_v17  ;;  %v110_v43 = vrot.slane %v101_v42, %v109_v41  ;;  %v106_v48 = vrot.slane %v101_v42, %v105_v44 }
  0x54   :  { %2865 = vmatprep.subr.bf16.mxu1 %v3686_v22 }
  0x55   :  { %2759 = vmatmul.mubr.msk.f32.gmra.mrb[2].mxu0 %vm113_vm0, %v90_v27 }
  0x56   :  { %214 = vmatprep.mubr.f32.mxu0 %v3517_v0  ;;  %2895 = vmatpush1.bf16.msra.mxu0 %v3679_v20 }
  0x57   :  { %2867 = vmatpush1.bf16.msra.mxu1 %v3707_v28  ;;  %2897 = vmatprep.subr.bf16.mxu0 %v3686_v22 }
  0x58   :  { %2869 = vmatprep.subr.bf16.mxu1 %v3711_v29 }
  0x59   :  { %2760 = vmatmul.mubr.msk.f32.gmra.mrb[4].mxu0 %vm113_vm0, %v91_v32 }
  0x5a   :  { %220 = vmatprep.mubr.f32.mxu0 %v3517_v0  ;;  %2899 = vmatpush1.bf16.msra.mxu0 %v3707_v28 }
  0x5b   :  { %2871 = vmatpush1.bf16.msra.mxu1 %v3726_v33  ;;  %2901 = vmatprep.subr.bf16.mxu0 %v3711_v29 }
  0x5c   :  { %2873 = vmatprep.subr.bf16.mxu1 %v3647_v8 }
  0x5d   :  { %2761 = vmatmul.mubr.msk.f32.gmra.mrb[6].mxu0 %vm113_vm0, %v92_v34 }
  0x5e   :  { %336 = vmatmul.mubr.f32.vlgmr.msra.gmra.mrb[0].mxu1 %v3517_v0  ;;  %226 = vmatprep.mubr.f32.mxu0 %v3517_v0 }
  0x5f   :  { %2875 = vmatpush1.bf16.msra.mxu1 %v3655_v12  ;;  %469 = vmatprep.mubr.f32.mxu1 %v3517_v0 }
  0x60   :  { %2877 = vmatprep.subr.bf16.mxu1 %v3670_v17  ;;  %2903 = vmatpush1.bf16.msra.mxu0 %v3726_v33 }
  0x61   :  { %2762 = vmatmul.mubr.msk.f32.gmra.mrb[8].mxu0 %vm113_vm0, %v93_v35  ;;  %2921 = vmatprep.subr.bf16.mxu0 %v3647_v8 }
  0x62   :  { %232 = vmatprep.mubr.f32.mxu0 %v3517_v0 }
  0x63   :  { %2879 = vmatpush1.bf16.msra.mxu1 %v3679_v20 }
  0x64   :  { %2881 = vmatprep.subr.bf16.mxu1 %v3686_v22 }
  0x65   :  { %2763 = vmatmul.mubr.msk.f32.gmra.mrb[10].mxu0 %vm113_vm0, %v94_v36 }
  0x66   :  { %238 = vmatprep.mubr.f32.mxu0 %v3517_v0 }
  0x67   :  { %2883 = vmatpush1.bf16.msra.mxu1 %v3707_v28 }
  0x68   :  { %2885 = vmatprep.subr.bf16.mxu1 %v3711_v29 }
  0x69   :  { %2764 = vmatmul.mubr.msk.f32.gmra.mrb[12].mxu0 %vm113_vm0, %v95_v37 }
  0x6a   :  { %244 = vmatprep.mubr.f32.mxu0 %v3517_v0 }
  0x6b   :  { %2887 = vmatpush1.bf16.msra.mxu1 %v3726_v33 }
  0x6c   :  { %2905 = vmatprep.subr.bf16.mxu1 %v3647_v8 }
  0x6d   :  { %2765 = vmatmul.mubr.msk.f32.gmra.mrb[14].mxu0 %vm113_vm0, %v96_v38 }
  0x6e   :  { %602 = vmatprep.mubr.f32.mxu0 %v3517_v0 }
 0x124   :  { %v204_v45 = vpop.f32.mrb[0].mxu0 }
 0x125   :  { %v206_v46 = vpop.f32.mrb[1].mxu0  ;;  %v205_v57 = vadd.f32 %v204_v45, %v106_v48 }
 0x126   :  { %v3782_v47 = vadd.f32 %v206_v46, %v110_v43 }
 0x128   :  { %v210_v49 = vpop.f32.mrb[2].mxu0 }
 0x129   :  { %v3786_v50 = vadd.f32 %v210_v49, %v106_v48  ;;  %v212_v51 = vpop.f32.mrb[3].mxu0 }
 0x12a   :  { %v3788_v52 = vadd.f32 %v212_v51, %v110_v43 }
 0x12c   :  { %v216_v53 = vpop.f32.mrb[4].mxu0 }
 0x12d   :  { %v3790_v54 = vadd.f32 %v216_v53, %v106_v48  ;;  %v218_v55 = vpop.f32.mrb[5].mxu0 }
 0x12e   :  { %v3792_v56 = vadd.f32 %v218_v55, %v110_v43 }
 0x130   :  { %v222_v58 = vpop.f32.mrb[6].mxu0 }
 0x131   :  { %v3794_v59 = vadd.f32 %v222_v58, %v106_v48  ;;  %v337_v60 = vpop.f32.mrb[0].mxu1  ;;  %v224_v61 = vpop.f32.mrb[7].mxu0 }
 0x132   :  { %v342_v62 = vadd.f32 %v337_v60, %v205_v57  ;;  %v3796_v63 = vadd.f32 %v224_v61, %v110_v43  ;;  %v339_v1 = vpop.f32.mrb[1].mxu1 }
 0x134   :  { %3159 = vtanh.f32 %v342_v62  ;;  %v228_v2 = vpop.f32.mrb[8].mxu0  ;;  %v2766_v26 = vmul.f32 -1.442695, %v342_v62 }
 0x135   :  { %v3798_v3 = vadd.f32 %v228_v2, %v106_v48  ;;  %v230_v4 = vpop.f32.mrb[9].mxu0 }
 0x136   :  { %v3800_v5 = vadd.f32 %v230_v4, %v110_v43 }
 0x138   :  { %v234_v6 = vpop.f32.mrb[10].mxu0 }
 0x139   :  { %v3802_v7 = vadd.f32 %v234_v6, %v106_v48  ;;  %v236_v9 = vpop.f32.mrb[11].mxu0 }
 0x13a   :  { %v3804_v10 = vadd.f32 %v236_v9, %v110_v43 }
 0x13c   :  { %v240_v11 = vpop.f32.mrb[12].mxu0 }
 0x13d   :  { %v3806_v13 = vadd.f32 %v240_v11, %v106_v48  ;;  %v242_v14 = vpop.f32.mrb[13].mxu0 }
 0x13e   :  { %v3160_v15 = vpop.eup %3159  ;;  %v3808_v16 = vadd.f32 %v242_v14, %v110_v43 }
 0x13f   :  { %353 = vrot.lane.b32.xlu0 %v3160_v15, %s3518_s1 }
 0x140   :  { %v246_v18 = vpop.f32.mrb[14].mxu0 }
 0x141   :  { %v3811_v19 = vadd.f32 %v246_v18, %v106_v48  ;;  %v248_v21 = vpop.f32.mrb[15].mxu0 }
 0x142   :  { %v249_v23 = vadd.f32 %v248_v21, %v110_v43 }
 0x144   :  { %v343_v24 = vadd.f32 %v339_v1, %v249_v23 }
 0x146   :  { %3161 = vtanh.f32 %v343_v24  ;;  %v2767_v31 = vmul.f32 -1.442695, %v343_v24 }
 0x147   :  { %3163 = vpow2.f32 %v2766_v26 }
 0x150   :  { %v3162_v25 = vpop.eup %3161 }
 0x151   :  { %377 = vrot.lane.b32.xlu0 %v3162_v25, %s3518_s1  ;;  %v3164_v27 = vpop.eup %3163 }
 0x152   :  { %v347_v30 = vadd.f32 1.0, %v3164_v27 }
 0x154   :  { %3165 = vrcp.f32 %v347_v30 }
 0x155   :  { %3167 = vpow2.f32 %v2767_v31 }
 0x15e   :  { %v3166_v32 = vpop.eup %3165 }
 0x15f   :  { %v3168_v35 = vpop.eup %3167  ;;  %v351_v43 = vmul.f32 0.0, %v3166_v32 }
 0x160   :  { %v371_v37 = vadd.f32 1.0, %v3168_v35 }
 0x162   :  { %3169 = vrcp.f32 %v371_v37 }
 0x16c   :  { %v3170_v38 = vpop.eup %3169 }
 0x16d   :  { %v375_v49 = vmul.f32 0.0, %v3170_v38 }
 0x1b1   :  { %v354_v34 = vpop.permute.xlu0 %353 }
 0x1b2   :  { %v356_v36 = vmul.f32 %v3166_v32, %v354_v34 }
 0x1b4   :  { %358 = vrot.lane.b32.xlu1 %v356_v36, %s3518_s1 }
 0x1c3   :  { %v378_v39 = vpop.permute.xlu0 %377 }
 0x1c4   :  { %v380_v42 = vmul.f32 %v3170_v38, %v378_v39 }
 0x1c6   :  { %382 = vrot.lane.b32.xlu1 %v380_v42, %s3518_s1 }
 0x226   :  { %v359_v45 = vpop.permute.xlu1 %358 }
 0x227   :  { %v361_v46 = vadd.f32 %v359_v45, %v351_v43 }
 0x229   :  { %3171 = vtanh.f32 %v361_v46 }
 0x233   :  { %v3172_v48 = vpop.eup %3171 }
 0x234   :  { %364 = vrot.lane.b32.xlu0 %v3172_v48, %s3518_s1 }
 0x238   :  { %v383_v51 = vpop.permute.xlu1 %382 }
 0x239   :  { %v385_v53 = vadd.f32 %v383_v51, %v375_v49 }
 0x23b   :  { %3173 = vtanh.f32 %v385_v53 }
 0x245   :  { %v3174_v55 = vpop.eup %3173 }
 0x246   :  { %388 = vrot.lane.b32.xlu1 %v3174_v55, %s3518_s1 }
 0x2a6   :  { %v365_v57 = vpop.permute.xlu0 %364 }
 0x2a7   :  { %v367_v58 = vmul.f32 %v3166_v32, %v365_v57 }
 0x2a9   :  { %393 = vrot.lane.b32.xlu0 %v367_v58, %s3519_s4 }
 0x2b8   :  { %v389_v60 = vpop.permute.xlu1 %388 }
 0x2b9   :  { %v391_v61 = vmul.f32 %v3170_v38, %v389_v60 }
 0x2bb   :  { %397 = vrot.lane.b32.xlu1 %v391_v61, %s3520_s24 }
 0x31b   :  { %v3820_v62 = vpop.permute.xlu0 %393 }
 0x32d   :  { %v3822_v1 = vpop.permute.xlu1 %397 }
 0x32e   :  { %v401_v2 = vsel %vm400_vm1, %v3820_v62, %v3822_v1 }
 0x32f   :  { %2768 = vmatmul.mubr.msk.f32.vlgmr.msra.gmra.mrb[2].mxu1 %vm267_vm2, %v401_v2 }
 0x330   :  { %2907 = vmatpush1.bf16.msra.mxu1 %v3655_v12  ;;  %735 = vmatprep.mubr.f32.mxu1 %v3517_v0 }
 0x331   :  { %2909 = vmatprep.subr.bf16.mxu1 %v3670_v17 }
 0x334   :  { %2911 = vmatpush1.bf16.msra.mxu1 %v3679_v20 }
 0x335   :  { %2913 = vmatprep.subr.bf16.mxu1 %v3686_v22 }
 0x338   :  { %2915 = vmatpush1.bf16.msra.mxu1 %v3707_v28 }
 0x339   :  { %2917 = vmatprep.subr.bf16.mxu1 %v3711_v29 }
 0x33c   :  { %2919 = vmatpush1.bf16.msra.mxu1 %v3726_v33 }
 0x33d   :  { %2937 = vmatprep.subr.bf16.mxu1 %v3647_v8 }
 0x402   :  { %v471_v4 = vpop.f32.mrb[2].mxu1 }
 0x403   :  { %v476_v6 = vadd.f32 %v471_v4, %v3786_v50  ;;  %v473_v9 = vpop.f32.mrb[3].mxu1 }
 0x404   :  { %v477_v11 = vadd.f32 %v473_v9, %v3808_v16 }
 0x405   :  { %3175 = vtanh.f32 %v476_v6  ;;  %v2769_v18 = vmul.f32 -1.442695, %v476_v6 }
 0x406   :  { %3177 = vtanh.f32 %v477_v11  ;;  %v2770_v21 = vmul.f32 -1.442695, %v477_v11 }
 0x407   :  { %3179 = vpow2.f32 %v2769_v18 }
 0x408   :  { %3181 = vpow2.f32 %v2770_v21 }
 0x40f   :  { %v3176_v14 = vpop.eup %3175 }
 0x410   :  { %v3178_v15 = vpop.eup %3177  ;;  %487 = vrot.lane.b32.xlu0 %v3176_v14, %s3518_s1 }
 0x411   :  { %511 = vrot.lane.b32.xlu1 %v3178_v15, %s3518_s1  ;;  %v3180_v23 = vpop.eup %3179 }
 0x412   :  { %v3182_v24 = vpop.eup %3181  ;;  %v481_v25 = vadd.f32 1.0, %v3180_v23 }
 0x413   :  { %v505_v26 = vadd.f32 1.0, %v3182_v24 }
 0x414   :  { %3183 = vrcp.f32 %v481_v25 }
 0x415   :  { %3185 = vrcp.f32 %v505_v26 }
 0x41e   :  { %v3184_v50 = vpop.eup %3183 }
 0x41f   :  { %v3186_v27 = vpop.eup %3185  ;;  %v485_v34 = vmul.f32 %v3184_v50, %v361_v46 }
 0x420   :  { %v509_v36 = vmul.f32 %v3186_v27, %v385_v53 }
 0x482   :  { %v488_v16 = vpop.permute.xlu0 %487 }
 0x483   :  { %v490_v30 = vmul.f32 %v3184_v50, %v488_v16  ;;  %v512_v31 = vpop.permute.xlu1 %511 }
 0x484   :  { %v514_v32 = vmul.f32 %v3186_v27, %v512_v31 }
 0x485   :  { %492 = vrot.lane.b32.xlu0 %v490_v30, %s3518_s1 }
 0x486   :  { %516 = vrot.lane.b32.xlu1 %v514_v32, %s3518_s1 }
 0x4f7   :  { %v493_v35 = vpop.permute.xlu0 %492 }
 0x4f8   :  { %v495_v37 = vadd.f32 %v493_v35, %v485_v34  ;;  %v517_v38 = vpop.permute.xlu1 %516 }
 0x4f9   :  { %v519_v39 = vadd.f32 %v517_v38, %v509_v36 }
 0x4fa   :  { %3187 = vtanh.f32 %v495_v37 }
 0x4fb   :  { %3189 = vtanh.f32 %v519_v39 }
 0x504   :  { %v3188_v42 = vpop.eup %3187 }
 0x505   :  { %v3190_v43 = vpop.eup %3189  ;;  %498 = vrot.lane.b32.xlu0 %v3188_v42, %s3518_s1 }
 0x506   :  { %522 = vrot.lane.b32.xlu1 %v3190_v43, %s3518_s1 }
 0x577   :  { %v499_v45 = vpop.permute.xlu0 %498 }
 0x578   :  { %v501_v48 = vmul.f32 %v3184_v50, %v499_v45  ;;  %v523_v49 = vpop.permute.xlu1 %522 }
 0x579   :  { %v525_v51 = vmul.f32 %v3186_v27, %v523_v49 }
 0x57a   :  { %527 = vrot.lane.b32.xlu0 %v501_v48, %s3519_s4 }
 0x57b   :  { %531 = vrot.lane.b32.xlu1 %v525_v51, %s3520_s24 }
 0x5ec   :  { %v3847_v46 = vpop.permute.xlu0 %527 }
 0x5ed   :  { %v3849_v53 = vpop.permute.xlu1 %531 }
 0x5ee   :  { %v534_v55 = vsel %vm400_vm1, %v3847_v46, %v3849_v53 }
 0x5ef   :  { %2771 = vmatmul.mubr.msk.f32.vlgmr.msra.gmra.mrb[16].mxu0 %vm267_vm2, %v534_v55 }
 0x5f0   :  { %2923 = vmatpush1.bf16.msra.mxu0 %v3655_v12  ;;  %868 = vmatprep.mubr.f32.mxu0 %v3517_v0 }
 0x5f1   :  { %2925 = vmatprep.subr.bf16.mxu0 %v3670_v17 }
 0x5f4   :  { %2927 = vmatpush1.bf16.msra.mxu0 %v3679_v20 }
 0x5f5   :  { %2929 = vmatprep.subr.bf16.mxu0 %v3686_v22 }
 0x5f8   :  { %2931 = vmatpush1.bf16.msra.mxu0 %v3707_v28 }
 0x5f9   :  { %2933 = vmatprep.subr.bf16.mxu0 %v3711_v29 }
 0x5fc   :  { %2935 = vmatpush1.bf16.msra.mxu0 %v3726_v33 }
 0x5fd   :  { %2953 = vmatprep.subr.bf16.mxu0 %v3647_v8 }
 0x6c2   :  { %v604_v57 = vpop.f32.mrb[16].mxu0 }
 0x6c3   :  { %v609_v58 = vadd.f32 %v604_v57, %v3790_v54  ;;  %v606_v60 = vpop.f32.mrb[17].mxu0 }
 0x6c4   :  { %v610_v61 = vadd.f32 %v606_v60, %v3804_v10 }
 0x6c5   :  { %3191 = vtanh.f32 %v609_v58  ;;  %v2772_v6 = vmul.f32 -1.442695, %v609_v58 }
 0x6c6   :  { %3193 = vtanh.f32 %v610_v61  ;;  %v2773_v9 = vmul.f32 -1.442695, %v610_v61 }
 0x6c7   :  { %3195 = vpow2.f32 %v2772_v6 }
 0x6c8   :  { %3197 = vpow2.f32 %v2773_v9 }
 0x6cf   :  { %v3192_v2 = vpop.eup %3191 }
 0x6d0   :  { %v3194_v4 = vpop.eup %3193  ;;  %620 = vrot.lane.b32.xlu0 %v3192_v2, %s3518_s1 }
 0x6d1   :  { %644 = vrot.lane.b32.xlu1 %v3194_v4, %s3518_s1  ;;  %v3196_v11 = vpop.eup %3195 }
 0x6d2   :  { %v3198_v14 = vpop.eup %3197  ;;  %v614_v15 = vadd.f32 1.0, %v3196_v11 }
 0x6d3   :  { %v638_v18 = vadd.f32 1.0, %v3198_v14 }
 0x6d4   :  { %3199 = vrcp.f32 %v614_v15 }
 0x6d5   :  { %3201 = vrcp.f32 %v638_v18 }
 0x6de   :  { %v3200_v54 = vpop.eup %3199 }
 0x6df   :  { %v3202_v21 = vpop.eup %3201  ;;  %v618_v26 = vmul.f32 %v3200_v54, %v495_v37 }
 0x6e0   :  { %v642_v16 = vmul.f32 %v3202_v21, %v519_v39 }
 0x742   :  { %v621_v10 = vpop.permute.xlu0 %620 }
 0x743   :  { %v623_v23 = vmul.f32 %v3200_v54, %v621_v10  ;;  %v645_v24 = vpop.permute.xlu1 %644 }
 0x744   :  { %v647_v25 = vmul.f32 %v3202_v21, %v645_v24 }
 0x745   :  { %625 = vrot.lane.b32.xlu0 %v623_v23, %s3518_s1 }
 0x746   :  { %649 = vrot.lane.b32.xlu1 %v647_v25, %s3518_s1 }
 0x7b7   :  { %v626_v50 = vpop.permute.xlu0 %625 }
 0x7b8   :  { %v628_v27 = vadd.f32 %v626_v50, %v618_v26  ;;  %v650_v30 = vpop.permute.xlu1 %649 }
 0x7b9   :  { %v652_v31 = vadd.f32 %v650_v30, %v642_v16 }
 0x7ba   :  { %3203 = vtanh.f32 %v628_v27 }
 0x7bb   :  { %3205 = vtanh.f32 %v652_v31 }
 0x7c4   :  { %v3204_v32 = vpop.eup %3203 }
 0x7c5   :  { %v3206_v34 = vpop.eup %3205  ;;  %631 = vrot.lane.b32.xlu0 %v3204_v32, %s3518_s1 }
 0x7c6   :  { %655 = vrot.lane.b32.xlu1 %v3206_v34, %s3518_s1 }
 0x837   :  { %v632_v35 = vpop.permute.xlu0 %631 }
 0x838   :  { %v634_v36 = vmul.f32 %v3200_v54, %v632_v35  ;;  %v656_v38 = vpop.permute.xlu1 %655 }
 0x839   :  { %v658_v42 = vmul.f32 %v3202_v21, %v656_v38 }
 0x83a   :  { %660 = vrot.lane.b32.xlu0 %v634_v36, %s3519_s4 }
 0x83b   :  { %664 = vrot.lane.b32.xlu1 %v658_v42, %s3520_s24 }
 0x8ac   :  { %v3874_v37 = vpop.permute.xlu0 %660 }
 0x8ad   :  { %v3876_v39 = vpop.permute.xlu1 %664 }
 0x8ae   :  { %v667_v43 = vsel %vm400_vm1, %v3874_v37, %v3876_v39 }
 0x8af   :  { %2774 = vmatmul.mubr.msk.f32.vlgmr.msra.gmra.mrb[4].mxu1 %vm267_vm2, %v667_v43 }
 0x8b0   :  { %2939 = vmatpush1.bf16.msra.mxu1 %v3655_v12  ;;  %1001 = vmatprep.mubr.f32.mxu1 %v3517_v0 }
 0x8b1   :  { %2941 = vmatprep.subr.bf16.mxu1 %v3670_v17 }
 0x8b4   :  { %2943 = vmatpush1.bf16.msra.mxu1 %v3679_v20 }
 0x8b5   :  { %2945 = vmatprep.subr.bf16.mxu1 %v3686_v22 }
 0x8b8   :  { %2947 = vmatpush1.bf16.msra.mxu1 %v3707_v28 }
 0x8b9   :  { %2949 = vmatprep.subr.bf16.mxu1 %v3711_v29 }
 0x8bc   :  { %2951 = vmatpush1.bf16.msra.mxu1 %v3726_v33 }
 0x8bd   :  { %2969 = vmatprep.subr.bf16.mxu1 %v3647_v8 }
 0x982   :  { %v737_v45 = vpop.f32.mrb[4].mxu1 }
 0x983   :  { %v742_v48 = vadd.f32 %v737_v45, %v3794_v59  ;;  %v739_v49 = vpop.f32.mrb[5].mxu1 }
 0x984   :  { %v743_v51 = vadd.f32 %v739_v49, %v3800_v5 }
 0x985   :  { %3207 = vtanh.f32 %v742_v48  ;;  %v2775_v58 = vmul.f32 -1.442695, %v742_v48 }
 0x986   :  { %3209 = vtanh.f32 %v743_v51  ;;  %v2776_v60 = vmul.f32 -1.442695, %v743_v51 }
 0x987   :  { %3211 = vpow2.f32 %v2775_v58 }
 0x988   :  { %3213 = vpow2.f32 %v2776_v60 }
 0x98f   :  { %v3208_v55 = vpop.eup %3207 }
 0x990   :  { %v3210_v57 = vpop.eup %3209  ;;  %753 = vrot.lane.b32.xlu0 %v3208_v55, %s3518_s1 }
 0x991   :  { %777 = vrot.lane.b32.xlu1 %v3210_v57, %s3518_s1  ;;  %v3212_v61 = vpop.eup %3211 }
 0x992   :  { %v3214_v8 = vpop.eup %3213  ;;  %v747_v2 = vadd.f32 1.0, %v3212_v61 }
 0x993   :  { %v771_v4 = vadd.f32 1.0, %v3214_v8 }
 0x994   :  { %3215 = vrcp.f32 %v747_v2 }
 0x995   :  { %3217 = vrcp.f32 %v771_v4 }
 0x99e   :  { %v3216_v59 = vpop.eup %3215 }
 0x99f   :  { %v3218_v6 = vpop.eup %3217  ;;  %v751_v15 = vmul.f32 %v3216_v59, %v628_v27 }
 0x9a0   :  { %v775_v54 = vmul.f32 %v3218_v6, %v652_v31 }
 0xa02   :  { %v754_v5 = vpop.permute.xlu0 %753 }
 0xa03   :  { %v756_v9 = vmul.f32 %v3216_v59, %v754_v5  ;;  %v778_v11 = vpop.permute.xlu1 %777 }
 0xa04   :  { %v780_v14 = vmul.f32 %v3218_v6, %v778_v11 }
 0xa05   :  { %758 = vrot.lane.b32.xlu0 %v756_v9, %s3518_s1 }
 0xa06   :  { %782 = vrot.lane.b32.xlu1 %v780_v14, %s3518_s1 }
 0xa77   :  { %v759_v18 = vpop.permute.xlu0 %758 }
 0xa78   :  { %v761_v10 = vadd.f32 %v759_v18, %v751_v15  ;;  %v783_v21 = vpop.permute.xlu1 %782 }
 0xa79   :  { %v785_v23 = vadd.f32 %v783_v21, %v775_v54 }
 0xa7a   :  { %3219 = vtanh.f32 %v761_v10 }
 0xa7b   :  { %3221 = vtanh.f32 %v785_v23 }
 0xa84   :  { %v3220_v24 = vpop.eup %3219 }
 0xa85   :  { %v3222_v25 = vpop.eup %3221  ;;  %764 = vrot.lane.b32.xlu0 %v3220_v24, %s3518_s1 }
 0xa86   :  { %788 = vrot.lane.b32.xlu1 %v3222_v25, %s3518_s1 }
 0xaf7   :  { %v765_v26 = vpop.permute.xlu0 %764 }
 0xaf8   :  { %v767_v50 = vmul.f32 %v3216_v59, %v765_v26  ;;  %v789_v16 = vpop.permute.xlu1 %788 }
 0xaf9   :  { %v791_v30 = vmul.f32 %v3218_v6, %v789_v16 }
 0xafa   :  { %793 = vrot.lane.b32.xlu0 %v767_v50, %s3519_s4 }
 0xafb   :  { %797 = vrot.lane.b32.xlu1 %v791_v30, %s3520_s24 }
 0xb6c   :  { %v3901_v27 = vpop.permute.xlu0 %793 }
 0xb6d   :  { %v3903_v31 = vpop.permute.xlu1 %797 }
 0xb6e   :  { %v800_v32 = vsel %vm400_vm1, %v3901_v27, %v3903_v31 }
 0xb6f   :  { %2777 = vmatmul.mubr.msk.f32.vlgmr.msra.gmra.mrb[18].mxu0 %vm267_vm2, %v800_v32 }
 0xb70   :  { %2955 = vmatpush1.bf16.msra.mxu0 %v3655_v12  ;;  %1134 = vmatprep.mubr.f32.mxu0 %v3517_v0 }
 0xb71   :  { %2957 = vmatprep.subr.bf16.mxu0 %v3670_v17 }
 0xb74   :  { %2959 = vmatpush1.bf16.msra.mxu0 %v3679_v20 }
 0xb75   :  { %2961 = vmatprep.subr.bf16.mxu0 %v3686_v22 }
 0xb78   :  { %2963 = vmatpush1.bf16.msra.mxu0 %v3707_v28 }
 0xb79   :  { %2965 = vmatprep.subr.bf16.mxu0 %v3711_v29 }
 0xb7c   :  { %2967 = vmatpush1.bf16.msra.mxu0 %v3726_v33 }
 0xc42   :  { %v870_v34 = vpop.f32.mrb[18].mxu0 }
 0xc43   :  { %v875_v35 = vadd.f32 %v870_v34, %v3798_v3  ;;  %v872_v36 = vpop.f32.mrb[19].mxu0 }
 0xc44   :  { %v876_v38 = vadd.f32 %v872_v36, %v3796_v63 }
 0xc45   :  { %3223 = vtanh.f32 %v875_v35  ;;  %v2778_v45 = vmul.f32 -1.442695, %v875_v35 }
 0xc46   :  { %3225 = vtanh.f32 %v876_v38  ;;  %v2779_v48 = vmul.f32 -1.442695, %v876_v38 }
 0xc47   :  { %3227 = vpow2.f32 %v2778_v45 }
 0xc48   :  { %3229 = vpow2.f32 %v2779_v48 }
 0xc4f   :  { %v3224_v42 = vpop.eup %3223 }
 0xc50   :  { %v3226_v43 = vpop.eup %3225  ;;  %886 = vrot.lane.b32.xlu0 %v3224_v42, %s3518_s1 }
 0xc51   :  { %910 = vrot.lane.b32.xlu1 %v3226_v43, %s3518_s1  ;;  %v3228_v49 = vpop.eup %3227 }
 0xc52   :  { %v3230_v51 = vpop.eup %3229  ;;  %v880_v55 = vadd.f32 1.0, %v3228_v49 }
 0xc53   :  { %v904_v57 = vadd.f32 1.0, %v3230_v51 }
 0xc54   :  { %3231 = vrcp.f32 %v880_v55 }
 0xc55   :  { %3233 = vrcp.f32 %v904_v57 }
 0xc5e   :  { %v3232_v3 = vpop.eup %3231 }
 0xc5f   :  { %v3234_v58 = vpop.eup %3233  ;;  %v884_v2 = vmul.f32 %v3232_v3, %v761_v10 }
 0xc60   :  { %v908_v59 = vmul.f32 %v3234_v58, %v785_v23 }
 0xcc2   :  { %v887_v63 = vpop.permute.xlu0 %886 }
 0xcc3   :  { %v889_v60 = vmul.f32 %v3232_v3, %v887_v63  ;;  %v911_v61 = vpop.permute.xlu1 %910 }
 0xcc4   :  { %v913_v8 = vmul.f32 %v3234_v58, %v911_v61 }
 0xcc5   :  { %891 = vrot.lane.b32.xlu0 %v889_v60, %s3518_s1 }
 0xcc6   :  { %915 = vrot.lane.b32.xlu1 %v913_v8, %s3518_s1 }
 0xd37   :  { %v892_v4 = vpop.permute.xlu0 %891 }
 0xd38   :  { %v894_v5 = vadd.f32 %v892_v4, %v884_v2  ;;  %v916_v6 = vpop.permute.xlu1 %915 }
 0xd39   :  { %v918_v9 = vadd.f32 %v916_v6, %v908_v59 }
 0xd3a   :  { %3235 = vtanh.f32 %v894_v5 }
 0xd3b   :  { %3237 = vtanh.f32 %v918_v9 }
 0xd44   :  { %v3236_v11 = vpop.eup %3235 }
 0xd45   :  { %v3238_v14 = vpop.eup %3237  ;;  %897 = vrot.lane.b32.xlu0 %v3236_v11, %s3518_s1 }
 0xd46   :  { %921 = vrot.lane.b32.xlu1 %v3238_v14, %s3518_s1 }
 0xdb7   :  { %v898_v15 = vpop.permute.xlu0 %897 }
 0xdb8   :  { %v900_v18 = vmul.f32 %v3232_v3, %v898_v15  ;;  %v922_v54 = vpop.permute.xlu1 %921 }
 0xdb9   :  { %v924_v21 = vmul.f32 %v3234_v58, %v922_v54 }
 0xdba   :  { %926 = vrot.lane.b32.xlu0 %v900_v18, %s3519_s4 }
 0xdbb   :  { %930 = vrot.lane.b32.xlu1 %v924_v21, %s3520_s24 }
 0xe2c   :  { %v3927_v10 = vpop.permute.xlu0 %926 }
 0xe2d   :  { %v3929_v23 = vpop.permute.xlu1 %930 }
 0xe2e   :  { %v933_v24 = vsel %vm400_vm1, %v3927_v10, %v3929_v23 }
 0xe2f   :  { %2780 = vmatmul.mubr.msk.f32.vlgmr.msra.gmra.mrb[6].mxu1 %vm267_vm2, %v933_v24 }
 0xe30   :  { %2971 = vmatpush1.bf16.msra.mxu1 %v3655_v12  ;;  %1267 = vmatprep.mubr.f32.mxu1 %v3517_v0 }
 0xe31   :  { %2973 = vmatprep.subr.bf16.mxu1 %v3670_v17 }
 0xe34   :  { %2975 = vmatpush1.bf16.msra.mxu1 %v3679_v20 }
 0xe35   :  { %2977 = vmatprep.subr.bf16.mxu1 %v3686_v22 }
 0xe38   :  { %2979 = vmatpush1.bf16.msra.mxu1 %v3707_v28 }
 0xe39   :  { %2981 = vmatprep.subr.bf16.mxu1 %v3711_v29 }
 0xe3c   :  { %2983 = vmatpush1.bf16.msra.mxu1 %v3726_v33 }
 0xf02   :  { %v1003_v25 = vpop.f32.mrb[6].mxu1 }
 0xf03   :  { %v1008_v26 = vadd.f32 %v1003_v25, %v3802_v7  ;;  %v1005_v50 = vpop.f32.mrb[7].mxu1 }
 0xf04   :  { %v1009_v12 = vadd.f32 %v1005_v50, %v3792_v56 }
 0xf05   :  { %3239 = vtanh.f32 %v1008_v26  ;;  %v2781_v20 = vmul.f32 -1.442695, %v1008_v26 }
 0xf06   :  { %3241 = vtanh.f32 %v1009_v12  ;;  %v2782_v22 = vmul.f32 -1.442695, %v1009_v12 }
 0xf07   :  { %3243 = vpow2.f32 %v2781_v20 }
 0xf08   :  { %3245 = vpow2.f32 %v2782_v22 }
 0xf0f   :  { %v3240_v16 = vpop.eup %3239 }
 0xf10   :  { %v3242_v17 = vpop.eup %3241  ;;  %1019 = vrot.lane.b32.xlu0 %v3240_v16, %s3518_s1 }
 0xf11   :  { %1043 = vrot.lane.b32.xlu1 %v3242_v17, %s3518_s1  ;;  %v3244_v28 = vpop.eup %3243 }
 0xf12   :  { %v3246_v29 = vpop.eup %3245  ;;  %v1013_v33 = vadd.f32 1.0, %v3244_v28 }
 0xf13   :  { %v1037_v30 = vadd.f32 1.0, %v3246_v29 }
 0xf14   :  { %3247 = vrcp.f32 %v1013_v33 }
 0xf15   :  { %3249 = vrcp.f32 %v1037_v30 }
 0xf1e   :  { %v3248_v7 = vpop.eup %3247 }
 0xf1f   :  { %v3250_v32 = vpop.eup %3249  ;;  %v1017_v38 = vmul.f32 %v3248_v7, %v894_v5 }
 0xf20   :  { %v1041_v43 = vmul.f32 %v3250_v32, %v918_v9 }
 0xf82   :  { %v1020_v56 = vpop.permute.xlu0 %1019 }
 0xf83   :  { %v1022_v34 = vmul.f32 %v3248_v7, %v1020_v56  ;;  %v1044_v35 = vpop.permute.xlu1 %1043 }
 0xf84   :  { %v1046_v36 = vmul.f32 %v3250_v32, %v1044_v35 }
 0xf85   :  { %1024 = vrot.lane.b32.xlu0 %v1022_v34, %s3518_s1 }
 0xf86   :  { %1048 = vrot.lane.b32.xlu1 %v1046_v36, %s3518_s1 }
 0xff7   :  { %v1025_v42 = vpop.permute.xlu0 %1024 }
 0xff8   :  { %v1027_v45 = vadd.f32 %v1025_v42, %v1017_v38  ;;  %v1049_v48 = vpop.permute.xlu1 %1048 }
 0xff9   :  { %v1051_v49 = vadd.f32 %v1049_v48, %v1041_v43 }
 0xffa   :  { %3251 = vtanh.f32 %v1027_v45 }
 0xffb   :  { %3253 = vtanh.f32 %v1051_v49 }
0x1004   :  { %v3252_v51 = vpop.eup %3251 }
0x1005   :  { %v3254_v55 = vpop.eup %3253  ;;  %1030 = vrot.lane.b32.xlu0 %v3252_v51, %s3518_s1 }
0x1006   :  { %1054 = vrot.lane.b32.xlu1 %v3254_v55, %s3518_s1 }
0x1077   :  { %v1031_v57 = vpop.permute.xlu0 %1030 }
0x1078   :  { %v1033_v3 = vmul.f32 %v3248_v7, %v1031_v57  ;;  %v1055_v63 = vpop.permute.xlu1 %1054 }
0x1079   :  { %v1057_v58 = vmul.f32 %v3250_v32, %v1055_v63 }
0x107a   :  { %1059 = vrot.lane.b32.xlu0 %v1033_v3, %s3519_s4 }
0x107b   :  { %1063 = vrot.lane.b32.xlu1 %v1057_v58, %s3520_s24 }
0x10ec   :  { %v3953_v60 = vpop.permute.xlu0 %1059 }
0x10ed   :  { %v3955_v61 = vpop.permute.xlu1 %1063 }
0x10ee   :  { %v1066_v8 = vsel %vm400_vm1, %v3953_v60, %v3955_v61 }
0x10ef   :  { %2783 = vmatmul.mubr.msk.f32.vlgmr.msra.gmra.mrb[20].mxu0 %vm267_vm2, %v1066_v8 }
0x10f0   :  { %1456 = vmatprep.mubr.f32.mxu0 %v3517_v0 }
0x11c2   :  { %v1136_v2 = vpop.f32.mrb[20].mxu0 }
0x11c3   :  { %v1141_v4 = vadd.f32 %v1136_v2, %v3806_v13  ;;  %v1138_v59 = vpop.f32.mrb[21].mxu0 }
0x11c4   :  { %v1142_v5 = vadd.f32 %v1138_v59, %v3788_v52 }
0x11c5   :  { %3255 = vtanh.f32 %v1141_v4  ;;  %v2784_v11 = vmul.f32 -1.442695, %v1141_v4 }
0x11c6   :  { %3257 = vtanh.f32 %v1142_v5  ;;  %v2785_v14 = vmul.f32 -1.442695, %v1142_v5 }
0x11c7   :  { %3259 = vpow2.f32 %v2784_v11 }
0x11c8   :  { %3261 = vpow2.f32 %v2785_v14 }
0x11cf   :  { %v3256_v6 = vpop.eup %3255 }
0x11d0   :  { %v3258_v9 = vpop.eup %3257  ;;  %1152 = vrot.lane.b32.xlu0 %v3256_v6, %s3518_s1 }
0x11d1   :  { %1176 = vrot.lane.b32.xlu1 %v3258_v9, %s3518_s1  ;;  %v3260_v15 = vpop.eup %3259 }
0x11d2   :  { %v3262_v18 = vpop.eup %3261  ;;  %v1146_v54 = vadd.f32 1.0, %v3260_v15 }
0x11d3   :  { %v1170_v21 = vadd.f32 1.0, %v3262_v18  ;;  %v1341_v18 = vld [vmem:[%s4404_s5 + $0x8] sm:$0xff] }
0x11d4   :  { %3263 = vrcp.f32 %v1146_v54  ;;  %v1343_v54 = vld [vmem:[%s4404_s5 + $0x18] sm:$0xff] }
0x11d5   :  { %3265 = vrcp.f32 %v1170_v21  ;;  %v1340_v21 = vld [vmem:[%s4404_s5] sm:$0xff] }
0x11de   :  { %v3264_v13 = vpop.eup %3263 }
0x11df   :  { %v3266_v24 = vpop.eup %3265  ;;  %v1150_v12 = vmul.f32 %v3264_v13, %v1027_v45 }
0x11e0   :  { %v1174_v17 = vmul.f32 %v3266_v24, %v1051_v49 }
0x1242   :  { %v1153_v52 = vpop.permute.xlu0 %1152 }
0x1243   :  { %v1155_v25 = vmul.f32 %v3264_v13, %v1153_v52  ;;  %v1177_v26 = vpop.permute.xlu1 %1176  ;;  %v1342_v52 = vld [vmem:[%s4404_s5 + $0x10] sm:$0xff] }
0x1244   :  { %v1179_v50 = vmul.f32 %v3266_v24, %v1177_v26  ;;  %v2986_v26 = vpack.c.bf16 %v1342_v52, %v1340_v21  ;;  %v1519_v52 = vld [vmem:[#allocation4 + $0x70] sm:$0xff] }
0x1245   :  { %1157 = vrot.lane.b32.xlu0 %v1155_v25, %s3518_s1  ;;  %v1508_v25 = vld [vmem:[#allocation4 + $0x18] sm:$0xff] }
0x1246   :  { %1181 = vrot.lane.b32.xlu1 %v1179_v50, %s3518_s1 }
0x12b7   :  { %v1158_v16 = vpop.permute.xlu0 %1157 }
0x12b8   :  { %v1160_v20 = vadd.f32 %v1158_v16, %v1150_v12  ;;  %v1182_v22 = vpop.permute.xlu1 %1181  ;;  %v1505_v12 = vld [vmem:[#allocation4] sm:$0xff]  ;;  %v1507_v16 = vld [vmem:[#allocation4 + $0x10] sm:$0xff] }
0x12b9   :  { %v1184_v28 = vadd.f32 %v1182_v22, %v1174_v17  ;;  %v1345_v17 = vld [vmem:[%s4404_s5 + $0x28] sm:$0xff]  ;;  %v1347_v22 = vld [vmem:[%s4404_s5 + $0x38] sm:$0xff] }
0x12ba   :  { %3267 = vtanh.f32 %v1160_v20 }
0x12bb   :  { %3269 = vtanh.f32 %v1184_v28 }
0x12c4   :  { %v3268_v29 = vpop.eup %3267 }
0x12c5   :  { %v3270_v33 = vpop.eup %3269  ;;  %1163 = vrot.lane.b32.xlu0 %v3268_v29, %s3518_s1  ;;  %v1346_v29 = vld [vmem:[%s4404_s5 + $0x30] sm:$0xff] }
0x12c6   :  { %1187 = vrot.lane.b32.xlu1 %v3270_v33, %s3518_s1  ;;  %v2988_v33 = vpack.c.bf16 %v1347_v22, %v1345_v17 }
0x1337   :  { %v1164_v30 = vpop.permute.xlu0 %1163 }
0x1338   :  { %v1166_v7 = vmul.f32 %v3264_v13, %v1164_v30  ;;  %v1188_v56 = vpop.permute.xlu1 %1187  ;;  %v2984_v13 = vpack.c.bf16 %v1343_v54, %v1341_v18  ;;  %v1518_v18 = vld [vmem:[#allocation4 + $0x68] sm:$0xff]  ;;  %v1520_v54 = vld [vmem:[#allocation4 + $0x78] sm:$0xff] }
0x1339   :  { %v1190_v32 = vmul.f32 %v3266_v24, %v1188_v56  ;;  %v1506_v24 = vld [vmem:[#allocation4 + $0x8] sm:$0xff]  ;;  %v1512_v56 = vld [vmem:[#allocation4 + $0x38] sm:$0xff]  ;;  %v4064_v21 = vpack.c.bf16 %v1520_v54, %v1518_v18 }
0x133a   :  { %1192 = vrot.lane.b32.xlu0 %v1166_v7, %s3519_s4  ;;  %v4007_v50 = vpack.c.bf16 %v1508_v25, %v1506_v24  ;;  %2985 = vmatprep.subr.bf16.mxu0 %v2984_v13  ;;  %v1510_v7 = vld [vmem:[#allocation4 + $0x28] sm:$0xff]  ;;  %v1517_v13 = vld [vmem:[#allocation4 + $0x60] sm:$0xff] }
0x133b   :  { %1196 = vrot.lane.b32.xlu1 %v1190_v32, %s3520_s24  ;;  %2987 = vmatpush1.bf16.msra.mxu0 %v2986_v26  ;;  %v1509_v32 = vld [vmem:[#allocation4 + $0x20] sm:$0xff]  ;;  %v4066_v24 = vpack.c.bf16 %v1519_v52, %v1517_v13 }
0x133c   :  { %3001 = vmatprep.subr.bf16.mxu1 %v4007_v50  ;;  %2989 = vmatprep.subr.bf16.mxu0 %v2988_v33 }
0x13ac   :  { %v3972_v34 = vpop.permute.xlu0 %1192 }
0x13ad   :  { %v3974_v35 = vpop.permute.xlu1 %1196 }
0x13ae   :  { %v1199_v36 = vsel %vm400_vm1, %v3972_v34, %v3974_v35 }
0x13af   :  { %2786 = vmatmul.mubr.msk.f32.vlgmr.msra.gmra.mrb[8].mxu1 %vm267_vm2, %v1199_v36  ;;  %v4025_v36 = vpack.c.bf16 %v1512_v56, %v1510_v7 }
0x13b0   :  { %1585 = vmatprep.mubr.f32.mxu1 %v3517_v0 }
0x1482   :  { %v1269_v38 = vpop.f32.mrb[8].mxu1 }
0x1483   :  { %v1274_v42 = vadd.f32 %v1269_v38, %v3811_v19  ;;  %v1271_v43 = vpop.f32.mrb[9].mxu1  ;;  %v1511_v38 = vld [vmem:[#allocation4 + $0x30] sm:$0xff] }
0x1484   :  { %v1275_v45 = vadd.f32 %v1271_v43, %v3782_v47  ;;  %v1351_v43 = vld [vmem:[%s4404_s5 + $0x58] sm:$0xff] }
0x1485   :  { %3271 = vtanh.f32 %v1274_v42  ;;  %v2787_v51 = vmul.f32 -1.442695, %v1274_v42  ;;  %v1349_v42 = vld [vmem:[%s4404_s5 + $0x48] sm:$0xff] }
0x1486   :  { %3273 = vtanh.f32 %v1275_v45  ;;  %v2788_v55 = vmul.f32 -1.442695, %v1275_v45  ;;  %v4033_v45 = vpack.c.bf16 %v1511_v38, %v1509_v32 }
0x1487   :  { %3275 = vpow2.f32 %v2787_v51  ;;  %v1350_v51 = vld [vmem:[%s4404_s5 + $0x50] sm:$0xff] }
0x1488   :  { %3277 = vpow2.f32 %v2788_v55  ;;  %v1514_v55 = vld [vmem:[#allocation4 + $0x48] sm:$0xff] }
0x148f   :  { %v3272_v48 = vpop.eup %3271 }
0x1490   :  { %v3274_v49 = vpop.eup %3273  ;;  %1285 = vrot.lane.b32.xlu1 %v3272_v48, %s3518_s1  ;;  %v2992_v48 = vpack.c.bf16 %v1351_v43, %v1349_v42 }
0x1491   :  { %1309 = vrot.lane.b32.xlu0 %v3274_v49, %s3518_s1  ;;  %v3276_v57 = vpop.eup %3275  ;;  %v1348_v49 = vld [vmem:[%s4404_s5 + $0x40] sm:$0xff] }
0x1492   :  { %v3278_v3 = vpop.eup %3277  ;;  %v1279_v63 = vadd.f32 1.0, %v3276_v57  ;;  %v1516_v57 = vld [vmem:[#allocation4 + $0x58] sm:$0xff] }
0x1493   :  { %v1303_v58 = vadd.f32 1.0, %v3278_v3  ;;  %v1513_v3 = vld [vmem:[#allocation4 + $0x40] sm:$0xff] }
0x1494   :  { %3279 = vrcp.f32 %v1279_v63  ;;  %v1515_v63 = vld [vmem:[#allocation4 + $0x50] sm:$0xff] }
0x1495   :  { %3281 = vrcp.f32 %v1303_v58  ;;  %v2994_v58 = vpack.c.bf16 %v1350_v51, %v1348_v49 }
0x149e   :  { %v3985_v19 = vpop.eup %3279 }
0x149f   :  { %v3987_v8 = vpop.eup %3281  ;;  %v1283_v5 = vmul.f32 %v3985_v19, %v1160_v20  ;;  %v4012_v20 = vpack.c.bf16 %v1507_v16, %v1505_v12 }
0x14a0   :  { %v1307_v9 = vmul.f32 %v3987_v8, %v1184_v28  ;;  %v1344_v28 = vld [vmem:[%s4404_s5 + $0x20] sm:$0xff] }
0x14a1   :  { %v2990_v30 = vpack.c.bf16 %v1346_v29, %v1344_v28  ;;  %3003 = vmatpush1.bf16.msra.mxu1 %v4012_v20 }
0x14a2   :  { %3005 = vmatprep.subr.bf16.mxu1 %v4025_v36 }
0x14a3   :  { %2991 = vmatpush1.bf16.msra.mxu0 %v2990_v30 }
0x14a4   :  { %2993 = vmatprep.subr.bf16.mxu0 %v2992_v48 }
0x14a5   :  { %3007 = vmatpush1.bf16.msra.mxu1 %v4033_v45 }
0x14a7   :  { %2995 = vmatpush1.bf16.msra.mxu0 %v2994_v58 }
0x1502   :  { %v1286_v47 = vpop.permute.xlu1 %1285 }
0x1503   :  { %v1288_v2 = vmul.f32 %v3985_v19, %v1286_v47  ;;  %v1310_v4 = vpop.permute.xlu0 %1309  ;;  %v4042_v47 = vpack.c.bf16 %v1516_v57, %v1514_v55 }
0x1504   :  { %v1312_v59 = vmul.f32 %v3987_v8, %v1310_v4  ;;  %v1355_v4 = vld [vmem:[%s4404_s5 + $0x78] sm:$0xff] }
0x1505   :  { %1290 = vrot.lane.b32.xlu1 %v1288_v2, %s3518_s1  ;;  %v1353_v2 = vld [vmem:[%s4404_s5 + $0x68] sm:$0xff]  ;;  %3009 = vmatprep.subr.bf16.mxu1 %v4042_v47 }
0x1506   :  { %1314 = vrot.lane.b32.xlu0 %v1312_v59, %s3518_s1 }
0x1577   :  { %v1291_v6 = vpop.permute.xlu1 %1290 }
0x1578   :  { %v1293_v11 = vadd.f32 %v1291_v6, %v1283_v5  ;;  %v1315_v14 = vpop.permute.xlu0 %1314  ;;  %v4051_v5 = vpack.c.bf16 %v1515_v63, %v1513_v3  ;;  %v2996_v6 = vpack.c.bf16 %v1355_v4, %v1353_v2 }
0x1579   :  { %v1317_v15 = vadd.f32 %v1315_v14, %v1307_v9  ;;  %v1352_v9 = vld [vmem:[%s4404_s5 + $0x60] sm:$0xff] }
0x157a   :  { %3283 = vtanh.f32 %v1293_v11  ;;  %v1354_v11 = vld [vmem:[%s4404_s5 + $0x70] sm:$0xff]  ;;  %3011 = vmatpush1.bf16.msra.mxu1 %v4051_v5  ;;  %2997 = vmatprep.subr.bf16.mxu0 %v2996_v6 }
0x157b   :  { %3285 = vtanh.f32 %v1317_v15  ;;  %v2998_v15 = vpack.c.bf16 %v1354_v11, %v1352_v9  ;;  %3013 = vmatprep.subr.bf16.mxu1 %v4064_v21 }
0x157d   :  { %2999 = vmatpush1.bf16.msra.mxu0 %v2998_v15 }
0x157e   :  { %3033 = vmatprep.subr.bf16.mxu0 %v4007_v50  ;;  %3015 = vmatpush1.bf16.msra.mxu1 %v4066_v24 }
0x157f   :  { %3017 = vmatprep.subr.bf16.mxu1 %v4007_v50 }
0x1581   :  { %1586 = vmatmul.mubr.f32.vlgmr.msra.gmra.mrb[10].mxu1 %v3517_v0 }
0x1582   :  { %3019 = vmatpush1.bf16.msra.mxu1 %v4012_v20  ;;  %1732 = vmatprep.mubr.f32.mxu1 %v3517_v0 }
0x1583   :  { %3021 = vmatprep.subr.bf16.mxu1 %v4025_v36 }
0x1584   :  { %v3284_v59 = vpop.eup %3283 }
0x1585   :  { %v3286_v14 = vpop.eup %3285  ;;  %1296 = vrot.lane.b32.xlu1 %v3284_v59, %s3518_s1 }
0x1586   :  { %1320 = vrot.lane.b32.xlu0 %v3286_v14, %s3518_s1  ;;  %3023 = vmatpush1.bf16.msra.mxu1 %v4033_v45 }
0x1587   :  { %3025 = vmatprep.subr.bf16.mxu1 %v4042_v47 }
0x158a   :  { %3027 = vmatpush1.bf16.msra.mxu1 %v4051_v5 }
0x158b   :  { %3029 = vmatprep.subr.bf16.mxu1 %v4064_v21 }
0x158e   :  { %3031 = vmatpush1.bf16.msra.mxu1 %v4066_v24 }
0x158f   :  { %3049 = vmatprep.subr.bf16.mxu1 %v4007_v50 }
0x15f7   :  { %v1297_v25 = vpop.permute.xlu1 %1296 }
0x15f8   :  { %v1299_v26 = vmul.f32 %v3985_v19, %v1297_v25  ;;  %v1321_v12 = vpop.permute.xlu0 %1320 }
0x15f9   :  { %v1323_v16 = vmul.f32 %v3987_v8, %v1321_v12  ;;  %v1329_v8 = vsel %vm400_vm1, %v3847_v46, %v3974_v35  ;;  %v1331_v46 = vsel %vm400_vm1, %v3901_v27, %v3929_v23  ;;  %v1333_v27 = vsel %vm400_vm1, %v3953_v60, %v3876_v39  ;;  %v1356_v60 = vld [vmem:[#allocation6] sm:$0x3] }
0x15fa   :  { %1336 = vrot.lane.b32.xlu1 %v1299_v26, %s3519_s4  ;;  %v1334_v23 = vsel %vm400_vm1, %v3972_v34, %v3849_v53  ;;  %v1361_v35 = vrot.slane %v1356_v60, %v105_v44  ;;  %v1365_v53 = vrot.slane %v1356_v60, %v109_v41 }
0x15fb   :  { %1325 = vrot.lane.b32.xlu0 %v1323_v16, %s3520_s24 }
0x1654   :  { %v1587_v39 = vpop.f32.mrb[10].mxu1 }
0x166d   :  { %v1326_v17 = vpop.permute.xlu0 %1325 }
0x166e   :  { %v1328_v19 = vsel %vm400_vm1, %v3820_v62, %v1326_v17  ;;  %v1330_v62 = vsel %vm400_vm1, %v3874_v37, %v3955_v61  ;;  %v1332_v37 = vsel %vm400_vm1, %v3927_v10, %v3903_v31  ;;  %v1337_v61 = vpop.permute.xlu1 %1336  ;;  %v1589_v10 = vpop.f32.mrb[11].mxu1 }
0x166f   :  { %2789 = vmatmul.mubr.msk.f32.vlgmr.msra.gmra.mrb[22].mxu0 %vm267_vm2, %v1328_v19  ;;  %v1339_v31 = vsel %vm400_vm1, %v1337_v61, %v3822_v1 }
0x1670   :  { %1462 = vmatprep.mubr.f32.mxu0 %v3517_v0  ;;  %3035 = vmatpush1.bf16.msra.mxu0 %v4012_v20 }
0x1671   :  { %3037 = vmatprep.subr.bf16.mxu0 %v4025_v36 }
0x1673   :  { %2790 = vmatmul.mubr.msk.f32.gmra.mrb[24].mxu0 %vm267_vm2, %v1329_v8 }
0x1674   :  { %1468 = vmatprep.mubr.f32.mxu0 %v3517_v0  ;;  %3039 = vmatpush1.bf16.msra.mxu0 %v4033_v45 }
0x1675   :  { %3041 = vmatprep.subr.bf16.mxu0 %v4042_v47 }
0x1677   :  { %2791 = vmatmul.mubr.msk.f32.gmra.mrb[26].mxu0 %vm267_vm2, %v1330_v62 }
0x1678   :  { %1474 = vmatprep.mubr.f32.mxu0 %v3517_v0  ;;  %3043 = vmatpush1.bf16.msra.mxu0 %v4051_v5 }
0x1679   :  { %3045 = vmatprep.subr.bf16.mxu0 %v4064_v21 }
0x167b   :  { %2792 = vmatmul.mubr.msk.f32.gmra.mrb[28].mxu0 %vm267_vm2, %v1331_v46 }
0x167c   :  { %1480 = vmatprep.mubr.f32.mxu0 %v3517_v0  ;;  %3047 = vmatpush1.bf16.msra.mxu0 %v4066_v24 }
0x167d   :  { %3065 = vmatprep.subr.bf16.mxu0 %v4007_v50 }
0x167f   :  { %2793 = vmatmul.mubr.msk.f32.gmra.mrb[30].mxu0 %vm267_vm2, %v1332_v37 }
0x1680   :  { %1486 = vmatprep.mubr.f32.mxu0 %v3517_v0 }
0x1683   :  { %2794 = vmatmul.mubr.msk.f32.gmra.mrb[32].mxu0 %vm267_vm2, %v1333_v27 }
0x1684   :  { %1492 = vmatprep.mubr.f32.mxu0 %v3517_v0 }
0x1687   :  { %2795 = vmatmul.mubr.msk.f32.gmra.mrb[34].mxu0 %vm267_vm2, %v1334_v23 }
0x1688   :  { %1498 = vmatprep.mubr.f32.mxu0 %v3517_v0 }
0x168b   :  { %2796 = vmatmul.mubr.msk.f32.gmra.mrb[36].mxu0 %vm267_vm2, %v1339_v31 }
0x168c   :  { %1879 = vmatprep.mubr.f32.mxu0 %v3517_v0 }
0x1742   :  { %v1458_v34 = vpop.f32.mrb[22].mxu0 }
0x1743   :  { %v1459_v22 = vadd.f32 %v1458_v34, %v1361_v35  ;;  %v1460_v28 = vpop.f32.mrb[23].mxu0 }
0x1744   :  { %v4135_v29 = vadd.f32 %v1460_v28, %v1365_v53 }
0x1745   :  { %v1592_v33 = vadd.f32 %v1587_v39, %v1459_v22 }
0x1746   :  { %v1464_v1 = vpop.f32.mrb[24].mxu0 }
0x1747   :  { %3287 = vtanh.f32 %v1592_v33  ;;  %v4137_v30 = vadd.f32 %v1464_v1, %v1361_v35  ;;  %v1466_v7 = vpop.f32.mrb[25].mxu0  ;;  %v2797_v25 = vmul.f32 -1.442695, %v1592_v33 }
0x1748   :  { %v4139_v56 = vadd.f32 %v1466_v7, %v1365_v53 }
0x174a   :  { %v1470_v32 = vpop.f32.mrb[26].mxu0 }
0x174b   :  { %v4141_v38 = vadd.f32 %v1470_v32, %v1361_v35  ;;  %v1472_v44 = vpop.f32.mrb[27].mxu0 }
0x174c   :  { %v4143_v42 = vadd.f32 %v1472_v44, %v1365_v53 }
0x174e   :  { %v1476_v40 = vpop.f32.mrb[28].mxu0 }
0x174f   :  { %v4145_v41 = vadd.f32 %v1476_v40, %v1361_v35  ;;  %v1478_v43 = vpop.f32.mrb[29].mxu0 }
0x1750   :  { %v4147_v48 = vadd.f32 %v1478_v43, %v1365_v53 }
0x1751   :  { %v3288_v49 = vpop.eup %3287 }
0x1752   :  { %v1482_v51 = vpop.f32.mrb[30].mxu0  ;;  %1603 = vrot.lane.b32.xlu0 %v3288_v49, %s3518_s1 }
0x1753   :  { %v4150_v55 = vadd.f32 %v1482_v51, %v1361_v35  ;;  %v1484_v57 = vpop.f32.mrb[31].mxu0 }
0x1754   :  { %v4152_v3 = vadd.f32 %v1484_v57, %v1365_v53 }
0x1756   :  { %v1488_v63 = vpop.f32.mrb[32].mxu0 }
0x1757   :  { %v4154_v58 = vadd.f32 %v1488_v63, %v1361_v35  ;;  %v1490_v2 = vpop.f32.mrb[33].mxu0 }
0x1758   :  { %v4156_v4 = vadd.f32 %v1490_v2, %v1365_v53 }
0x175a   :  { %v1494_v59 = vpop.f32.mrb[34].mxu0 }
0x175b   :  { %v4158_v6 = vadd.f32 %v1494_v59, %v1361_v35  ;;  %v1496_v9 = vpop.f32.mrb[35].mxu0 }
0x175c   :  { %v1497_v11 = vadd.f32 %v1496_v9, %v1365_v53 }
0x175e   :  { %v1500_v14 = vpop.f32.mrb[36].mxu0 }
0x175f   :  { %v4160_v15 = vadd.f32 %v1500_v14, %v1361_v35  ;;  %v1502_v18 = vpop.f32.mrb[37].mxu0 }
0x1760   :  { %v1503_v54 = vadd.f32 %v1502_v18, %v1365_v53 }
0x1762   :  { %v1593_v13 = vadd.f32 %v1589_v10, %v1503_v54 }
0x1764   :  { %3289 = vtanh.f32 %v1593_v13  ;;  %v2798_v16 = vmul.f32 -1.442695, %v1593_v13 }
0x1765   :  { %3291 = vpow2.f32 %v2797_v25 }
0x176e   :  { %v3290_v52 = vpop.eup %3289 }
0x176f   :  { %1627 = vrot.lane.b32.xlu1 %v3290_v52, %s3518_s1  ;;  %v3292_v26 = vpop.eup %3291 }
0x1770   :  { %v1597_v12 = vadd.f32 1.0, %v3292_v26 }
0x1772   :  { %3293 = vrcp.f32 %v1597_v12 }
0x1773   :  { %3295 = vpow2.f32 %v2798_v16 }
0x177c   :  { %v3294_v17 = vpop.eup %3293 }
0x177d   :  { %v3296_v62 = vpop.eup %3295  ;;  %v1601_v61 = vmul.f32 0.0, %v3294_v17 }
0x177e   :  { %v1621_v46 = vadd.f32 1.0, %v3296_v62 }
0x1780   :  { %3297 = vrcp.f32 %v1621_v46 }
0x178a   :  { %v3298_v37 = vpop.eup %3297 }
0x178b   :  { %v1625_v60 = vmul.f32 0.0, %v3298_v37 }
0x17c4   :  { %v1604_v19 = vpop.permute.xlu0 %1603 }
0x17c5   :  { %v1606_v8 = vmul.f32 %v3294_v17, %v1604_v19 }
0x17c7   :  { %1608 = vrot.lane.b32.xlu0 %v1606_v8, %s3518_s1 }
0x17e1   :  { %v1628_v27 = vpop.permute.xlu1 %1627 }
0x17e2   :  { %v1630_v23 = vmul.f32 %v3298_v37, %v1628_v27 }
0x17e4   :  { %1632 = vrot.lane.b32.xlu1 %v1630_v23, %s3518_s1 }
0x1839   :  { %v1609_v31 = vpop.permute.xlu0 %1608 }
0x183a   :  { %v1611_v39 = vadd.f32 %v1609_v31, %v1601_v61 }
0x183c   :  { %3299 = vtanh.f32 %v1611_v39 }
0x1846   :  { %v3300_v10 = vpop.eup %3299 }
0x1847   :  { %1614 = vrot.lane.b32.xlu0 %v3300_v10, %s3518_s1 }
0x1856   :  { %v1633_v35 = vpop.permute.xlu1 %1632 }
0x1857   :  { %v1635_v53 = vadd.f32 %v1633_v35, %v1625_v60 }
0x1859   :  { %3301 = vtanh.f32 %v1635_v53 }
0x1863   :  { %v3302_v34 = vpop.eup %3301 }
0x1864   :  { %1638 = vrot.lane.b32.xlu1 %v3302_v34, %s3518_s1 }
0x18b9   :  { %v1615_v22 = vpop.permute.xlu0 %1614 }
0x18ba   :  { %v4167_v28 = vmul.f32 %v3294_v17, %v1615_v22 }
0x18bc   :  { %1657 = vrot.lane.b32.xlu0 %v4167_v28, %s3519_s4 }
0x18d6   :  { %v1639_v33 = vpop.permute.xlu1 %1638 }
0x18d7   :  { %v4171_v1 = vmul.f32 %v3298_v37, %v1639_v33 }
0x18d9   :  { %1661 = vrot.lane.b32.xlu1 %v4171_v1, %s3520_s24 }
0x192e   :  { %v4175_v7 = vpop.permute.xlu0 %1657 }
0x194b   :  { %v1662_v32 = vpop.permute.xlu1 %1661 }
0x194c   :  { %v1664_v44 = vsel %vm400_vm1, %v4175_v7, %v1662_v32 }
0x194d   :  { %2799 = vmatmul.mubr.msk.f32.vlgmr.msra.gmra.mrb[12].mxu1 %vm267_vm2, %v1664_v44 }
0x194e   :  { %3051 = vmatpush1.bf16.msra.mxu1 %v4012_v20  ;;  %2026 = vmatprep.mubr.f32.mxu1 %v3517_v0 }
0x194f   :  { %3053 = vmatprep.subr.bf16.mxu1 %v4025_v36 }
0x1952   :  { %3055 = vmatpush1.bf16.msra.mxu1 %v4033_v45 }
0x1953   :  { %3057 = vmatprep.subr.bf16.mxu1 %v4042_v47 }
0x1956   :  { %3059 = vmatpush1.bf16.msra.mxu1 %v4051_v5 }
0x1957   :  { %3061 = vmatprep.subr.bf16.mxu1 %v4064_v21 }
0x195a   :  { %3063 = vmatpush1.bf16.msra.mxu1 %v4066_v24 }
0x195b   :  { %3081 = vmatprep.subr.bf16.mxu1 %v4007_v50 }
0x1a20   :  { %v1734_v40 = vpop.f32.mrb[12].mxu1 }
0x1a21   :  { %v1739_v43 = vadd.f32 %v1734_v40, %v4137_v30  ;;  %v1736_v49 = vpop.f32.mrb[13].mxu1 }
0x1a22   :  { %v1740_v51 = vadd.f32 %v1736_v49, %v1497_v11 }
0x1a23   :  { %3303 = vtanh.f32 %v1739_v43  ;;  %v2800_v2 = vmul.f32 -1.442695, %v1739_v43 }
0x1a24   :  { %3305 = vtanh.f32 %v1740_v51  ;;  %v2801_v59 = vmul.f32 -1.442695, %v1740_v51 }
0x1a25   :  { %3307 = vpow2.f32 %v2800_v2 }
0x1a26   :  { %3309 = vpow2.f32 %v2801_v59 }
0x1a2d   :  { %v3304_v57 = vpop.eup %3303 }
0x1a2e   :  { %v3306_v63 = vpop.eup %3305  ;;  %1750 = vrot.lane.b32.xlu0 %v3304_v57, %s3518_s1 }
0x1a2f   :  { %1774 = vrot.lane.b32.xlu1 %v3306_v63, %s3518_s1  ;;  %v3308_v9 = vpop.eup %3307 }
0x1a30   :  { %v3310_v14 = vpop.eup %3309  ;;  %v1744_v18 = vadd.f32 1.0, %v3308_v9 }
0x1a31   :  { %v1768_v54 = vadd.f32 1.0, %v3310_v14 }
0x1a32   :  { %3311 = vrcp.f32 %v1744_v18 }
0x1a33   :  { %3313 = vrcp.f32 %v1768_v54 }
0x1a3c   :  { %v3312_v30 = vpop.eup %3311 }
0x1a3d   :  { %v3314_v13 = vpop.eup %3313  ;;  %v1748_v12 = vmul.f32 %v3312_v30, %v1611_v39 }
0x1a3e   :  { %v1772_v17 = vmul.f32 %v3314_v13, %v1635_v53 }
0x1aa0   :  { %v1751_v11 = vpop.permute.xlu0 %1750 }
0x1aa1   :  { %v1753_v52 = vmul.f32 %v3312_v30, %v1751_v11  ;;  %v1775_v25 = vpop.permute.xlu1 %1774 }
0x1aa2   :  { %v1777_v26 = vmul.f32 %v3314_v13, %v1775_v25 }
0x1aa3   :  { %1755 = vrot.lane.b32.xlu0 %v1753_v52, %s3518_s1 }
0x1aa4   :  { %1779 = vrot.lane.b32.xlu1 %v1777_v26, %s3518_s1 }
0x1b15   :  { %v1756_v16 = vpop.permute.xlu0 %1755 }
0x1b16   :  { %v1758_v19 = vadd.f32 %v1756_v16, %v1748_v12  ;;  %v1780_v8 = vpop.permute.xlu1 %1779 }
0x1b17   :  { %v1782_v62 = vadd.f32 %v1780_v8, %v1772_v17 }
0x1b18   :  { %3315 = vtanh.f32 %v1758_v19 }
0x1b19   :  { %3317 = vtanh.f32 %v1782_v62 }
0x1b22   :  { %v3316_v46 = vpop.eup %3315 }
0x1b23   :  { %v3318_v37 = vpop.eup %3317  ;;  %1761 = vrot.lane.b32.xlu0 %v3316_v46, %s3518_s1 }
0x1b24   :  { %1785 = vrot.lane.b32.xlu1 %v3318_v37, %s3518_s1 }
0x1b95   :  { %v1762_v27 = vpop.permute.xlu0 %1761 }
0x1b96   :  { %v4196_v23 = vmul.f32 %v3312_v30, %v1762_v27  ;;  %v1786_v61 = vpop.permute.xlu1 %1785 }
0x1b97   :  { %v4198_v31 = vmul.f32 %v3314_v13, %v1786_v61 }
0x1b98   :  { %1804 = vrot.lane.b32.xlu0 %v4196_v23, %s3519_s4 }
0x1b99   :  { %1808 = vrot.lane.b32.xlu1 %v4198_v31, %s3520_s24 }
0x1c0a   :  { %v1805_v39 = vpop.permute.xlu0 %1804 }
0x1c0b   :  { %v1809_v10 = vpop.permute.xlu1 %1808 }
0x1c0c   :  { %v1811_v60 = vsel %vm400_vm1, %v1805_v39, %v1809_v10 }
0x1c0d   :  { %2802 = vmatmul.mubr.msk.f32.vlgmr.msra.gmra.mrb[38].mxu0 %vm267_vm2, %v1811_v60 }
0x1c0e   :  { %3067 = vmatpush1.bf16.msra.mxu0 %v4012_v20  ;;  %2173 = vmatprep.mubr.f32.mxu0 %v3517_v0 }
0x1c0f   :  { %3069 = vmatprep.subr.bf16.mxu0 %v4025_v36 }
0x1c12   :  { %3071 = vmatpush1.bf16.msra.mxu0 %v4033_v45 }
0x1c13   :  { %3073 = vmatprep.subr.bf16.mxu0 %v4042_v47 }
0x1c16   :  { %3075 = vmatpush1.bf16.msra.mxu0 %v4051_v5 }
0x1c17   :  { %3077 = vmatprep.subr.bf16.mxu0 %v4064_v21 }
0x1c1a   :  { %3079 = vmatpush1.bf16.msra.mxu0 %v4066_v24 }
0x1c1b   :  { %3097 = vmatprep.subr.bf16.mxu0 %v4007_v50 }
0x1ce0   :  { %v1881_v35 = vpop.f32.mrb[38].mxu0 }
0x1ce1   :  { %v1886_v53 = vadd.f32 %v1881_v35, %v4141_v38  ;;  %v1883_v34 = vpop.f32.mrb[39].mxu0 }
0x1ce2   :  { %v1887_v22 = vadd.f32 %v1883_v34, %v4156_v4 }
0x1ce3   :  { %3319 = vtanh.f32 %v1886_v53  ;;  %v2803_v44 = vmul.f32 -1.442695, %v1886_v53 }
0x1ce4   :  { %3321 = vtanh.f32 %v1887_v22  ;;  %v2804_v40 = vmul.f32 -1.442695, %v1887_v22 }
0x1ce5   :  { %3323 = vpow2.f32 %v2803_v44 }
0x1ce6   :  { %3325 = vpow2.f32 %v2804_v40 }
0x1ced   :  { %v3320_v33 = vpop.eup %3319 }
0x1cee   :  { %v3322_v32 = vpop.eup %3321  ;;  %1897 = vrot.lane.b32.xlu0 %v3320_v33, %s3518_s1 }
0x1cef   :  { %1921 = vrot.lane.b32.xlu1 %v3322_v32, %s3518_s1  ;;  %v3324_v43 = vpop.eup %3323 }
0x1cf0   :  { %v3326_v49 = vpop.eup %3325  ;;  %v1891_v51 = vadd.f32 1.0, %v3324_v43 }
0x1cf1   :  { %v1915_v57 = vadd.f32 1.0, %v3326_v49 }
0x1cf2   :  { %3327 = vrcp.f32 %v1891_v51 }
0x1cf3   :  { %3329 = vrcp.f32 %v1915_v57 }
0x1cfc   :  { %v3328_v38 = vpop.eup %3327 }
0x1cfd   :  { %v3330_v63 = vpop.eup %3329  ;;  %v1895_v14 = vmul.f32 %v3328_v38, %v1758_v19 }
0x1cfe   :  { %v1919_v54 = vmul.f32 %v3330_v63, %v1782_v62 }
0x1d60   :  { %v1898_v4 = vpop.permute.xlu0 %1897 }
0x1d61   :  { %v1900_v2 = vmul.f32 %v3328_v38, %v1898_v4  ;;  %v1922_v59 = vpop.permute.xlu1 %1921 }
0x1d62   :  { %v1924_v9 = vmul.f32 %v3330_v63, %v1922_v59 }
0x1d63   :  { %1902 = vrot.lane.b32.xlu0 %v1900_v2, %s3518_s1 }
0x1d64   :  { %1926 = vrot.lane.b32.xlu1 %v1924_v9, %s3518_s1 }
0x1dd5   :  { %v1903_v18 = vpop.permute.xlu0 %1902 }
0x1dd6   :  { %v1905_v30 = vadd.f32 %v1903_v18, %v1895_v14  ;;  %v1927_v11 = vpop.permute.xlu1 %1926 }
0x1dd7   :  { %v1929_v13 = vadd.f32 %v1927_v11, %v1919_v54 }
0x1dd8   :  { %3331 = vtanh.f32 %v1905_v30 }
0x1dd9   :  { %3333 = vtanh.f32 %v1929_v13 }
0x1de2   :  { %v3332_v52 = vpop.eup %3331 }
0x1de3   :  { %v3334_v25 = vpop.eup %3333  ;;  %1908 = vrot.lane.b32.xlu0 %v3332_v52, %s3518_s1 }
0x1de4   :  { %1932 = vrot.lane.b32.xlu1 %v3334_v25, %s3518_s1 }
0x1e55   :  { %v1909_v26 = vpop.permute.xlu0 %1908 }
0x1e56   :  { %v4223_v12 = vmul.f32 %v3328_v38, %v1909_v26  ;;  %v1933_v16 = vpop.permute.xlu1 %1932 }
0x1e57   :  { %v4225_v17 = vmul.f32 %v3330_v63, %v1933_v16 }
0x1e58   :  { %1951 = vrot.lane.b32.xlu0 %v4223_v12, %s3519_s4 }
0x1e59   :  { %1955 = vrot.lane.b32.xlu1 %v4225_v17, %s3520_s24 }
0x1eca   :  { %v1952_v19 = vpop.permute.xlu0 %1951 }
0x1ecb   :  { %v1956_v8 = vpop.permute.xlu1 %1955 }
0x1ecc   :  { %v1958_v62 = vsel %vm400_vm1, %v1952_v19, %v1956_v8 }
0x1ecd   :  { %2805 = vmatmul.mubr.msk.f32.vlgmr.msra.gmra.mrb[14].mxu1 %vm267_vm2, %v1958_v62 }
0x1ece   :  { %3083 = vmatpush1.bf16.msra.mxu1 %v4012_v20  ;;  %2308 = vmatprep.mubr.f32.mxu1 %v3517_v0 }
0x1ecf   :  { %3085 = vmatprep.subr.bf16.mxu1 %v4025_v36 }
0x1ed2   :  { %3087 = vmatpush1.bf16.msra.mxu1 %v4033_v45 }
0x1ed3   :  { %3089 = vmatprep.subr.bf16.mxu1 %v4042_v47 }
0x1ed6   :  { %3091 = vmatpush1.bf16.msra.mxu1 %v4051_v5 }
0x1ed7   :  { %3093 = vmatprep.subr.bf16.mxu1 %v4064_v21 }
0x1eda   :  { %3095 = vmatpush1.bf16.msra.mxu1 %v4066_v24 }
0x1edb   :  { %3113 = vmatprep.subr.bf16.mxu1 %v4007_v50 }
0x1fa0   :  { %v2028_v46 = vpop.f32.mrb[14].mxu1 }
0x1fa1   :  { %v2033_v37 = vadd.f32 %v2028_v46, %v4145_v41  ;;  %v2030_v27 = vpop.f32.mrb[15].mxu1 }
0x1fa2   :  { %v2034_v61 = vadd.f32 %v2030_v27, %v4152_v3 }
0x1fa3   :  { %3335 = vtanh.f32 %v2033_v37  ;;  %v2806_v60 = vmul.f32 -1.442695, %v2033_v37 }
0x1fa4   :  { %3337 = vtanh.f32 %v2034_v61  ;;  %v2807_v35 = vmul.f32 -1.442695, %v2034_v61 }
0x1fa5   :  { %3339 = vpow2.f32 %v2806_v60 }
0x1fa6   :  { %3341 = vpow2.f32 %v2807_v35 }
0x1fad   :  { %v3336_v39 = vpop.eup %3335 }
0x1fae   :  { %v3338_v10 = vpop.eup %3337  ;;  %2044 = vrot.lane.b32.xlu0 %v3336_v39, %s3518_s1 }
0x1faf   :  { %2068 = vrot.lane.b32.xlu1 %v3338_v10, %s3518_s1  ;;  %v3340_v53 = vpop.eup %3339 }
0x1fb0   :  { %v3342_v50 = vpop.eup %3341  ;;  %v2038_v34 = vadd.f32 1.0, %v3340_v53 }
0x1fb1   :  { %v2062_v22 = vadd.f32 1.0, %v3342_v50 }
0x1fb2   :  { %3343 = vrcp.f32 %v2038_v34 }
0x1fb3   :  { %3345 = vrcp.f32 %v2062_v22 }
0x1fbc   :  { %v3344_v41 = vpop.eup %3343 }
0x1fbd   :  { %v3346_v33 = vpop.eup %3345  ;;  %v2042_v43 = vmul.f32 %v3344_v41, %v1905_v30 }
0x1fbe   :  { %v2066_v51 = vmul.f32 %v3346_v33, %v1929_v13 }
0x2020   :  { %v2045_v3 = vpop.permute.xlu0 %2044 }
0x2021   :  { %v2047_v32 = vmul.f32 %v3344_v41, %v2045_v3  ;;  %v2069_v44 = vpop.permute.xlu1 %2068 }
0x2022   :  { %v2071_v40 = vmul.f32 %v3346_v33, %v2069_v44 }
0x2023   :  { %2049 = vrot.lane.b32.xlu0 %v2047_v32, %s3518_s1 }
0x2024   :  { %2073 = vrot.lane.b32.xlu1 %v2071_v40, %s3518_s1 }
0x2095   :  { %v2050_v49 = vpop.permute.xlu0 %2049 }
0x2096   :  { %v2052_v57 = vadd.f32 %v2050_v49, %v2042_v43  ;;  %v2074_v38 = vpop.permute.xlu1 %2073 }
0x2097   :  { %v2076_v4 = vadd.f32 %v2074_v38, %v2066_v51 }
0x2098   :  { %3347 = vtanh.f32 %v2052_v57 }
0x2099   :  { %3349 = vtanh.f32 %v2076_v4 }
0x20a2   :  { %v3348_v63 = vpop.eup %3347 }
0x20a3   :  { %v3350_v2 = vpop.eup %3349  ;;  %2055 = vrot.lane.b32.xlu0 %v3348_v63, %s3518_s1 }
0x20a4   :  { %2079 = vrot.lane.b32.xlu1 %v3350_v2, %s3518_s1 }
0x2115   :  { %v2056_v59 = vpop.permute.xlu0 %2055 }
0x2116   :  { %v4250_v9 = vmul.f32 %v3344_v41, %v2056_v59  ;;  %v2080_v14 = vpop.permute.xlu1 %2079 }
0x2117   :  { %v4252_v18 = vmul.f32 %v3346_v33, %v2080_v14 }
0x2118   :  { %2098 = vrot.lane.b32.xlu0 %v4250_v9, %s3519_s4 }
0x2119   :  { %2102 = vrot.lane.b32.xlu1 %v4252_v18, %s3520_s24 }
0x218a   :  { %v2099_v54 = vpop.permute.xlu0 %2098 }
0x218b   :  { %v2103_v30 = vpop.permute.xlu1 %2102 }
0x218c   :  { %v2105_v11 = vsel %vm400_vm1, %v2099_v54, %v2103_v30 }
0x218d   :  { %2808 = vmatmul.mubr.msk.f32.vlgmr.msra.gmra.mrb[40].mxu0 %vm267_vm2, %v2105_v11 }
0x218e   :  { %3099 = vmatpush1.bf16.msra.mxu0 %v4012_v20  ;;  %2443 = vmatprep.mubr.f32.mxu0 %v3517_v0 }
0x218f   :  { %3101 = vmatprep.subr.bf16.mxu0 %v4025_v36 }
0x2192   :  { %3103 = vmatpush1.bf16.msra.mxu0 %v4033_v45 }
0x2193   :  { %3105 = vmatprep.subr.bf16.mxu0 %v4042_v47 }
0x2196   :  { %3107 = vmatpush1.bf16.msra.mxu0 %v4051_v5 }
0x2197   :  { %3109 = vmatprep.subr.bf16.mxu0 %v4064_v21 }
0x219a   :  { %3111 = vmatpush1.bf16.msra.mxu0 %v4066_v24 }
0x2260   :  { %v2175_v13 = vpop.f32.mrb[40].mxu0 }
0x2261   :  { %v2180_v52 = vadd.f32 %v2175_v13, %v4150_v55  ;;  %v2177_v25 = vpop.f32.mrb[41].mxu0 }
0x2262   :  { %v2181_v26 = vadd.f32 %v2177_v25, %v4147_v48 }
0x2263   :  { %3351 = vtanh.f32 %v2180_v52  ;;  %v2809_v8 = vmul.f32 -1.442695, %v2180_v52 }
0x2264   :  { %3353 = vtanh.f32 %v2181_v26  ;;  %v2810_v62 = vmul.f32 -1.442695, %v2181_v26 }
0x2265   :  { %3355 = vpow2.f32 %v2809_v8 }
0x2266   :  { %3357 = vpow2.f32 %v2810_v62 }
0x226d   :  { %v3352_v16 = vpop.eup %3351 }
0x226e   :  { %v3354_v19 = vpop.eup %3353  ;;  %2191 = vrot.lane.b32.xlu0 %v3352_v16, %s3518_s1 }
0x226f   :  { %2215 = vrot.lane.b32.xlu1 %v3354_v19, %s3518_s1  ;;  %v3356_v46 = vpop.eup %3355 }
0x2270   :  { %v3358_v37 = vpop.eup %3357  ;;  %v2185_v27 = vadd.f32 1.0, %v3356_v46 }
0x2271   :  { %v2209_v61 = vadd.f32 1.0, %v3358_v37 }
0x2272   :  { %3359 = vrcp.f32 %v2185_v27 }
0x2273   :  { %3361 = vrcp.f32 %v2209_v61 }
0x227c   :  { %v3360_v55 = vpop.eup %3359 }
0x227d   :  { %v3362_v39 = vpop.eup %3361  ;;  %v2189_v53 = vmul.f32 %v3360_v55, %v2052_v57 }
0x227e   :  { %v2213_v34 = vmul.f32 %v3362_v39, %v2076_v4 }
0x22e0   :  { %v2192_v48 = vpop.permute.xlu0 %2191 }
0x22e1   :  { %v2194_v10 = vmul.f32 %v3360_v55, %v2192_v48  ;;  %v2216_v60 = vpop.permute.xlu1 %2215 }
0x22e2   :  { %v2218_v35 = vmul.f32 %v3362_v39, %v2216_v60 }
0x22e3   :  { %2196 = vrot.lane.b32.xlu0 %v2194_v10, %s3518_s1 }
0x22e4   :  { %2220 = vrot.lane.b32.xlu1 %v2218_v35, %s3518_s1 }
0x2355   :  { %v2197_v50 = vpop.permute.xlu0 %2196 }
0x2356   :  { %v2199_v22 = vadd.f32 %v2197_v50, %v2189_v53  ;;  %v2221_v41 = vpop.permute.xlu1 %2220 }
0x2357   :  { %v2223_v3 = vadd.f32 %v2221_v41, %v2213_v34 }
0x2358   :  { %3363 = vtanh.f32 %v2199_v22 }
0x2359   :  { %3365 = vtanh.f32 %v2223_v3 }
0x2362   :  { %v3364_v33 = vpop.eup %3363 }
0x2363   :  { %v3366_v32 = vpop.eup %3365  ;;  %2202 = vrot.lane.b32.xlu0 %v3364_v33, %s3518_s1 }
0x2364   :  { %2226 = vrot.lane.b32.xlu1 %v3366_v32, %s3518_s1 }
0x23d5   :  { %v2203_v44 = vpop.permute.xlu0 %2202 }
0x23d6   :  { %v4276_v40 = vmul.f32 %v3360_v55, %v2203_v44  ;;  %v2227_v43 = vpop.permute.xlu1 %2226 }
0x23d7   :  { %v4278_v49 = vmul.f32 %v3362_v39, %v2227_v43 }
0x23d8   :  { %2233 = vrot.lane.b32.xlu0 %v4276_v40, %s3519_s4 }
0x23d9   :  { %2237 = vrot.lane.b32.xlu1 %v4278_v49, %s3520_s24 }
0x244a   :  { %v2234_v51 = vpop.permute.xlu0 %2233 }
0x244b   :  { %v2238_v57 = vpop.permute.xlu1 %2237 }
0x244c   :  { %v2240_v38 = vsel %vm400_vm1, %v2234_v51, %v2238_v57 }
0x244d   :  { %2811 = vmatmul.mubr.msk.f32.vlgmr.msra.gmra.mrb[16].mxu1 %vm267_vm2, %v2240_v38 }
0x244e   :  { %3115 = vmatpush1.bf16.msra.mxu1 %v4012_v20  ;;  %2578 = vmatprep.mubr.f32.mxu1 %v3517_v0 }
0x244f   :  { %3117 = vmatprep.subr.bf16.mxu1 %v4025_v36 }
0x2452   :  { %3119 = vmatpush1.bf16.msra.mxu1 %v4033_v45 }
0x2453   :  { %3121 = vmatprep.subr.bf16.mxu1 %v4042_v47 }
0x2456   :  { %3123 = vmatpush1.bf16.msra.mxu1 %v4051_v5 }
0x2457   :  { %3125 = vmatprep.subr.bf16.mxu1 %v4064_v21 }
0x245a   :  { %3127 = vmatpush1.bf16.msra.mxu1 %v4066_v24 }
0x2520   :  { %v2310_v4 = vpop.f32.mrb[16].mxu1 }
0x2521   :  { %v2315_v63 = vadd.f32 %v2310_v4, %v4154_v58  ;;  %v2312_v2 = vpop.f32.mrb[17].mxu1 }
0x2522   :  { %v2316_v20 = vadd.f32 %v2312_v2, %v4143_v42 }
0x2523   :  { %3367 = vtanh.f32 %v2315_v63  ;;  %v2812_v45 = vmul.f32 -1.442695, %v2315_v63 }
0x2524   :  { %3369 = vtanh.f32 %v2316_v20  ;;  %v2813_v47 = vmul.f32 -1.442695, %v2316_v20 }
0x2525   :  { %3371 = vpow2.f32 %v2812_v45 }
0x2526   :  { %3373 = vpow2.f32 %v2813_v47 }
0x252d   :  { %v3368_v0 = vpop.eup %3367 }
0x252e   :  { %v3370_v36 = vpop.eup %3369  ;;  %2326 = vrot.lane.b32.xlu0 %v3368_v0, %s3518_s1 }
0x252f   :  { %2350 = vrot.lane.b32.xlu1 %v3370_v36, %s3518_s1  ;;  %v3372_v5 = vpop.eup %3371 }
0x2530   :  { %v3374_v21 = vpop.eup %3373  ;;  %v2320_v24 = vadd.f32 1.0, %v3372_v5 }
0x2531   :  { %v2344_v59 = vadd.f32 1.0, %v3374_v21 }
0x2532   :  { %3375 = vrcp.f32 %v2320_v24 }
0x2533   :  { %3377 = vrcp.f32 %v2344_v59 }
0x253c   :  { %v3376_v58 = vpop.eup %3375 }
0x253d   :  { %v3378_v14 = vpop.eup %3377  ;;  %v2324_v13 = vmul.f32 %v3376_v58, %v2199_v22 }
0x253e   :  { %v2348_v25 = vmul.f32 %v3378_v14, %v2223_v3 }
0x25a0   :  { %v2327_v42 = vpop.permute.xlu0 %2326 }
0x25a1   :  { %v2329_v54 = vmul.f32 %v3376_v58, %v2327_v42  ;;  %v2351_v30 = vpop.permute.xlu1 %2350 }
0x25a2   :  { %v2353_v11 = vmul.f32 %v3378_v14, %v2351_v30 }
0x25a3   :  { %2331 = vrot.lane.b32.xlu0 %v2329_v54, %s3518_s1 }
0x25a4   :  { %2355 = vrot.lane.b32.xlu1 %v2353_v11, %s3518_s1 }
0x2615   :  { %v2332_v52 = vpop.permute.xlu0 %2331 }
0x2616   :  { %v2334_v26 = vadd.f32 %v2332_v52, %v2324_v13  ;;  %v2356_v16 = vpop.permute.xlu1 %2355  ;;  %v3521_v52 = vmov 0  }
0x2617   :  { %v2358_v19 = vadd.f32 %v2356_v16, %v2348_v25  ;;  %3157 = vset.pattern.permute.xlu0 %v3521_v52  ;;  %3158 = vset.pattern.permute.xlu1 %v3521_v52 }
0x2618   :  { %3379 = vtanh.f32 %v2334_v26 }
0x2619   :  { %3381 = vtanh.f32 %v2358_v19 }
0x2622   :  { %v3380_v8 = vpop.eup %3379 }
0x2623   :  { %v3382_v62 = vpop.eup %3381  ;;  %2337 = vrot.lane.b32.xlu0 %v3380_v8, %s3518_s1 }
0x2624   :  { %2361 = vrot.lane.b32.xlu1 %v3382_v62, %s3518_s1 }
0x2695   :  { %v2338_v46 = vpop.permute.xlu0 %2337 }
0x2696   :  { %v4302_v37 = vmul.f32 %v3376_v58, %v2338_v46  ;;  %v2362_v27 = vpop.permute.xlu1 %2361 }
0x2697   :  { %v4304_v61 = vmul.f32 %v3378_v14, %v2362_v27 }
0x2698   :  { %2368 = vrot.lane.b32.xlu0 %v4302_v37, %s3519_s4 }
0x2699   :  { %2372 = vrot.lane.b32.xlu1 %v4304_v61, %s3520_s24 }
0x270a   :  { %v2369_v55 = vpop.permute.xlu0 %2368 }
0x270b   :  { %v2373_v48 = vpop.permute.xlu1 %2372 }
0x270c   :  { %v2375_v39 = vsel %vm400_vm1, %v2369_v55, %v2373_v48 }
0x270d   :  { %2814 = vmatmul.mubr.msk.f32.vlgmr.msra.gmra.mrb[42].mxu0 %vm267_vm2, %v2375_v39 }
0x27e0   :  { %v2445_v10 = vpop.f32.mrb[42].mxu0 }
0x27e1   :  { %v2450_v60 = vadd.f32 %v2445_v10, %v4158_v6  ;;  %v2447_v35 = vpop.f32.mrb[43].mxu0 }
0x27e2   :  { %v2451_v53 = vadd.f32 %v2447_v35, %v4139_v56 }
0x27e3   :  { %3383 = vtanh.f32 %v2450_v60  ;;  %v2815_v22 = vmul.f32 -1.442695, %v2450_v60 }
0x27e4   :  { %3385 = vtanh.f32 %v2451_v53  ;;  %v2816_v41 = vmul.f32 -1.442695, %v2451_v53 }
0x27e5   :  { %3387 = vpow2.f32 %v2815_v22 }
0x27e6   :  { %3389 = vpow2.f32 %v2816_v41 }
0x27ed   :  { %v3384_v50 = vpop.eup %3383 }
0x27ee   :  { %v3386_v34 = vpop.eup %3385  ;;  %2461 = vrot.lane.b32.xlu0 %v3384_v50, %s3518_s1 }
0x27ef   :  { %2485 = vrot.lane.b32.xlu1 %v3386_v34, %s3518_s1  ;;  %v3388_v3 = vpop.eup %3387 }
0x27f0   :  { %v3390_v33 = vpop.eup %3389  ;;  %v2455_v32 = vadd.f32 1.0, %v3388_v3 }
0x27f1   :  { %v2479_v44 = vadd.f32 1.0, %v3390_v33 }
0x27f2   :  { %3391 = vrcp.f32 %v2455_v32 }
0x27f3   :  { %3393 = vrcp.f32 %v2479_v44 }
0x27fc   :  { %v3392_v6 = vpop.eup %3391 }
0x27fd   :  { %v3394_v43 = vpop.eup %3393  ;;  %v2459_v4 = vmul.f32 %v3392_v6, %v2334_v26 }
0x27fe   :  { %v2483_v2 = vmul.f32 %v3394_v43, %v2358_v19 }
0x2860   :  { %v2462_v56 = vpop.permute.xlu0 %2461 }
0x2861   :  { %v2464_v51 = vmul.f32 %v3392_v6, %v2462_v56  ;;  %v2486_v57 = vpop.permute.xlu1 %2485 }
0x2862   :  { %v2488_v38 = vmul.f32 %v3394_v43, %v2486_v57  ;;  %v2651_v57 = vld [vmem:[#allocation7] sm:$0xff] }
0x2863   :  { %2466 = vrot.lane.b32.xlu0 %v2464_v51, %s3518_s1 }
0x2864   :  { %2490 = vrot.lane.b32.xlu1 %v2488_v38, %s3518_s1  ;;  %v2652_v38 = vld [vmem:[#allocation7 + $0x8] sm:$0xff] }
0x28d5   :  { %v2467_v63 = vpop.permute.xlu0 %2466 }
0x28d6   :  { %v4318_v20 = vadd.f32 %v2467_v63, %v2459_v4  ;;  %v2491_v0 = vpop.permute.xlu1 %2490  ;;  %v2653_v4 = vld [vmem:[#allocation7 + $0x10] sm:$0xff]  ;;  %v3128_v63 = vpack.c.bf16 %v2652_v38, %v2651_v57 }
0x28d7   :  { %v4320_v36 = vadd.f32 %v2491_v0, %v2483_v2  ;;  %v2654_v2 = vld [vmem:[#allocation7 + $0x18] sm:$0xff] }
0x28d8   :  { %3395 = vtanh.f32 %v4318_v20  ;;  %v3132_v0 = vpack.c.bf16 %v2654_v2, %v2653_v4  ;;  %3129 = vmatprep.subr.bf16.mxu0 %v3128_v63 }
0x28d9   :  { %3397 = vtanh.f32 %v4320_v36  ;;  %3131 = vmatpush3.bf16.msra.mxu0 %v3128_v63 }
0x28da   :  { %3133 = vmatprep.subr.bf16.mxu0 %v3132_v0 }
0x28dd   :  { %3135 = vmatpush3.bf16.msra.mxu0 %v3132_v0 }
0x28e2   :  { %v3396_v45 = vpop.eup %3395 }
0x28e3   :  { %v3398_v47 = vpop.eup %3397  ;;  %2472 = vrot.lane.b32.xlu0 %v3396_v45, %s3518_s1  ;;  %v2655_v45 = vld [vmem:[#allocation7 + $0x20] sm:$0xff] }
0x28e4   :  { %2496 = vrot.lane.b32.xlu1 %v3398_v47, %s3518_s1  ;;  %v2656_v47 = vld [vmem:[#allocation7 + $0x28] sm:$0xff] }
0x2955   :  { %v2473_v5 = vpop.permute.xlu0 %2472 }
0x2956   :  { %v4326_v21 = vmul.f32 %v3392_v6, %v2473_v5  ;;  %v2497_v24 = vpop.permute.xlu1 %2496  ;;  %v3136_v5 = vpack.c.bf16 %v2656_v47, %v2655_v45 }
0x2957   :  { %v4328_v59 = vmul.f32 %v3394_v43, %v2497_v24 }
0x2958   :  { %2503 = vrot.lane.b32.xlu0 %v4326_v21, %s3519_s4  ;;  %3137 = vmatprep.subr.bf16.mxu0 %v3136_v5 }
0x2959   :  { %2507 = vrot.lane.b32.xlu1 %v4328_v59, %s3520_s24  ;;  %3139 = vmatpush3.bf16.msra.mxu0 %v3136_v5 }
0x29ca   :  { %v2504_v58 = vpop.permute.xlu0 %2503 }
0x29cb   :  { %v2508_v42 = vpop.permute.xlu1 %2507 }
0x29cc   :  { %v2510_v14 = vsel %vm400_vm1, %v2504_v58, %v2508_v42 }
0x29cd   :  { %2817 = vmatmul.mubr.msk.f32.vlgmr.msra.gmra.mrb[18].mxu1 %vm267_vm2, %v2510_v14 }
0x2aa0   :  { %v2580_v54 = vpop.f32.mrb[18].mxu1 }
0x2aa1   :  { %v2585_v30 = vadd.f32 %v2580_v54, %v4160_v15  ;;  %v2582_v11 = vpop.f32.mrb[19].mxu1 }
0x2aa2   :  { %v2586_v13 = vadd.f32 %v2582_v11, %v4135_v29  ;;  %v88_v29 = vld [vmem:[%s4399_s0] sm:$0xff] }
0x2aa3   :  { %3399 = vtanh.f32 %v2585_v30  ;;  %v2818_v16 = vmul.f32 -1.442695, %v2585_v30  ;;  %vm1642_vm3 = vcmp.eq.s32.totalorder %v88_v29, 1  ;;  %vm1649_vm4 = vcmp.eq.s32.totalorder %v88_v29, 8 }
0x2aa4   :  { %3401 = vtanh.f32 %v2586_v13  ;;  %v2819_v19 = vmul.f32 -1.442695, %v2586_v13  ;;  %v1643_v35 = vsel %vm1642_vm3, 1, %v3521_v52  ;;  %v1650_v53 = vsel %vm1649_vm4, 1, %v3521_v52 }
0x2aa5   :  { %3403 = vpow2.f32 %v2818_v16  ;;  %vm1796_vm5 = vcmp.eq.s32.totalorder %v88_v29, 7  ;;  %vm1789_vm6 = vcmp.eq.s32.totalorder %v88_v29, 2  ;;  %vm1943_vm7 = vcmp.eq.s32.totalorder %v88_v29, 6 }
0x2aa6   :  { %3405 = vpow2.f32 %v2819_v19  ;;  %v1797_v50 = vsel %vm1796_vm5, 1, %v3521_v52  ;;  %v1790_v34 = vsel %vm1789_vm6, 1, %v3521_v52  ;;  %vm1936_vm8 = vcmp.eq.s32.totalorder %v88_v29, 3 }
0x2aa7   :  { %v1944_v22 = vsel %vm1943_vm7, 1, %v3521_v52  ;;  %v1937_v41 = vsel %vm1936_vm8, 1, %v3521_v52  ;;  %vm2090_vm9 = vcmp.eq.s32.totalorder %v88_v29, 5  ;;  %vm2083_vm10 = vcmp.eq.s32.totalorder %v88_v29, 4 }
0x2aa8   :  { %v2091_v3 = vsel %vm2090_vm9, 1, %v3521_v52  ;;  %v2084_v33 = vsel %vm2083_vm10, 1, %v3521_v52  ;;  %vm2747_vm5 = vcmask 31744   ;;  %vm2749_vm6 = vcmask 64512  }
0x2aad   :  { %v3400_v25 = vpop.eup %3399 }
0x2aae   :  { %v3402_v26 = vpop.eup %3401  ;;  %2596 = vrot.lane.b32.xlu0 %v3400_v25, %s3518_s1  ;;  %v2657_v25 = vld [vmem:[#allocation7 + $0x30] sm:$0xff] }
0x2aaf   :  { %2620 = vrot.lane.b32.xlu1 %v3402_v26, %s3518_s1  ;;  %v3404_v8 = vpop.eup %3403  ;;  %v2658_v26 = vld [vmem:[#allocation7 + $0x38] sm:$0xff] }
0x2ab0   :  { %v3406_v15 = vpop.eup %3405  ;;  %v2590_v62 = vadd.f32 1.0, %v3404_v8  ;;  %v3140_v8 = vpack.c.bf16 %v2658_v26, %v2657_v25 }
0x2ab1   :  { %v2614_v46 = vadd.f32 1.0, %v3406_v15 }
0x2ab2   :  { %3407 = vrcp.f32 %v2590_v62  ;;  %3141 = vmatprep.subr.bf16.mxu0 %v3140_v8 }
0x2ab3   :  { %3409 = vrcp.f32 %v2614_v46  ;;  %3143 = vmatpush3.bf16.msra.mxu0 %v3140_v8 }
0x2abc   :  { %v4343_v27 = vpop.eup %3407 }
0x2abd   :  { %v4345_v48 = vpop.eup %3409  ;;  %v2594_v32 = vmul.f32 %v4343_v27, %v4318_v20 }
0x2abe   :  { %v2618_v6 = vmul.f32 %v4345_v48, %v4320_v36 }
0x2b20   :  { %v2597_v55 = vpop.permute.xlu0 %2596 }
0x2b21   :  { %v2599_v39 = vmul.f32 %v4343_v27, %v2597_v55  ;;  %v2621_v10 = vpop.permute.xlu1 %2620 }
0x2b22   :  { %v2623_v60 = vmul.f32 %v4345_v48, %v2621_v10 }
0x2b23   :  { %2601 = vrot.lane.b32.xlu0 %v2599_v39, %s3518_s1 }
0x2b24   :  { %2625 = vrot.lane.b32.xlu1 %v2623_v60, %s3518_s1 }
0x2b27   :  { %1645 = vperm.xlu0 %3157, %v1643_v35  }
0x2b28   :  { %1652 = vperm.xlu1 %3158, %v1650_v53  }
0x2b2b   :  { %1799 = vperm.xlu0 %3157, %v1797_v50  }
0x2b2c   :  { %1792 = vperm.xlu1 %3158, %v1790_v34  }
0x2b2f   :  { %1946 = vperm.xlu0 %3157, %v1944_v22  }
0x2b30   :  { %1939 = vperm.xlu1 %3158, %v1937_v41  }
0x2b33   :  { %2093 = vperm.xlu0 %3157, %v2091_v3  }
0x2b34   :  { %2086 = vperm.xlu1 %3158, %v2084_v33  }
0x2b95   :  { %v2602_v44 = vpop.permute.xlu0 %2601 }
0x2b96   :  { %v2604_v56 = vadd.f32 %v2602_v44, %v2594_v32  ;;  %v2626_v43 = vpop.permute.xlu1 %2625 }
0x2b97   :  { %v2628_v51 = vadd.f32 %v2626_v43, %v2618_v6 }
0x2b98   :  { %3411 = vtanh.f32 %v2604_v56 }
0x2b99   :  { %3413 = vtanh.f32 %v2628_v51 }
0x2ba2   :  { %v3412_v20 = vpop.eup %3411 }
0x2ba3   :  { %v3414_v24 = vpop.eup %3413  ;;  %2607 = vrot.lane.b32.xlu1 %v3412_v20, %s3518_s1 }
0x2ba4   :  { %2631 = vrot.lane.b32.xlu0 %v3414_v24, %s3518_s1 }
0x2ba6   :  { %v1646_v58 = vpop.permute.xlu0 %1645 }
0x2ba7   :  { %v1653_v36 = vpop.permute.xlu1 %1652  ;;  %vm1647_vm11 = vcmp.eq.s32.totalorder %v1646_v58, 1 }
0x2ba8   :  { %vm1654_vm12 = vcmp.eq.s32.totalorder %v1653_v36, 1  ;;  %v1648_v52 = vsel %vm1647_vm11, %v4167_v28, 0.0 }
0x2ba9   :  { %v1655_v16 = vsel %vm1654_vm12, %v4171_v1, 0.0 }
0x2baa   :  { %v1800_v14 = vpop.permute.xlu0 %1799 }
0x2bab   :  { %v1793_v42 = vpop.permute.xlu1 %1792  ;;  %vm1801_vm14 = vcmp.eq.s32.totalorder %v1800_v14, 1 }
0x2bac   :  { %vm1794_vm13 = vcmp.eq.s32.totalorder %v1793_v42, 1  ;;  %v1802_v15 = vsel %vm1801_vm14, %v4198_v31, %v1655_v16 }
0x2bad   :  { %v1795_v19 = vsel %vm1794_vm13, %v4196_v23, %v1648_v52 }
0x2bae   :  { %v1947_v30 = vpop.permute.xlu0 %1946 }
0x2baf   :  { %v1940_v54 = vpop.permute.xlu1 %1939  ;;  %vm1948_vm0 = vcmp.eq.s32.totalorder %v1947_v30, 1 }
0x2bb0   :  { %vm1941_vm15 = vcmp.eq.s32.totalorder %v1940_v54, 1  ;;  %v1949_v28 = vsel %vm1948_vm0, %v4225_v17, %v1802_v15 }
0x2bb1   :  { %v1942_v62 = vsel %vm1941_vm15, %v4223_v12, %v1795_v19 }
0x2bb2   :  { %v2094_v13 = vpop.permute.xlu0 %2093 }
0x2bb3   :  { %v2087_v11 = vpop.permute.xlu1 %2086  ;;  %vm2095_vm4 = vcmp.eq.s32.totalorder %v2094_v13, 1 }
0x2bb4   :  { %vm2088_vm3 = vcmp.eq.s32.totalorder %v2087_v11, 1  ;;  %v2096_v29 = vsel %vm2095_vm4, %v4252_v18, %v1949_v28 }
0x2bb5   :  { %v2089_v46 = vsel %vm2088_vm3, %v4250_v9, %v1942_v62  ;;  %v2231_v23 = vsel %vm2088_vm3, %v4278_v49, %v2096_v29 }
0x2bb6   :  { %v2230_v1 = vsel %vm2095_vm4, %v4276_v40, %v2089_v46  ;;  %v2366_v31 = vsel %vm1941_vm15, %v4304_v61, %v2231_v23 }
0x2bb7   :  { %v2365_v55 = vsel %vm1948_vm0, %v4302_v37, %v2230_v1  ;;  %v2501_v40 = vsel %vm1794_vm13, %v4328_v59, %v2366_v31  ;;  %v2820_v59 = vld [vmem:[%s4408_s9] ss:$0 sm:$0xff] }
0x2bb8   :  { %v2500_v18 = vsel %vm1801_vm14, %v4326_v21, %v2365_v55 }
0x2c15   :  { %v2608_v12 = vpop.permute.xlu1 %2607 }
0x2c16   :  { %v2610_v39 = vmul.f32 %v4343_v27, %v2608_v12  ;;  %v2632_v17 = vpop.permute.xlu0 %2631 }
0x2c17   :  { %v2634_v9 = vmul.f32 %v4345_v48, %v2632_v17 }
0x2c18   :  { %v2635_v10 = vsel %vm1654_vm12, %v2610_v39, %v2500_v18 }
0x2c19   :  { %2638 = vrot.lane.b32.xlu1 %v2635_v10, %s3519_s4  ;;  %v2636_v49 = vsel %vm1647_vm11, %v2634_v9, %v2501_v40 }
0x2c1a   :  { %2642 = vrot.lane.b32.xlu0 %v2636_v49, %s3520_s24 }
0x2c1d   :  { %2647 = vrot.lane.b32.xlu1 %v2634_v9, %s3520_s24 }
0x2c8b   :  { %v2639_v37 = vpop.permute.xlu1 %2638 }
0x2c8c   :  { %v2643_v61 = vpop.permute.xlu0 %2642 }
0x2c8d   :  { %v2645_v27 = vsel %vm400_vm1, %v2639_v37, %v2643_v61 }
0x2c8e   :  { %2849 = vmatprep.mubr.msk.f32.mxu0 %vm267_vm2, %v2645_v27 }
0x2c8f   :  { %v2648_v21 = vpop.permute.xlu1 %2647 }
0x2c90   :  { %v2650_v48 = vsel %vm400_vm1, %v4175_v7, %v2648_v21 }
0x2c91   :  { %2850 = vmatmul.mubr.msk.f32.vlgmr.msra.gmra.mrb[44].mxu0 %vm267_vm2, %v2650_v48 }
0x2d64   :  { %v2851_v60 = vpop.f32.mrb[44].mxu0 }
0x2d65   :  { %v2744_v35 = vadd.f32 %v2851_v60, %v2820_v59  ;;  %v2738_v53 = vpop.f32.mrb[45].mxu0 }
0x2d66   :  { %v2739_v50 = vadd.f32 %v2820_v59, %v2738_v53 }
0x2d68   :  { %v2748_v34 = vsel %vm2747_vm5, %v2739_v50, %v2744_v35 }
0x2d69   :  { %2750 = vst.msk [vmem:[%s4409_s10] sm:$0xff] %vm2749_vm6, %v2748_v34 }
0x2d6a   :  { %2755 = vsyncpa [#allocation3], 1 }
0x2d6b   :  { %2756 = vsyncpa [#allocation5], 1 }
0x2d6c   :  { %2757 = vsyncpa [#allocation8], 1 }

</bundles_post_ra>
